<compile_context>
chip_gen: v6e
topology: v6e:2x2x1
jax: 0.10.0
libtpu: 0.0.40
codegen_flags: <defaults>
</compile_context>

<pallas_src>
import math
import functools

import jax
import jax.numpy as jnp
from jax import lax
from jax.experimental import pallas as pl
from jax.experimental.pallas import tpu as pltpu

LN_EPS = 1e-5          # nn.LayerNorm default
MASK_VALUE = -1e30     # fill value for padded key columns (≈ -finfo.max semantics)

# Resolved on the first layer call: does this jax/libtpu accept pipeline_mode=pl.Buffered(1)
# (single-buffered grid-invariant weight blocks)?  Falls back to default buffering if not.
_SINGLE_BUFFER_WEIGHTS = None


def _device_kind():
    try:
        return jax.devices()[0].device_kind.lower()
    except Exception:
        return ""


def _round_up(x, m):
    return ((x + m - 1) // m) * m


def _choose_tiling(n, block_q=None):
    """Pick the query-tile size and padded sequence length for this chip."""
    n8 = _round_up(n, 8)                          # sublane alignment for (1, bq, D) blocks
    kind = _device_kind()
    if block_q is None:
        # v6e: 2x256^2 MXU -> 256-row tiles fill the systolic array and halve per-step
        # pipeline overhead.  v5e (4x128^2 MXU) and v7x (64 MiB VMEM) stay at 128.
        block_q = 256 if ("v6" in kind and n8 >= 256) else 128
    block_q = min(block_q, n8)
    n_pad = _round_up(n8, block_q)
    return block_q, n_pad


def _vmem_limit_bytes():
    kind = _device_kind()
    if "v7" in kind:
        return 56 * 1024 * 1024       # v7x: 64 MiB physical VMEM per TensorCore
    if any(v in kind for v in ("v4", "v5", "v6")):
        return 96 * 1024 * 1024       # 128 MiB physical VMEM parts
    return 48 * 1024 * 1024           # conservative default for unknown parts


def _layernorm(x, gamma, beta):
    """Row-wise LayerNorm in f32 (biased variance, eps inside sqrt) — matches nn.LayerNorm."""
    mu = jnp.mean(x, axis=-1, keepdims=True)
    var = jnp.mean(jnp.square(x - mu), axis=-1, keepdims=True)
    return (x - mu) * lax.rsqrt(var + LN_EPS) * gamma + beta


def _layer_kernel(xf_ref,
                  ln1_g_ref, ln1_b_ref,
                  wq_ref, wk_ref, wv_ref, wo_ref, bo_ref,
                  ln2_g_ref, ln2_b_ref, w1_ref, b1_ref, w2_ref, b2_ref,
                  o_ref,
                  k_scr, v_scr,
                  *, heads, dim_head, block_q, n_real):
    """One full transformer layer for (batch b, query-tile q) of the grid."""
    q_idx = pl.program_id(1)
    n_pad = xf_ref.shape[1]
    mxu_dt = wq_ref.dtype                      # bf16: native high-throughput MXU input dtype

    ln1_g = ln1_g_ref[...]
    ln1_b = ln1_b_ref[...]

    # ---------------- K / V cache: computed once per batch element ----------------
    @pl.when(q_idx == 0)
    def _():
        xf = xf_ref[0].astype(jnp.float32)                         # (N, D)
        xnf = _layernorm(xf, ln1_g, ln1_b).astype(mxu_dt)          # (N, D) bf16
        k = jnp.dot(xnf, wk_ref[...], preferred_element_type=jnp.float32)   # (N, h*d)
        v = jnp.dot(xnf, wv_ref[...], preferred_element_type=jnp.float32)
        # One head relayout per batch element (not per query tile).
        k_scr[...] = jnp.transpose(
            k.reshape(n_pad, heads, dim_head), (1, 0, 2)).astype(mxu_dt)
        v_scr[...] = jnp.transpose(
            v.reshape(n_pad, heads, dim_head), (1, 0, 2)).astype(mxu_dt)

    # ---------------- Residual(PreNorm(Attention)) for this query tile ----------------
    q_start = pl.multiple_of(q_idx * block_q, block_q)
    xq = xf_ref[0, pl.ds(q_start, block_q), :].astype(jnp.float32)   # (bq, D)
    xnq = _layernorm(xq, ln1_g, ln1_b)
    # attention scale (dim_head**-0.5) is folded into w_q at init time
    q = jnp.dot(xnq.astype(mxu_dt), wq_ref[...], preferred_element_type=jnp.float32)
    q3 = jnp.transpose(q.reshape(block_q, heads, dim_head), (1, 0, 2)).astype(mxu_dt)

    dots = jnp.einsum('hqd,hkd->hqk', q3, k_scr[...],
                      preferred_element_type=jnp.float32)            # (h, bq, N)
    if n_pad > n_real:                                               # mask padded key columns
        key_idx = lax.broadcasted_iota(jnp.int32, (1, 1, n_pad), 2)
        dots = jnp.where(key_idx < n_real, dots, MASK_VALUE)
    dots = dots - jnp.max(dots, axis=-1, keepdims=True)              # stable softmax (f32)
    e = jnp.exp(dots)
    inv_denom = pl.reciprocal(jnp.sum(e, axis=-1, keepdims=True), approx=True)   # EUP
    # Deferred normalization: un-normalized PV matmul, then scale the (h,bq,d) context —
    # N/dim_head x fewer VPU multiplies than scaling the (h,bq,N) probabilities.
    ctx = jnp.einsum('hqk,hkd->hqd', e.astype(mxu_dt), v_scr[...],
                     preferred_element_type=jnp.float32)
    ctx = ctx * inv_denom                                            # (h, bq, d)

    # Output projection as a per-head batched matmul + head-sum: avoids the
    # (h,bq,d) -> (bq,h*d) XLU relayout, same MXU flop count.
    out_h = jnp.einsum('hqd,hdD->hqD', ctx.astype(mxu_dt), wo_ref[...],
                       preferred_element_type=jnp.float32)           # (h, bq, D)
    attn_out = jnp.sum(out_h, axis=0) + bo_ref[...]
    x1 = xq + attn_out                                               # residual (f32)

    # ---------------- Residual(PreNorm(FeedForward)) ----------------
    xn2 = _layernorm(x1, ln2_g_ref[...], ln2_b_ref[...])
    h1 = jnp.dot(xn2.astype(mxu_dt), w1_ref[...],
                 preferred_element_type=jnp.float32) + b1_ref[...]   # (bq, mlp)
    c = math.sqrt(2.0 / math.pi)
    h1c = h1 * h1 * h1                                               # no jnp.power
    h1g = 0.5 * h1 * (1.0 + jnp.tanh(c * (h1 + 0.044715 * h1c)))     # tanh GELU (matches module)
    h2 = jnp.dot(h1g.astype(mxu_dt), w2_ref[...],
                 preferred_element_type=jnp.float32) + b2_ref[...]   # (bq, D)

    o_ref[0] = (x1 + h2).astype(o_ref.dtype)


def _transformer_layer(x, p, *, heads, dim_head, block_q, n_real):
    """Apply one transformer layer to x of shape (B, N_pad, D) via pallas_call."""
    global _SINGLE_BUFFER_WEIGHTS
    B, n_pad, D = x.shape
    inner = heads * dim_head
    mlp_dim = p["w1"].shape[1]
    n_q = n_pad // block_q
    w_dt = p["w_q"].dtype

    kernel = functools.partial(_layer_kernel, heads=heads, dim_head=dim_head,
                               block_q=block_q, n_real=n_real)
    operands = (x, p["ln1_g"], p["ln1_b"],
                p["w_q"], p["w_k"], p["w_v"], p["w_out"], p["b_out"],
                p["ln2_g"], p["ln2_b"], p["w1"], p["b1"], p["w2"], p["b2"])

    def call(single_buffer_weights):
        def const(shape):
            idx = lambda b, q: (0,) * len(shape)
            if single_buffer_weights:
                # Grid-invariant blocks: the second pipeline buffer is pure VMEM waste.
                return pl.BlockSpec(shape, idx, pipeline_mode=pl.Buffered(1))
            return pl.BlockSpec(shape, idx)

        return pl.pallas_call(
            kernel,
            out_shape=jax.ShapeDtypeStruct((B, n_pad, D), x.dtype),
            grid=(B, n_q),
            in_specs=[
                pl.BlockSpec((1, n_pad, D), lambda b, q: (b, 0, 0)),   # full seq, resident per b
                const((1, D)), const((1, D)),                          # ln1 gamma / beta
                const((D, inner)), const((D, inner)), const((D, inner)),  # w_q, w_k, w_v
                const((heads, dim_head, D)), const((1, D)),            # w_out (per-head), b_out
                const((1, D)), const((1, D)),                          # ln2 gamma / beta
                const((D, mlp_dim)), const((1, mlp_dim)),              # w1, b1
                const((mlp_dim, D)), const((1, D)),                    # w2, b2
            ],
            out_specs=pl.BlockSpec((1, block_q, D), lambda b, q: (b, q, 0)),
            scratch_shapes=[pltpu.VMEM((heads, n_pad, dim_head), w_dt),   # K cache
                            pltpu.VMEM((heads, n_pad, dim_head), w_dt)],  # V cache
            compiler_params=pltpu.CompilerParams(
                # batch is "parallel" (megacore / 2-TC sharding); q must stay "arbitrary"
                # so the K/V scratch filled at q==0 is valid for the later q tiles.
                dimension_semantics=("parallel", "arbitrary"),
                vmem_limit_bytes=_vmem_limit_bytes(),
            ),
        )(*operands)

    if _SINGLE_BUFFER_WEIGHTS is None:
        try:
            out = call(True)
            _SINGLE_BUFFER_WEIGHTS = True
            return out
        except Exception:                     # pl.Buffered(1) unsupported -> default buffering
            _SINGLE_BUFFER_WEIGHTS = False
    return call(_SINGLE_BUFFER_WEIGHTS)


def transformer_forward(x, params, *, heads, dim_head, block_q=None):
    """mask=None forward pass of the PyTorch `Transformer` (dropout = 0.0)."""
    B, N, D = x.shape
    block_q, n_pad = _choose_tiling(N, block_q)
    x_run = x if n_pad == N else jnp.pad(x, ((0, 0), (0, n_pad - N), (0, 0)))
    # TODO(synk): optional attention mask (b, i) path of the PyTorch module not implemented.
    # TODO(synk): cross-pallas_call prefetch of the next layer's weights (P10) to hide the
    #             per-layer weight DMA behind the previous layer's compute.
    # TODO(synk): for very long N on v7x (resident (1,N,D) block + K/V cache > 64 MiB VMEM),
    #             switch to a tiled inner-kv loop with online softmax.
    # TODO(synk): optional bf16 residual stream between layers (precision tradeoff).
    for p in params:
        x_run = _transformer_layer(x_run, p, heads=heads, dim_head=dim_head,
                                   block_q=block_q, n_real=N)
    return x_run if n_pad == N else x_run[:, :N, :]


def init_params(key, *, depth, dim, heads, dim_head, mlp_dim, matmul_dtype=jnp.bfloat16):
    """Deterministic synthetic parameters matching the PyTorch module's shapes.

    Matmul weights are bf16 (halves HBM DMA + VMEM, native MXU dtype); LN params and biases
    stay f32.  The attention scale is folded into w_q; w_out is stored per-head (h, d, D).
    """
    inner = heads * dim_head
    scale = dim_head ** (-0.5)
    params = []

    def linear_w(k, fan_in, shape, dtype):
        bound = 1.0 / math.sqrt(fan_in)
        return jax.random.uniform(k, shape, jnp.float32, -bound, bound).astype(dtype)

    for _ in range(depth):
        key, *ks = jax.random.split(key, 8)
        # Linear(dim, 3*inner, bias=False); chunk(3, dim=-1) == column blocks of (in, out)
        w_qkv = linear_w(ks[0], dim, (dim, 3 * inner), jnp.float32)
        w_out = linear_w(ks[1], inner, (inner, dim), jnp.float32)   # Linear(inner, dim)
        p = {
            "ln1_g": jnp.ones((1, dim), jnp.float32),
            "ln1_b": jnp.zeros((1, dim), jnp.float32),
            "w_q": (w_qkv[:, 0 * inner:1 * inner] * scale).astype(matmul_dtype),  # scale folded
            "w_k": w_qkv[:, 1 * inner:2 * inner].astype(matmul_dtype),
            "w_v": w_qkv[:, 2 * inner:3 * inner].astype(matmul_dtype),
            "w_out": w_out.reshape(heads, dim_head, dim).astype(matmul_dtype),    # per-head
            "b_out": linear_w(ks[2], inner, (1, dim), jnp.float32),
            "ln2_g": jnp.ones((1, dim), jnp.float32),
            "ln2_b": jnp.zeros((1, dim), jnp.float32),
            "w1": linear_w(ks[3], dim, (dim, mlp_dim), matmul_dtype),   # Linear(dim, mlp_dim)
            "b1": linear_w(ks[4], dim, (1, mlp_dim), jnp.float32),
            "w2": linear_w(ks[5], mlp_dim, (mlp_dim, dim), matmul_dtype),  # Linear(mlp_dim, dim)
            "b2": linear_w(ks[6], mlp_dim, (1, dim), jnp.float32),
        }
        params.append(p)
    return params


if __name__ == "__main__":
    # Small config: Transformer(dim=32, depth=2, heads=4, dim_head=8, mlp_dim=64)
    B, N = 2, 8
    dim, depth, heads, dim_head, mlp_dim = 32, 2, 4, 8, 64

    key = jax.random.PRNGKey(0)
    key_x, key_p = jax.random.split(key)
    x = jax.random.normal(key_x, (B, N, dim), jnp.float32)
    params = init_params(key_p, depth=depth, dim=dim, heads=heads,
                         dim_head=dim_head, mlp_dim=mlp_dim)

    out = transformer_forward(x, params, heads=heads, dim_head=dim_head)
    out = jax.block_until_ready(out)
    assert out.shape == (B, N, dim) and out.dtype == jnp.float32
    assert bool(jnp.all(jnp.isfinite(out)))
    print("KERNEL_OK")
</pallas_src>

<mosaic_0001>
module attributes {stable_mosaic.version = 11 : i64} {
  func.func @_layer_kernel(%arg0: i32, %arg1: i32, %arg2: memref<1x8x32xf32, #tpu.memory_space<vmem>>, %arg3: memref<1x32xf32, #tpu.memory_space<vmem>>, %arg4: memref<1x32xf32, #tpu.memory_space<vmem>>, %arg5: memref<32x32xbf16, #tpu.memory_space<vmem>>, %arg6: memref<32x32xbf16, #tpu.memory_space<vmem>>, %arg7: memref<32x32xbf16, #tpu.memory_space<vmem>>, %arg8: memref<4x8x32xbf16, #tpu.memory_space<vmem>>, %arg9: memref<1x32xf32, #tpu.memory_space<vmem>>, %arg10: memref<1x32xf32, #tpu.memory_space<vmem>>, %arg11: memref<1x32xf32, #tpu.memory_space<vmem>>, %arg12: memref<32x64xbf16, #tpu.memory_space<vmem>>, %arg13: memref<1x64xf32, #tpu.memory_space<vmem>>, %arg14: memref<64x32xbf16, #tpu.memory_space<vmem>>, %arg15: memref<1x32xf32, #tpu.memory_space<vmem>>, %arg16: memref<1x8x32xf32, #tpu.memory_space<vmem>>, %arg17: memref<4x8x8xbf16, #tpu.memory_space<vmem>>, %arg18: memref<4x8x8xbf16, #tpu.memory_space<vmem>>) attributes {dimension_semantics = [#tpu.dimension_semantics<parallel>, #tpu.dimension_semantics<arbitrary>], iteration_bounds = array<i64: 2, 1>, scalar_prefetch = 0 : i64, scratch_operands = 2 : i64, tpu.core_type = #tpu.core_type<tc>, window_params = [{transform_indices = @transform_0, window_bounds = array<i64: 1, 8, 32>}, {pipeline_mode = #tpu.pipeline_mode<synchronous>, transform_indices = @transform_1, window_bounds = array<i64: 1, 32>}, {pipeline_mode = #tpu.pipeline_mode<synchronous>, transform_indices = @transform_2, window_bounds = array<i64: 1, 32>}, {pipeline_mode = #tpu.pipeline_mode<synchronous>, transform_indices = @transform_3, window_bounds = array<i64: 32, 32>}, {pipeline_mode = #tpu.pipeline_mode<synchronous>, transform_indices = @transform_4, window_bounds = array<i64: 32, 32>}, {pipeline_mode = #tpu.pipeline_mode<synchronous>, transform_indices = @transform_5, window_bounds = array<i64: 32, 32>}, {pipeline_mode = #tpu.pipeline_mode<synchronous>, transform_indices = @transform_6, window_bounds = array<i64: 4, 8, 32>}, {pipeline_mode = #tpu.pipeline_mode<synchronous>, transform_indices = @transform_7, window_bounds = array<i64: 1, 32>}, {pipeline_mode = #tpu.pipeline_mode<synchronous>, transform_indices = @transform_8, window_bounds = array<i64: 1, 32>}, {pipeline_mode = #tpu.pipeline_mode<synchronous>, transform_indices = @transform_9, window_bounds = array<i64: 1, 32>}, {pipeline_mode = #tpu.pipeline_mode<synchronous>, transform_indices = @transform_10, window_bounds = array<i64: 32, 64>}, {pipeline_mode = #tpu.pipeline_mode<synchronous>, transform_indices = @transform_11, window_bounds = array<i64: 1, 64>}, {pipeline_mode = #tpu.pipeline_mode<synchronous>, transform_indices = @transform_12, window_bounds = array<i64: 64, 32>}, {pipeline_mode = #tpu.pipeline_mode<synchronous>, transform_indices = @transform_13, window_bounds = array<i64: 1, 32>}, {transform_indices = @transform_14, window_bounds = array<i64: 1, 8, 32>}]} {
    %c0 = arith.constant 0 : index
    %c0_0 = arith.constant 0 : index
    %0 = vector.load %arg3[%c0, %c0_0] : memref<1x32xf32, #tpu.memory_space<vmem>>, vector<1x32xf32>
    %c0_1 = arith.constant 0 : index
    %c0_2 = arith.constant 0 : index
    %1 = vector.load %arg4[%c0_1, %c0_2] : memref<1x32xf32, #tpu.memory_space<vmem>>, vector<1x32xf32>
    %c0_i32 = arith.constant 0 : i32
    %2 = arith.cmpi eq, %arg1, %c0_i32 : i32
    %3 = arith.extui %2 : i1 to i32
    %c0_i32_3 = arith.constant 0 : i32
    %4 = arith.cmpi ne, %3, %c0_i32_3 : i32
    scf.if %4 {
      %c0_56 = arith.constant 0 : index
      %c0_57 = arith.constant 0 : index
      %c0_58 = arith.constant 0 : index
      %114 = vector.load %arg2[%c0_56, %c0_57, %c0_58] : memref<1x8x32xf32, #tpu.memory_space<vmem>>, vector<1x8x32xf32>
      %115 = vector.shape_cast %114 : vector<1x8x32xf32> to vector<8x32xf32>
      %cst_59 = arith.constant dense<0.000000e+00> : vector<8xf32>
      %116 = vector.multi_reduction <add>, %115, %cst_59 [1] : vector<8x32xf32> to vector<8xf32>
      %117 = vector.shape_cast %116 : vector<8xf32> to vector<8x1xf32>
      %cst_60 = arith.constant 3.200000e+01 : f32
      %118 = vector.broadcast %cst_60 : f32 to vector<8x1xf32>
      %119 = arith.divf %117, %118 : vector<8x1xf32>
      %120 = vector.broadcast %119 : vector<8x1xf32> to vector<8x32xf32>
      %121 = arith.subf %115, %120 : vector<8x32xf32>
      %122 = arith.mulf %121, %121 : vector<8x32xf32>
      %cst_61 = arith.constant dense<0.000000e+00> : vector<8xf32>
      %123 = vector.multi_reduction <add>, %122, %cst_61 [1] : vector<8x32xf32> to vector<8xf32>
      %124 = vector.shape_cast %123 : vector<8xf32> to vector<8x1xf32>
      %cst_62 = arith.constant 3.200000e+01 : f32
      %125 = vector.broadcast %cst_62 : f32 to vector<8x1xf32>
      %126 = arith.divf %124, %125 : vector<8x1xf32>
      %127 = vector.broadcast %119 : vector<8x1xf32> to vector<8x32xf32>
      %128 = arith.subf %115, %127 : vector<8x32xf32>
      %cst_63 = arith.constant 9.99999974E-6 : f32
      %129 = vector.broadcast %cst_63 : f32 to vector<8x1xf32>
      %130 = arith.addf %126, %129 : vector<8x1xf32>
      %131 = math.rsqrt %130 : vector<8x1xf32>
      %132 = vector.broadcast %131 : vector<8x1xf32> to vector<8x32xf32>
      %133 = arith.mulf %128, %132 : vector<8x32xf32>
      %134 = vector.broadcast %0 : vector<1x32xf32> to vector<8x32xf32>
      %135 = arith.mulf %133, %134 : vector<8x32xf32>
      %136 = vector.broadcast %1 : vector<1x32xf32> to vector<8x32xf32>
      %137 = arith.addf %135, %136 : vector<8x32xf32>
      %138 = arith.truncf %137 : vector<8x32xf32> to vector<8x32xbf16>
      %c0_64 = arith.constant 0 : index
      %c0_65 = arith.constant 0 : index
      %139 = vector.load %arg6[%c0_64, %c0_65] : memref<32x32xbf16, #tpu.memory_space<vmem>>, vector<32x32xbf16>
      %cst_66 = arith.constant dense<0.000000e+00> : vector<8x32xf32>
      %140 = tpu.matmul %138, %139, %cst_66 {dimension_numbers = #tpu.dot_dimension_numbers<[1], [0], [0], [1], [0, 0, 1, 1], [], []>} : vector<8x32xbf16>, vector<32x32xbf16>, vector<8x32xf32> -> vector<8x32xf32>
      %c0_67 = arith.constant 0 : index
      %c0_68 = arith.constant 0 : index
      %141 = vector.load %arg7[%c0_67, %c0_68] : memref<32x32xbf16, #tpu.memory_space<vmem>>, vector<32x32xbf16>
      %cst_69 = arith.constant dense<0.000000e+00> : vector<8x32xf32>
      %142 = tpu.matmul %138, %141, %cst_69 {dimension_numbers = #tpu.dot_dimension_numbers<[1], [0], [0], [1], [0, 0, 1, 1], [], []>} : vector<8x32xbf16>, vector<32x32xbf16>, vector<8x32xf32> -> vector<8x32xf32>
      %143 = vector.shape_cast %140 : vector<8x32xf32> to vector<8x4x8xf32>
      %144 = tpu.transpose %143, [1, 0, 2] : vector<8x4x8xf32> -> vector<4x8x8xf32>
      %145 = arith.truncf %144 : vector<4x8x8xf32> to vector<4x8x8xbf16>
      %c0_70 = arith.constant 0 : index
      %c0_71 = arith.constant 0 : index
      %c0_72 = arith.constant 0 : index
      %146 = vector.load %arg17[%c0_70, %c0_71, %c0_72] : memref<4x8x8xbf16, #tpu.memory_space<vmem>>, vector<4x8x8xbf16>
      tpu.vector_store %arg17[%c0_70, %c0_71, %c0_72], %145 {strides = array<i32>} : memref<4x8x8xbf16, #tpu.memory_space<vmem>>, vector<4x8x8xbf16>,
      %147 = vector.shape_cast %142 : vector<8x32xf32> to vector<8x4x8xf32>
      %148 = tpu.transpose %147, [1, 0, 2] : vector<8x4x8xf32> -> vector<4x8x8xf32>
      %149 = arith.truncf %148 : vector<4x8x8xf32> to vector<4x8x8xbf16>
      %c0_73 = arith.constant 0 : index
      %c0_74 = arith.constant 0 : index
      %c0_75 = arith.constant 0 : index
      %150 = vector.load %arg18[%c0_73, %c0_74, %c0_75] : memref<4x8x8xbf16, #tpu.memory_space<vmem>>, vector<4x8x8xbf16>
      tpu.vector_store %arg18[%c0_73, %c0_74, %c0_75], %149 {strides = array<i32>} : memref<4x8x8xbf16, #tpu.memory_space<vmem>>, vector<4x8x8xbf16>,
    } else {
    }
    %c8_i32 = arith.constant 8 : i32
    %5 = arith.muli %arg1, %c8_i32 : i32
    %6 = tpu.assume_multiple %5, 8 : i32
    %c0_4 = arith.constant 0 : index
    %7 = arith.index_cast %6 : i32 to index
    %c0_5 = arith.constant 0 : index
    %8 = vector.load %arg2[%c0_4, %7, %c0_5] : memref<1x8x32xf32, #tpu.memory_space<vmem>>, vector<1x8x32xf32>
    %9 = vector.shape_cast %8 : vector<1x8x32xf32> to vector<8x32xf32>
    %cst = arith.constant dense<0.000000e+00> : vector<8xf32>
    %10 = vector.multi_reduction <add>, %9, %cst [1] : vector<8x32xf32> to vector<8xf32>
    %11 = vector.shape_cast %10 : vector<8xf32> to vector<8x1xf32>
    %cst_6 = arith.constant 3.200000e+01 : f32
    %12 = vector.broadcast %cst_6 : f32 to vector<8x1xf32>
    %13 = arith.divf %11, %12 : vector<8x1xf32>
    %14 = vector.broadcast %13 : vector<8x1xf32> to vector<8x32xf32>
    %15 = arith.subf %9, %14 : vector<8x32xf32>
    %16 = arith.mulf %15, %15 : vector<8x32xf32>
    %cst_7 = arith.constant dense<0.000000e+00> : vector<8xf32>
    %17 = vector.multi_reduction <add>, %16, %cst_7 [1] : vector<8x32xf32> to vector<8xf32>
    %18 = vector.shape_cast %17 : vector<8xf32> to vector<8x1xf32>
    %cst_8 = arith.constant 3.200000e+01 : f32
    %19 = vector.broadcast %cst_8 : f32 to vector<8x1xf32>
    %20 = arith.divf %18, %19 : vector<8x1xf32>
    %21 = vector.broadcast %13 : vector<8x1xf32> to vector<8x32xf32>
    %22 = arith.subf %9, %21 : vector<8x32xf32>
    %cst_9 = arith.constant 9.99999974E-6 : f32
    %23 = vector.broadcast %cst_9 : f32 to vector<8x1xf32>
    %24 = arith.addf %20, %23 : vector<8x1xf32>
    %25 = math.rsqrt %24 : vector<8x1xf32>
    %26 = vector.broadcast %25 : vector<8x1xf32> to vector<8x32xf32>
    %27 = arith.mulf %22, %26 : vector<8x32xf32>
    %28 = vector.broadcast %0 : vector<1x32xf32> to vector<8x32xf32>
    %29 = arith.mulf %27, %28 : vector<8x32xf32>
    %30 = vector.broadcast %1 : vector<1x32xf32> to vector<8x32xf32>
    %31 = arith.addf %29, %30 : vector<8x32xf32>
    %32 = arith.truncf %31 : vector<8x32xf32> to vector<8x32xbf16>
    %c0_10 = arith.constant 0 : index
    %c0_11 = arith.constant 0 : index
    %33 = vector.load %arg5[%c0_10, %c0_11] : memref<32x32xbf16, #tpu.memory_space<vmem>>, vector<32x32xbf16>
    %cst_12 = arith.constant dense<0.000000e+00> : vector<8x32xf32>
    %34 = tpu.matmul %32, %33, %cst_12 {dimension_numbers = #tpu.dot_dimension_numbers<[1], [0], [0], [1], [0, 0, 1, 1], [], []>} : vector<8x32xbf16>, vector<32x32xbf16>, vector<8x32xf32> -> vector<8x32xf32>
    %35 = vector.shape_cast %34 : vector<8x32xf32> to vector<8x4x8xf32>
    %36 = tpu.transpose %35, [1, 0, 2] : vector<8x4x8xf32> -> vector<4x8x8xf32>
    %37 = arith.truncf %36 : vector<4x8x8xf32> to vector<4x8x8xbf16>
    %c0_13 = arith.constant 0 : index
    %c0_14 = arith.constant 0 : index
    %c0_15 = arith.constant 0 : index
    %38 = vector.load %arg17[%c0_13, %c0_14, %c0_15] : memref<4x8x8xbf16, #tpu.memory_space<vmem>>, vector<4x8x8xbf16>
    "tpu.trace_start"() <{level = 10 : i32, message = "hqd,hkd->hqk"}> : () -> ()
    %cst_16 = arith.constant dense<0.000000e+00> : vector<4x8x8xf32>
    %39 = tpu.matmul %37, %38, %cst_16 {dimension_numbers = #tpu.dot_dimension_numbers<[2], [2], [1], [1], [0, 0, 0, 1, 1, 1], [0], [0]>} : vector<4x8x8xbf16>, vector<4x8x8xbf16>, vector<4x8x8xf32> -> vector<4x8x8xf32>
    "tpu.trace_stop"() : () -> ()
    %cst_17 = arith.constant dense<0xFF800000> : vector<4x8xf32>
    %40 = vector.multi_reduction <maximumf>, %39, %cst_17 [2] : vector<4x8x8xf32> to vector<4x8xf32>
    %41 = vector.shape_cast %40 : vector<4x8xf32> to vector<4x8x1xf32>
    %42 = vector.broadcast %41 : vector<4x8x1xf32> to vector<4x8x8xf32>
    %43 = arith.subf %39, %42 : vector<4x8x8xf32>
    %44 = math.exp %43 : vector<4x8x8xf32>
    %cst_18 = arith.constant dense<0.000000e+00> : vector<4x8xf32>
    %45 = vector.multi_reduction <add>, %44, %cst_18 [2] : vector<4x8x8xf32> to vector<4x8xf32>
    %46 = vector.shape_cast %45 : vector<4x8xf32> to vector<4x8x1xf32>
    %47 = tpu.reciprocal %46 {approx = true} : vector<4x8x1xf32> -> vector<4x8x1xf32>
    %48 = arith.truncf %44 : vector<4x8x8xf32> to vector<4x8x8xbf16>
    %c0_19 = arith.constant 0 : index
    %c0_20 = arith.constant 0 : index
    %c0_21 = arith.constant 0 : index
    %49 = vector.load %arg18[%c0_19, %c0_20, %c0_21] : memref<4x8x8xbf16, #tpu.memory_space<vmem>>, vector<4x8x8xbf16>
    "tpu.trace_start"() <{level = 10 : i32, message = "hqk,hkd->hqd"}> : () -> ()
    %cst_22 = arith.constant dense<0.000000e+00> : vector<4x8x8xf32>
    %50 = tpu.matmul %48, %49, %cst_22 {dimension_numbers = #tpu.dot_dimension_numbers<[2], [1], [1], [2], [0, 0, 0, 1, 1, 2], [0], [0]>} : vector<4x8x8xbf16>, vector<4x8x8xbf16>, vector<4x8x8xf32> -> vector<4x8x8xf32>
    "tpu.trace_stop"() : () -> ()
    %51 = vector.broadcast %47 : vector<4x8x1xf32> to vector<4x8x8xf32>
    %52 = arith.mulf %50, %51 : vector<4x8x8xf32>
    %53 = arith.truncf %52 : vector<4x8x8xf32> to vector<4x8x8xbf16>
    %c0_23 = arith.constant 0 : index
    %c0_24 = arith.constant 0 : index
    %c0_25 = arith.constant 0 : index
    %54 = vector.load %arg8[%c0_23, %c0_24, %c0_25] : memref<4x8x32xbf16, #tpu.memory_space<vmem>>, vector<4x8x32xbf16>
    "tpu.trace_start"() <{level = 10 : i32, message = "hqd,hdD->hqD"}> : () -> ()
    %cst_26 = arith.constant dense<0.000000e+00> : vector<4x8x32xf32>
    %55 = tpu.matmul %53, %54, %cst_26 {dimension_numbers = #tpu.dot_dimension_numbers<[2], [1], [1], [2], [0, 0, 0, 1, 1, 2], [0], [0]>} : vector<4x8x8xbf16>, vector<4x8x32xbf16>, vector<4x8x32xf32> -> vector<4x8x32xf32>
    "tpu.trace_stop"() : () -> ()
    %cst_27 = arith.constant dense<0.000000e+00> : vector<8x32xf32>
    %56 = vector.multi_reduction <add>, %55, %cst_27 [0] : vector<4x8x32xf32> to vector<8x32xf32>
    %c0_28 = arith.constant 0 : index
    %c0_29 = arith.constant 0 : index
    %57 = vector.load %arg9[%c0_28, %c0_29] : memref<1x32xf32, #tpu.memory_space<vmem>>, vector<1x32xf32>
    %58 = vector.broadcast %57 : vector<1x32xf32> to vector<8x32xf32>
    %59 = arith.addf %56, %58 : vector<8x32xf32>
    %60 = arith.addf %9, %59 : vector<8x32xf32>
    %c0_30 = arith.constant 0 : index
    %c0_31 = arith.constant 0 : index
    %61 = vector.load %arg10[%c0_30, %c0_31] : memref<1x32xf32, #tpu.memory_space<vmem>>, vector<1x32xf32>
    %c0_32 = arith.constant 0 : index
    %c0_33 = arith.constant 0 : index
    %62 = vector.load %arg11[%c0_32, %c0_33] : memref<1x32xf32, #tpu.memory_space<vmem>>, vector<1x32xf32>
    %cst_34 = arith.constant dense<0.000000e+00> : vector<8xf32>
    %63 = vector.multi_reduction <add>, %60, %cst_34 [1] : vector<8x32xf32> to vector<8xf32>
    %64 = vector.shape_cast %63 : vector<8xf32> to vector<8x1xf32>
    %cst_35 = arith.constant 3.200000e+01 : f32
    %65 = vector.broadcast %cst_35 : f32 to vector<8x1xf32>
    %66 = arith.divf %64, %65 : vector<8x1xf32>
    %67 = vector.broadcast %66 : vector<8x1xf32> to vector<8x32xf32>
    %68 = arith.subf %60, %67 : vector<8x32xf32>
    %69 = arith.mulf %68, %68 : vector<8x32xf32>
    %cst_36 = arith.constant dense<0.000000e+00> : vector<8xf32>
    %70 = vector.multi_reduction <add>, %69, %cst_36 [1] : vector<8x32xf32> to vector<8xf32>
    %71 = vector.shape_cast %70 : vector<8xf32> to vector<8x1xf32>
    %cst_37 = arith.constant 3.200000e+01 : f32
    %72 = vector.broadcast %cst_37 : f32 to vector<8x1xf32>
    %73 = arith.divf %71, %72 : vector<8x1xf32>
    %74 = vector.broadcast %66 : vector<8x1xf32> to vector<8x32xf32>
    %75 = arith.subf %60, %74 : vector<8x32xf32>
    %cst_38 = arith.constant 9.99999974E-6 : f32
    %76 = vector.broadcast %cst_38 : f32 to vector<8x1xf32>
    %77 = arith.addf %73, %76 : vector<8x1xf32>
    %78 = math.rsqrt %77 : vector<8x1xf32>
    %79 = vector.broadcast %78 : vector<8x1xf32> to vector<8x32xf32>
    %80 = arith.mulf %75, %79 : vector<8x32xf32>
    %81 = vector.broadcast %61 : vector<1x32xf32> to vector<8x32xf32>
    %82 = arith.mulf %80, %81 : vector<8x32xf32>
    %83 = vector.broadcast %62 : vector<1x32xf32> to vector<8x32xf32>
    %84 = arith.addf %82, %83 : vector<8x32xf32>
    %85 = arith.truncf %84 : vector<8x32xf32> to vector<8x32xbf16>
    %c0_39 = arith.constant 0 : index
    %c0_40 = arith.constant 0 : index
    %86 = vector.load %arg12[%c0_39, %c0_40] : memref<32x64xbf16, #tpu.memory_space<vmem>>, vector<32x64xbf16>
    %cst_41 = arith.constant dense<0.000000e+00> : vector<8x64xf32>
    %87 = tpu.matmul %85, %86, %cst_41 {dimension_numbers = #tpu.dot_dimension_numbers<[1], [0], [0], [1], [0, 0, 1, 1], [], []>} : vector<8x32xbf16>, vector<32x64xbf16>, vector<8x64xf32> -> vector<8x64xf32>
    %c0_42 = arith.constant 0 : index
    %c0_43 = arith.constant 0 : index
    %88 = vector.load %arg13[%c0_42, %c0_43] : memref<1x64xf32, #tpu.memory_space<vmem>>, vector<1x64xf32>
    %89 = vector.broadcast %88 : vector<1x64xf32> to vector<8x64xf32>
    %90 = arith.addf %87, %89 : vector<8x64xf32>
    %91 = arith.mulf %90, %90 : vector<8x64xf32>
    %92 = arith.mulf %91, %90 : vector<8x64xf32>
    %cst_44 = arith.constant 5.000000e-01 : f32
    %93 = vector.broadcast %cst_44 : f32 to vector<8x64xf32>
    %94 = arith.mulf %93, %90 : vector<8x64xf32>
    %cst_45 = arith.constant 4.471500e-02 : f32
    %95 = vector.broadcast %cst_45 : f32 to vector<8x64xf32>
    %96 = arith.mulf %95, %92 : vector<8x64xf32>
    %97 = arith.addf %90, %96 : vector<8x64xf32>
    %cst_46 = arith.constant 0.797884583 : f32
    %98 = vector.broadcast %cst_46 : f32 to vector<8x64xf32>
    %99 = arith.mulf %98, %97 : vector<8x64xf32>
    %100 = math.tanh %99 : vector<8x64xf32>
    %cst_47 = arith.constant 1.000000e+00 : f32
    %101 = vector.broadcast %cst_47 : f32 to vector<8x64xf32>
    %102 = arith.addf %101, %100 : vector<8x64xf32>
    %103 = arith.mulf %94, %102 : vector<8x64xf32>
    %104 = arith.truncf %103 : vector<8x64xf32> to vector<8x64xbf16>
    %c0_48 = arith.constant 0 : index
    %c0_49 = arith.constant 0 : index
    %105 = vector.load %arg14[%c0_48, %c0_49] : memref<64x32xbf16, #tpu.memory_space<vmem>>, vector<64x32xbf16>
    %cst_50 = arith.constant dense<0.000000e+00> : vector<8x32xf32>
    %106 = tpu.matmul %104, %105, %cst_50 {dimension_numbers = #tpu.dot_dimension_numbers<[1], [0], [0], [1], [0, 0, 1, 1], [], []>} : vector<8x64xbf16>, vector<64x32xbf16>, vector<8x32xf32> -> vector<8x32xf32>
    %c0_51 = arith.constant 0 : index
    %c0_52 = arith.constant 0 : index
    %107 = vector.load %arg15[%c0_51, %c0_52] : memref<1x32xf32, #tpu.memory_space<vmem>>, vector<1x32xf32>
    %108 = vector.broadcast %107 : vector<1x32xf32> to vector<8x32xf32>
    %109 = arith.addf %106, %108 : vector<8x32xf32>
    %110 = arith.addf %60, %109 : vector<8x32xf32>
    %c0_53 = arith.constant 0 : index
    %c0_54 = arith.constant 0 : index
    %c0_55 = arith.constant 0 : index
    %111 = vector.load %arg16[%c0_53, %c0_54, %c0_55] : memref<1x8x32xf32, #tpu.memory_space<vmem>>, vector<1x8x32xf32>
    %112 = vector.shape_cast %111 : vector<1x8x32xf32> to vector<8x32xf32>
    %113 = vector.shape_cast %110 : vector<8x32xf32> to vector<1x8x32xf32>
    tpu.vector_store %arg16[%c0_53, %c0_54, %c0_55], %113 {strides = array<i32>} : memref<1x8x32xf32, #tpu.memory_space<vmem>>, vector<1x8x32xf32>,
    return
  }
  func.func @transform_0(%arg0: i32, %arg1: i32) -> (i32, i32, i32) {
    %c0_i32 = arith.constant 0 : i32
    %c0_i32_0 = arith.constant 0 : i32
    %c0_i32_1 = arith.constant 0 : i32
    return %arg0, %c0_i32, %c0_i32_0 : i32, i32, i32
  }
  func.func @transform_1(%arg0: i32, %arg1: i32) -> (i32, i32) {
    %c0_i32 = arith.constant 0 : i32
    %c0_i32_0 = arith.constant 0 : i32
    %c0_i32_1 = arith.constant 0 : i32
    return %c0_i32, %c0_i32_0 : i32, i32
  }
  func.func @transform_2(%arg0: i32, %arg1: i32) -> (i32, i32) {
    %c0_i32 = arith.constant 0 : i32
    %c0_i32_0 = arith.constant 0 : i32
    %c0_i32_1 = arith.constant 0 : i32
    return %c0_i32, %c0_i32_0 : i32, i32
  }
  func.func @transform_3(%arg0: i32, %arg1: i32) -> (i32, i32) {
    %c0_i32 = arith.constant 0 : i32
    %c0_i32_0 = arith.constant 0 : i32
    %c0_i32_1 = arith.constant 0 : i32
    return %c0_i32, %c0_i32_0 : i32, i32
  }
  func.func @transform_4(%arg0: i32, %arg1: i32) -> (i32, i32) {
    %c0_i32 = arith.constant 0 : i32
    %c0_i32_0 = arith.constant 0 : i32
    %c0_i32_1 = arith.constant 0 : i32
    return %c0_i32, %c0_i32_0 : i32, i32
  }
  func.func @transform_5(%arg0: i32, %arg1: i32) -> (i32, i32) {
    %c0_i32 = arith.constant 0 : i32
    %c0_i32_0 = arith.constant 0 : i32
    %c0_i32_1 = arith.constant 0 : i32
    return %c0_i32, %c0_i32_0 : i32, i32
  }
  func.func @transform_6(%arg0: i32, %arg1: i32) -> (i32, i32, i32) {
    %c0_i32 = arith.constant 0 : i32
    %c0_i32_0 = arith.constant 0 : i32
    %c0_i32_1 = arith.constant 0 : i32
    %c0_i32_2 = arith.constant 0 : i32
    return %c0_i32, %c0_i32_0, %c0_i32_1 : i32, i32, i32
  }
  func.func @transform_7(%arg0: i32, %arg1: i32) -> (i32, i32) {
    %c0_i32 = arith.constant 0 : i32
    %c0_i32_0 = arith.constant 0 : i32
    %c0_i32_1 = arith.constant 0 : i32
    return %c0_i32, %c0_i32_0 : i32, i32
  }
  func.func @transform_8(%arg0: i32, %arg1: i32) -> (i32, i32) {
    %c0_i32 = arith.constant 0 : i32
    %c0_i32_0 = arith.constant 0 : i32
    %c0_i32_1 = arith.constant 0 : i32
    return %c0_i32, %c0_i32_0 : i32, i32
  }
  func.func @transform_9(%arg0: i32, %arg1: i32) -> (i32, i32) {
    %c0_i32 = arith.constant 0 : i32
    %c0_i32_0 = arith.constant 0 : i32
    %c0_i32_1 = arith.constant 0 : i32
    return %c0_i32, %c0_i32_0 : i32, i32
  }
  func.func @transform_10(%arg0: i32, %arg1: i32) -> (i32, i32) {
    %c0_i32 = arith.constant 0 : i32
    %c0_i32_0 = arith.constant 0 : i32
    %c0_i32_1 = arith.constant 0 : i32
    return %c0_i32, %c0_i32_0 : i32, i32
  }
  func.func @transform_11(%arg0: i32, %arg1: i32) -> (i32, i32) {
    %c0_i32 = arith.constant 0 : i32
    %c0_i32_0 = arith.constant 0 : i32
    %c0_i32_1 = arith.constant 0 : i32
    return %c0_i32, %c0_i32_0 : i32, i32
  }
  func.func @transform_12(%arg0: i32, %arg1: i32) -> (i32, i32) {
    %c0_i32 = arith.constant 0 : i32
    %c0_i32_0 = arith.constant 0 : i32
    %c0_i32_1 = arith.constant 0 : i32
    return %c0_i32, %c0_i32_0 : i32, i32
  }
  func.func @transform_13(%arg0: i32, %arg1: i32) -> (i32, i32) {
    %c0_i32 = arith.constant 0 : i32
    %c0_i32_0 = arith.constant 0 : i32
    %c0_i32_1 = arith.constant 0 : i32
    return %c0_i32, %c0_i32_0 : i32, i32
  }
  func.func @transform_14(%arg0: i32, %arg1: i32) -> (i32, i32, i32) {
    %c0_i32 = arith.constant 0 : i32
    %c0_i32_0 = arith.constant 0 : i32
    return %arg0, %arg1, %c0_i32 : i32, i32, i32
  }
}

module attributes {stable_mosaic.version = 11 : i64} {
  func.func @_layer_kernel(%arg0: i32, %arg1: i32, %arg2: memref<1x8x32xf32, #tpu.memory_space<vmem>>, %arg3: memref<1x32xf32, #tpu.memory_space<vmem>>, %arg4: memref<1x32xf32, #tpu.memory_space<vmem>>, %arg5: memref<32x32xbf16, #tpu.memory_space<vmem>>, %arg6: memref<32x32xbf16, #tpu.memory_space<vmem>>, %arg7: memref<32x32xbf16, #tpu.memory_space<vmem>>, %arg8: memref<4x8x32xbf16, #tpu.memory_space<vmem>>, %arg9: memref<1x32xf32, #tpu.memory_space<vmem>>, %arg10: memref<1x32xf32, #tpu.memory_space<vmem>>, %arg11: memref<1x32xf32, #tpu.memory_space<vmem>>, %arg12: memref<32x64xbf16, #tpu.memory_space<vmem>>, %arg13: memref<1x64xf32, #tpu.memory_space<vmem>>, %arg14: memref<64x32xbf16, #tpu.memory_space<vmem>>, %arg15: memref<1x32xf32, #tpu.memory_space<vmem>>, %arg16: memref<1x8x32xf32, #tpu.memory_space<vmem>>, %arg17: memref<4x8x8xbf16, #tpu.memory_space<vmem>>, %arg18: memref<4x8x8xbf16, #tpu.memory_space<vmem>>) attributes {dimension_semantics = [#tpu.dimension_semantics<parallel>, #tpu.dimension_semantics<arbitrary>], iteration_bounds = array<i64: 2, 1>, scalar_prefetch = 0 : i64, scratch_operands = 2 : i64, tpu.core_type = #tpu.core_type<tc>, window_params = [{transform_indices = @transform_0, window_bounds = array<i64: 1, 8, 32>}, {pipeline_mode = #tpu.pipeline_mode<synchronous>, transform_indices = @transform_1, window_bounds = array<i64: 1, 32>}, {pipeline_mode = #tpu.pipeline_mode<synchronous>, transform_indices = @transform_2, window_bounds = array<i64: 1, 32>}, {pipeline_mode = #tpu.pipeline_mode<synchronous>, transform_indices = @transform_3, window_bounds = array<i64: 32, 32>}, {pipeline_mode = #tpu.pipeline_mode<synchronous>, transform_indices = @transform_4, window_bounds = array<i64: 32, 32>}, {pipeline_mode = #tpu.pipeline_mode<synchronous>, transform_indices = @transform_5, window_bounds = array<i64: 32, 32>}, {pipeline_mode = #tpu.pipeline_mode<synchronous>, transform_indices = @transform_6, window_bounds = array<i64: 4, 8, 32>}, {pipeline_mode = #tpu.pipeline_mode<synchronous>, transform_indices = @transform_7, window_bounds = array<i64: 1, 32>}, {pipeline_mode = #tpu.pipeline_mode<synchronous>, transform_indices = @transform_8, window_bounds = array<i64: 1, 32>}, {pipeline_mode = #tpu.pipeline_mode<synchronous>, transform_indices = @transform_9, window_bounds = array<i64: 1, 32>}, {pipeline_mode = #tpu.pipeline_mode<synchronous>, transform_indices = @transform_10, window_bounds = array<i64: 32, 64>}, {pipeline_mode = #tpu.pipeline_mode<synchronous>, transform_indices = @transform_11, window_bounds = array<i64: 1, 64>}, {pipeline_mode = #tpu.pipeline_mode<synchronous>, transform_indices = @transform_12, window_bounds = array<i64: 64, 32>}, {pipeline_mode = #tpu.pipeline_mode<synchronous>, transform_indices = @transform_13, window_bounds = array<i64: 1, 32>}, {transform_indices = @transform_14, window_bounds = array<i64: 1, 8, 32>}]} {
    %c0 = arith.constant 0 : index
    %c0_0 = arith.constant 0 : index
    %0 = vector.load %arg3[%c0, %c0_0] : memref<1x32xf32, #tpu.memory_space<vmem>>, vector<1x32xf32>
    %c0_1 = arith.constant 0 : index
    %c0_2 = arith.constant 0 : index
    %1 = vector.load %arg4[%c0_1, %c0_2] : memref<1x32xf32, #tpu.memory_space<vmem>>, vector<1x32xf32>
    %c0_i32 = arith.constant 0 : i32
    %2 = arith.cmpi eq, %arg1, %c0_i32 : i32
    %3 = arith.extui %2 : i1 to i32
    %c0_i32_3 = arith.constant 0 : i32
    %4 = arith.cmpi ne, %3, %c0_i32_3 : i32
    scf.if %4 {
      %c0_56 = arith.constant 0 : index
      %c0_57 = arith.constant 0 : index
      %c0_58 = arith.constant 0 : index
      %114 = vector.load %arg2[%c0_56, %c0_57, %c0_58] : memref<1x8x32xf32, #tpu.memory_space<vmem>>, vector<1x8x32xf32>
      %115 = vector.shape_cast %114 : vector<1x8x32xf32> to vector<8x32xf32>
      %cst_59 = arith.constant dense<0.000000e+00> : vector<8xf32>
      %116 = vector.multi_reduction <add>, %115, %cst_59 [1] : vector<8x32xf32> to vector<8xf32>
      %117 = vector.shape_cast %116 : vector<8xf32> to vector<8x1xf32>
      %cst_60 = arith.constant 3.200000e+01 : f32
      %118 = vector.broadcast %cst_60 : f32 to vector<8x1xf32>
      %119 = arith.divf %117, %118 : vector<8x1xf32>
      %120 = vector.broadcast %119 : vector<8x1xf32> to vector<8x32xf32>
      %121 = arith.subf %115, %120 : vector<8x32xf32>
      %122 = arith.mulf %121, %121 : vector<8x32xf32>
      %cst_61 = arith.constant dense<0.000000e+00> : vector<8xf32>
      %123 = vector.multi_reduction <add>, %122, %cst_61 [1] : vector<8x32xf32> to vector<8xf32>
      %124 = vector.shape_cast %123 : vector<8xf32> to vector<8x1xf32>
      %cst_62 = arith.constant 3.200000e+01 : f32
      %125 = vector.broadcast %cst_62 : f32 to vector<8x1xf32>
      %126 = arith.divf %124, %125 : vector<8x1xf32>
      %127 = vector.broadcast %119 : vector<8x1xf32> to vector<8x32xf32>
      %128 = arith.subf %115, %127 : vector<8x32xf32>
      %cst_63 = arith.constant 9.99999974E-6 : f32
      %129 = vector.broadcast %cst_63 : f32 to vector<8x1xf32>
      %130 = arith.addf %126, %129 : vector<8x1xf32>
      %131 = math.rsqrt %130 : vector<8x1xf32>
      %132 = vector.broadcast %131 : vector<8x1xf32> to vector<8x32xf32>
      %133 = arith.mulf %128, %132 : vector<8x32xf32>
      %134 = vector.broadcast %0 : vector<1x32xf32> to vector<8x32xf32>
      %135 = arith.mulf %133, %134 : vector<8x32xf32>
      %136 = vector.broadcast %1 : vector<1x32xf32> to vector<8x32xf32>
      %137 = arith.addf %135, %136 : vector<8x32xf32>
      %138 = arith.truncf %137 : vector<8x32xf32> to vector<8x32xbf16>
      %c0_64 = arith.constant 0 : index
      %c0_65 = arith.constant 0 : index
      %139 = vector.load %arg6[%c0_64, %c0_65] : memref<32x32xbf16, #tpu.memory_space<vmem>>, vector<32x32xbf16>
      %cst_66 = arith.constant dense<0.000000e+00> : vector<8x32xf32>
      %140 = tpu.matmul %138, %139, %cst_66 {dimension_numbers = #tpu.dot_dimension_numbers<[1], [0], [0], [1], [0, 0, 1, 1], [], []>} : vector<8x32xbf16>, vector<32x32xbf16>, vector<8x32xf32> -> vector<8x32xf32>
      %c0_67 = arith.constant 0 : index
      %c0_68 = arith.constant 0 : index
      %141 = vector.load %arg7[%c0_67, %c0_68] : memref<32x32xbf16, #tpu.memory_space<vmem>>, vector<32x32xbf16>
      %cst_69 = arith.constant dense<0.000000e+00> : vector<8x32xf32>
      %142 = tpu.matmul %138, %141, %cst_69 {dimension_numbers = #tpu.dot_dimension_numbers<[1], [0], [0], [1], [0, 0, 1, 1], [], []>} : vector<8x32xbf16>, vector<32x32xbf16>, vector<8x32xf32> -> vector<8x32xf32>
      %143 = vector.shape_cast %140 : vector<8x32xf32> to vector<8x4x8xf32>
      %144 = tpu.transpose %143, [1, 0, 2] : vector<8x4x8xf32> -> vector<4x8x8xf32>
      %145 = arith.truncf %144 : vector<4x8x8xf32> to vector<4x8x8xbf16>
      %c0_70 = arith.constant 0 : index
      %c0_71 = arith.constant 0 : index
      %c0_72 = arith.constant 0 : index
      %146 = vector.load %arg17[%c0_70, %c0_71, %c0_72] : memref<4x8x8xbf16, #tpu.memory_space<vmem>>, vector<4x8x8xbf16>
      tpu.vector_store %arg17[%c0_70, %c0_71, %c0_72], %145 {strides = array<i32>} : memref<4x8x8xbf16, #tpu.memory_space<vmem>>, vector<4x8x8xbf16>,
      %147 = vector.shape_cast %142 : vector<8x32xf32> to vector<8x4x8xf32>
      %148 = tpu.transpose %147, [1, 0, 2] : vector<8x4x8xf32> -> vector<4x8x8xf32>
      %149 = arith.truncf %148 : vector<4x8x8xf32> to vector<4x8x8xbf16>
      %c0_73 = arith.constant 0 : index
      %c0_74 = arith.constant 0 : index
      %c0_75 = arith.constant 0 : index
      %150 = vector.load %arg18[%c0_73, %c0_74, %c0_75] : memref<4x8x8xbf16, #tpu.memory_space<vmem>>, vector<4x8x8xbf16>
      tpu.vector_store %arg18[%c0_73, %c0_74, %c0_75], %149 {strides = array<i32>} : memref<4x8x8xbf16, #tpu.memory_space<vmem>>, vector<4x8x8xbf16>,
    } else {
    }
    %c8_i32 = arith.constant 8 : i32
    %5 = arith.muli %arg1, %c8_i32 : i32
    %6 = tpu.assume_multiple %5, 8 : i32
    %c0_4 = arith.constant 0 : index
    %7 = arith.index_cast %6 : i32 to index
    %c0_5 = arith.constant 0 : index
    %8 = vector.load %arg2[%c0_4, %7, %c0_5] : memref<1x8x32xf32, #tpu.memory_space<vmem>>, vector<1x8x32xf32>
    %9 = vector.shape_cast %8 : vector<1x8x32xf32> to vector<8x32xf32>
    %cst = arith.constant dense<0.000000e+00> : vector<8xf32>
    %10 = vector.multi_reduction <add>, %9, %cst [1] : vector<8x32xf32> to vector<8xf32>
    %11 = vector.shape_cast %10 : vector<8xf32> to vector<8x1xf32>
    %cst_6 = arith.constant 3.200000e+01 : f32
    %12 = vector.broadcast %cst_6 : f32 to vector<8x1xf32>
    %13 = arith.divf %11, %12 : vector<8x1xf32>
    %14 = vector.broadcast %13 : vector<8x1xf32> to vector<8x32xf32>
    %15 = arith.subf %9, %14 : vector<8x32xf32>
    %16 = arith.mulf %15, %15 : vector<8x32xf32>
    %cst_7 = arith.constant dense<0.000000e+00> : vector<8xf32>
    %17 = vector.multi_reduction <add>, %16, %cst_7 [1] : vector<8x32xf32> to vector<8xf32>
    %18 = vector.shape_cast %17 : vector<8xf32> to vector<8x1xf32>
    %cst_8 = arith.constant 3.200000e+01 : f32
    %19 = vector.broadcast %cst_8 : f32 to vector<8x1xf32>
    %20 = arith.divf %18, %19 : vector<8x1xf32>
    %21 = vector.broadcast %13 : vector<8x1xf32> to vector<8x32xf32>
    %22 = arith.subf %9, %21 : vector<8x32xf32>
    %cst_9 = arith.constant 9.99999974E-6 : f32
    %23 = vector.broadcast %cst_9 : f32 to vector<8x1xf32>
    %24 = arith.addf %20, %23 : vector<8x1xf32>
    %25 = math.rsqrt %24 : vector<8x1xf32>
    %26 = vector.broadcast %25 : vector<8x1xf32> to vector<8x32xf32>
    %27 = arith.mulf %22, %26 : vector<8x32xf32>
    %28 = vector.broadcast %0 : vector<1x32xf32> to vector<8x32xf32>
    %29 = arith.mulf %27, %28 : vector<8x32xf32>
    %30 = vector.broadcast %1 : vector<1x32xf32> to vector<8x32xf32>
    %31 = arith.addf %29, %30 : vector<8x32xf32>
    %32 = arith.truncf %31 : vector<8x32xf32> to vector<8x32xbf16>
    %c0_10 = arith.constant 0 : index
    %c0_11 = arith.constant 0 : index
    %33 = vector.load %arg5[%c0_10, %c0_11] : memref<32x32xbf16, #tpu.memory_space<vmem>>, vector<32x32xbf16>
    %cst_12 = arith.constant dense<0.000000e+00> : vector<8x32xf32>
    %34 = tpu.matmul %32, %33, %cst_12 {dimension_numbers = #tpu.dot_dimension_numbers<[1], [0], [0], [1], [0, 0, 1, 1], [], []>} : vector<8x32xbf16>, vector<32x32xbf16>, vector<8x32xf32> -> vector<8x32xf32>
    %35 = vector.shape_cast %34 : vector<8x32xf32> to vector<8x4x8xf32>
    %36 = tpu.transpose %35, [1, 0, 2] : vector<8x4x8xf32> -> vector<4x8x8xf32>
    %37 = arith.truncf %36 : vector<4x8x8xf32> to vector<4x8x8xbf16>
    %c0_13 = arith.constant 0 : index
    %c0_14 = arith.constant 0 : index
    %c0_15 = arith.constant 0 : index
    %38 = vector.load %arg17[%c0_13, %c0_14, %c0_15] : memref<4x8x8xbf16, #tpu.memory_space<vmem>>, vector<4x8x8xbf16>
    "tpu.trace_start"() <{level = 10 : i32, message = "hqd,hkd->hqk"}> : () -> ()
    %cst_16 = arith.constant dense<0.000000e+00> : vector<4x8x8xf32>
    %39 = tpu.matmul %37, %38, %cst_16 {dimension_numbers = #tpu.dot_dimension_numbers<[2], [2], [1], [1], [0, 0, 0, 1, 1, 1], [0], [0]>} : vector<4x8x8xbf16>, vector<4x8x8xbf16>, vector<4x8x8xf32> -> vector<4x8x8xf32>
    "tpu.trace_stop"() : () -> ()
    %cst_17 = arith.constant dense<0xFF800000> : vector<4x8xf32>
    %40 = vector.multi_reduction <maximumf>, %39, %cst_17 [2] : vector<4x8x8xf32> to vector<4x8xf32>
    %41 = vector.shape_cast %40 : vector<4x8xf32> to vector<4x8x1xf32>
    %42 = vector.broadcast %41 : vector<4x8x1xf32> to vector<4x8x8xf32>
    %43 = arith.subf %39, %42 : vector<4x8x8xf32>
    %44 = math.exp %43 : vector<4x8x8xf32>
    %cst_18 = arith.constant dense<0.000000e+00> : vector<4x8xf32>
    %45 = vector.multi_reduction <add>, %44, %cst_18 [2] : vector<4x8x8xf32> to vector<4x8xf32>
    %46 = vector.shape_cast %45 : vector<4x8xf32> to vector<4x8x1xf32>
    %47 = tpu.reciprocal %46 {approx = true} : vector<4x8x1xf32> -> vector<4x8x1xf32>
    %48 = arith.truncf %44 : vector<4x8x8xf32> to vector<4x8x8xbf16>
    %c0_19 = arith.constant 0 : index
    %c0_20 = arith.constant 0 : index
    %c0_21 = arith.constant 0 : index
    %49 = vector.load %arg18[%c0_19, %c0_20, %c0_21] : memref<4x8x8xbf16, #tpu.memory_space<vmem>>, vector<4x8x8xbf16>
    "tpu.trace_start"() <{level = 10 : i32, message = "hqk,hkd->hqd"}> : () -> ()
    %cst_22 = arith.constant dense<0.000000e+00> : vector<4x8x8xf32>
    %50 = tpu.matmul %48, %49, %cst_22 {dimension_numbers = #tpu.dot_dimension_numbers<[2], [1], [1], [2], [0, 0, 0, 1, 1, 2], [0], [0]>} : vector<4x8x8xbf16>, vector<4x8x8xbf16>, vector<4x8x8xf32> -> vector<4x8x8xf32>
    "tpu.trace_stop"() : () -> ()
    %51 = vector.broadcast %47 : vector<4x8x1xf32> to vector<4x8x8xf32>
    %52 = arith.mulf %50, %51 : vector<4x8x8xf32>
    %53 = arith.truncf %52 : vector<4x8x8xf32> to vector<4x8x8xbf16>
    %c0_23 = arith.constant 0 : index
    %c0_24 = arith.constant 0 : index
    %c0_25 = arith.constant 0 : index
    %54 = vector.load %arg8[%c0_23, %c0_24, %c0_25] : memref<4x8x32xbf16, #tpu.memory_space<vmem>>, vector<4x8x32xbf16>
    "tpu.trace_start"() <{level = 10 : i32, message = "hqd,hdD->hqD"}> : () -> ()
    %cst_26 = arith.constant dense<0.000000e+00> : vector<4x8x32xf32>
    %55 = tpu.matmul %53, %54, %cst_26 {dimension_numbers = #tpu.dot_dimension_numbers<[2], [1], [1], [2], [0, 0, 0, 1, 1, 2], [0], [0]>} : vector<4x8x8xbf16>, vector<4x8x32xbf16>, vector<4x8x32xf32> -> vector<4x8x32xf32>
    "tpu.trace_stop"() : () -> ()
    %cst_27 = arith.constant dense<0.000000e+00> : vector<8x32xf32>
    %56 = vector.multi_reduction <add>, %55, %cst_27 [0] : vector<4x8x32xf32> to vector<8x32xf32>
    %c0_28 = arith.constant 0 : index
    %c0_29 = arith.constant 0 : index
    %57 = vector.load %arg9[%c0_28, %c0_29] : memref<1x32xf32, #tpu.memory_space<vmem>>, vector<1x32xf32>
    %58 = vector.broadcast %57 : vector<1x32xf32> to vector<8x32xf32>
    %59 = arith.addf %56, %58 : vector<8x32xf32>
    %60 = arith.addf %9, %59 : vector<8x32xf32>
    %c0_30 = arith.constant 0 : index
    %c0_31 = arith.constant 0 : index
    %61 = vector.load %arg10[%c0_30, %c0_31] : memref<1x32xf32, #tpu.memory_space<vmem>>, vector<1x32xf32>
    %c0_32 = arith.constant 0 : index
    %c0_33 = arith.constant 0 : index
    %62 = vector.load %arg11[%c0_32, %c0_33] : memref<1x32xf32, #tpu.memory_space<vmem>>, vector<1x32xf32>
    %cst_34 = arith.constant dense<0.000000e+00> : vector<8xf32>
    %63 = vector.multi_reduction <add>, %60, %cst_34 [1] : vector<8x32xf32> to vector<8xf32>
    %64 = vector.shape_cast %63 : vector<8xf32> to vector<8x1xf32>
    %cst_35 = arith.constant 3.200000e+01 : f32
    %65 = vector.broadcast %cst_35 : f32 to vector<8x1xf32>
    %66 = arith.divf %64, %65 : vector<8x1xf32>
    %67 = vector.broadcast %66 : vector<8x1xf32> to vector<8x32xf32>
    %68 = arith.subf %60, %67 : vector<8x32xf32>
    %69 = arith.mulf %68, %68 : vector<8x32xf32>
    %cst_36 = arith.constant dense<0.000000e+00> : vector<8xf32>
    %70 = vector.multi_reduction <add>, %69, %cst_36 [1] : vector<8x32xf32> to vector<8xf32>
    %71 = vector.shape_cast %70 : vector<8xf32> to vector<8x1xf32>
    %cst_37 = arith.constant 3.200000e+01 : f32
    %72 = vector.broadcast %cst_37 : f32 to vector<8x1xf32>
    %73 = arith.divf %71, %72 : vector<8x1xf32>
    %74 = vector.broadcast %66 : vector<8x1xf32> to vector<8x32xf32>
    %75 = arith.subf %60, %74 : vector<8x32xf32>
    %cst_38 = arith.constant 9.99999974E-6 : f32
    %76 = vector.broadcast %cst_38 : f32 to vector<8x1xf32>
    %77 = arith.addf %73, %76 : vector<8x1xf32>
    %78 = math.rsqrt %77 : vector<8x1xf32>
    %79 = vector.broadcast %78 : vector<8x1xf32> to vector<8x32xf32>
    %80 = arith.mulf %75, %79 : vector<8x32xf32>
    %81 = vector.broadcast %61 : vector<1x32xf32> to vector<8x32xf32>
    %82 = arith.mulf %80, %81 : vector<8x32xf32>
    %83 = vector.broadcast %62 : vector<1x32xf32> to vector<8x32xf32>
    %84 = arith.addf %82, %83 : vector<8x32xf32>
    %85 = arith.truncf %84 : vector<8x32xf32> to vector<8x32xbf16>
    %c0_39 = arith.constant 0 : index
    %c0_40 = arith.constant 0 : index
    %86 = vector.load %arg12[%c0_39, %c0_40] : memref<32x64xbf16, #tpu.memory_space<vmem>>, vector<32x64xbf16>
    %cst_41 = arith.constant dense<0.000000e+00> : vector<8x64xf32>
    %87 = tpu.matmul %85, %86, %cst_41 {dimension_numbers = #tpu.dot_dimension_numbers<[1], [0], [0], [1], [0, 0, 1, 1], [], []>} : vector<8x32xbf16>, vector<32x64xbf16>, vector<8x64xf32> -> vector<8x64xf32>
    %c0_42 = arith.constant 0 : index
    %c0_43 = arith.constant 0 : index
    %88 = vector.load %arg13[%c0_42, %c0_43] : memref<1x64xf32, #tpu.memory_space<vmem>>, vector<1x64xf32>
    %89 = vector.broadcast %88 : vector<1x64xf32> to vector<8x64xf32>
    %90 = arith.addf %87, %89 : vector<8x64xf32>
    %91 = arith.mulf %90, %90 : vector<8x64xf32>
    %92 = arith.mulf %91, %90 : vector<8x64xf32>
    %cst_44 = arith.constant 5.000000e-01 : f32
    %93 = vector.broadcast %cst_44 : f32 to vector<8x64xf32>
    %94 = arith.mulf %93, %90 : vector<8x64xf32>
    %cst_45 = arith.constant 4.471500e-02 : f32
    %95 = vector.broadcast %cst_45 : f32 to vector<8x64xf32>
    %96 = arith.mulf %95, %92 : vector<8x64xf32>
    %97 = arith.addf %90, %96 : vector<8x64xf32>
    %cst_46 = arith.constant 0.797884583 : f32
    %98 = vector.broadcast %cst_46 : f32 to vector<8x64xf32>
    %99 = arith.mulf %98, %97 : vector<8x64xf32>
    %100 = math.tanh %99 : vector<8x64xf32>
    %cst_47 = arith.constant 1.000000e+00 : f32
    %101 = vector.broadcast %cst_47 : f32 to vector<8x64xf32>
    %102 = arith.addf %101, %100 : vector<8x64xf32>
    %103 = arith.mulf %94, %102 : vector<8x64xf32>
    %104 = arith.truncf %103 : vector<8x64xf32> to vector<8x64xbf16>
    %c0_48 = arith.constant 0 : index
    %c0_49 = arith.constant 0 : index
    %105 = vector.load %arg14[%c0_48, %c0_49] : memref<64x32xbf16, #tpu.memory_space<vmem>>, vector<64x32xbf16>
    %cst_50 = arith.constant dense<0.000000e+00> : vector<8x32xf32>
    %106 = tpu.matmul %104, %105, %cst_50 {dimension_numbers = #tpu.dot_dimension_numbers<[1], [0], [0], [1], [0, 0, 1, 1], [], []>} : vector<8x64xbf16>, vector<64x32xbf16>, vector<8x32xf32> -> vector<8x32xf32>
    %c0_51 = arith.constant 0 : index
    %c0_52 = arith.constant 0 : index
    %107 = vector.load %arg15[%c0_51, %c0_52] : memref<1x32xf32, #tpu.memory_space<vmem>>, vector<1x32xf32>
    %108 = vector.broadcast %107 : vector<1x32xf32> to vector<8x32xf32>
    %109 = arith.addf %106, %108 : vector<8x32xf32>
    %110 = arith.addf %60, %109 : vector<8x32xf32>
    %c0_53 = arith.constant 0 : index
    %c0_54 = arith.constant 0 : index
    %c0_55 = arith.constant 0 : index
    %111 = vector.load %arg16[%c0_53, %c0_54, %c0_55] : memref<1x8x32xf32, #tpu.memory_space<vmem>>, vector<1x8x32xf32>
    %112 = vector.shape_cast %111 : vector<1x8x32xf32> to vector<8x32xf32>
    %113 = vector.shape_cast %110 : vector<8x32xf32> to vector<1x8x32xf32>
    tpu.vector_store %arg16[%c0_53, %c0_54, %c0_55], %113 {strides = array<i32>} : memref<1x8x32xf32, #tpu.memory_space<vmem>>, vector<1x8x32xf32>,
    return
  }
  func.func @transform_0(%arg0: i32, %arg1: i32) -> (i32, i32, i32) {
    %c0_i32 = arith.constant 0 : i32
    %c0_i32_0 = arith.constant 0 : i32
    %c0_i32_1 = arith.constant 0 : i32
    return %arg0, %c0_i32, %c0_i32_0 : i32, i32, i32
  }
  func.func @transform_1(%arg0: i32, %arg1: i32) -> (i32, i32) {
    %c0_i32 = arith.constant 0 : i32
    %c0_i32_0 = arith.constant 0 : i32
    %c0_i32_1 = arith.constant 0 : i32
    return %c0_i32, %c0_i32_0 : i32, i32
  }
  func.func @transform_2(%arg0: i32, %arg1: i32) -> (i32, i32) {
    %c0_i32 = arith.constant 0 : i32
    %c0_i32_0 = arith.constant 0 : i32
    %c0_i32_1 = arith.constant 0 : i32
    return %c0_i32, %c0_i32_0 : i32, i32
  }
  func.func @transform_3(%arg0: i32, %arg1: i32) -> (i32, i32) {
    %c0_i32 = arith.constant 0 : i32
    %c0_i32_0 = arith.constant 0 : i32
    %c0_i32_1 = arith.constant 0 : i32
    return %c0_i32, %c0_i32_0 : i32, i32
  }
  func.func @transform_4(%arg0: i32, %arg1: i32) -> (i32, i32) {
    %c0_i32 = arith.constant 0 : i32
    %c0_i32_0 = arith.constant 0 : i32
    %c0_i32_1 = arith.constant 0 : i32
    return %c0_i32, %c0_i32_0 : i32, i32
  }
  func.func @transform_5(%arg0: i32, %arg1: i32) -> (i32, i32) {
    %c0_i32 = arith.constant 0 : i32
    %c0_i32_0 = arith.constant 0 : i32
    %c0_i32_1 = arith.constant 0 : i32
    return %c0_i32, %c0_i32_0 : i32, i32
  }
  func.func @transform_6(%arg0: i32, %arg1: i32) -> (i32, i32, i32) {
    %c0_i32 = arith.constant 0 : i32
    %c0_i32_0 = arith.constant 0 : i32
    %c0_i32_1 = arith.constant 0 : i32
    %c0_i32_2 = arith.constant 0 : i32
    return %c0_i32, %c0_i32_0, %c0_i32_1 : i32, i32, i32
  }
  func.func @transform_7(%arg0: i32, %arg1: i32) -> (i32, i32) {
    %c0_i32 = arith.constant 0 : i32
    %c0_i32_0 = arith.constant 0 : i32
    %c0_i32_1 = arith.constant 0 : i32
    return %c0_i32, %c0_i32_0 : i32, i32
  }
  func.func @transform_8(%arg0: i32, %arg1: i32) -> (i32, i32) {
    %c0_i32 = arith.constant 0 : i32
    %c0_i32_0 = arith.constant 0 : i32
    %c0_i32_1 = arith.constant 0 : i32
    return %c0_i32, %c0_i32_0 : i32, i32
  }
  func.func @transform_9(%arg0: i32, %arg1: i32) -> (i32, i32) {
    %c0_i32 = arith.constant 0 : i32
    %c0_i32_0 = arith.constant 0 : i32
    %c0_i32_1 = arith.constant 0 : i32
    return %c0_i32, %c0_i32_0 : i32, i32
  }
  func.func @transform_10(%arg0: i32, %arg1: i32) -> (i32, i32) {
    %c0_i32 = arith.constant 0 : i32
    %c0_i32_0 = arith.constant 0 : i32
    %c0_i32_1 = arith.constant 0 : i32
    return %c0_i32, %c0_i32_0 : i32, i32
  }
  func.func @transform_11(%arg0: i32, %arg1: i32) -> (i32, i32) {
    %c0_i32 = arith.constant 0 : i32
    %c0_i32_0 = arith.constant 0 : i32
    %c0_i32_1 = arith.constant 0 : i32
    return %c0_i32, %c0_i32_0 : i32, i32
  }
  func.func @transform_12(%arg0: i32, %arg1: i32) -> (i32, i32) {
    %c0_i32 = arith.constant 0 : i32
    %c0_i32_0 = arith.constant 0 : i32
    %c0_i32_1 = arith.constant 0 : i32
    return %c0_i32, %c0_i32_0 : i32, i32
  }
  func.func @transform_13(%arg0: i32, %arg1: i32) -> (i32, i32) {
    %c0_i32 = arith.constant 0 : i32
    %c0_i32_0 = arith.constant 0 : i32
    %c0_i32_1 = arith.constant 0 : i32
    return %c0_i32, %c0_i32_0 : i32, i32
  }
  func.func @transform_14(%arg0: i32, %arg1: i32) -> (i32, i32, i32) {
    %c0_i32 = arith.constant 0 : i32
    %c0_i32_0 = arith.constant 0 : i32
    return %arg0, %arg1, %c0_i32 : i32, i32, i32
  }
}

</mosaic_0001>

<bundles_post_ra>
// kernel: tpu_custom_call.1
= control target key start
LH: loop header
LB: loop body
LE: loop exit
PB: predicated region body
PF: predicated region fallthrough
CT: control target
= control target key end

     0   :  { %s3443_s0 = inlined_call_operand.vmem [shape: f32[2,8,32], index: 0, kind: input, shape index: {}]   ;;  %s3444_s1 = inlined_call_operand.hbm [shape: f32[1,32], index: 1, kind: input, shape index: {}]   ;;  %s3445_s2 = inlined_call_operand.hbm [shape: f32[1,32], index: 2, kind: input, shape index: {}]   ;;  %s3446_s3 = inlined_call_operand.vmem [shape: bf16[32,32], index: 3, kind: input, shape index: {}]   ;;  %s3447_s4 = inlined_call_operand.vmem [shape: bf16[32,32], index: 4, kind: input, shape index: {}]   ;;  %s3448_s5 = inlined_call_operand.hbm [shape: bf16[32,32], index: 5, kind: input, shape index: {}]   ;;  %s3449_s6 = inlined_call_operand.hbm [shape: bf16[4,8,32], index: 6, kind: input, shape index: {}]   ;;  %s3450_s7 = inlined_call_operand.hbm [shape: f32[1,32], index: 7, kind: input, shape index: {}]   ;;  %s3451_s8 = inlined_call_operand.hbm [shape: f32[1,32], index: 8, kind: input, shape index: {}]   ;;  %s3452_s9 = inlined_call_operand.hbm [shape: f32[1,32], index: 9, kind: input, shape index: {}]   ;;  %s3453_s10 = inlined_call_operand.vmem [shape: bf16[32,64], index: 10, kind: input, shape index: {}]   ;;  %s3454_s11 = inlined_call_operand.vmem [shape: f32[1,64], index: 11, kind: input, shape index: {}]   ;;  %s3455_s12 = inlined_call_operand.vmem [shape: bf16[64,32], index: 12, kind: input, shape index: {}]   ;;  %s3456_s13 = inlined_call_operand.vmem [shape: f32[1,32], index: 13, kind: input, shape index: {}]   ;;  %s3457_s14 = inlined_call_operand.hbm [shape: f32[2,8,32], index: 14, kind: output, shape index: {}]  }
   0x1   :  { %3471 = sst [smem:[#allocation29_spill]] %s3445_s2 }
   0x2   :  { %3472 = sst [smem:[#allocation30_spill]] %s3457_s14 }
   0x3   :  { %19 = vsyncpa [#allocation5], 0 }
   0x4   :  { %20 = vsyncpa [#allocation8], 0 }
   0x5   :  { %21 = vsyncpa [#allocation11], 0 }
   0x6   :  { %22 = vsyncpa [#allocation14], 0 }
   0x7   :  { %23 = vsyncpa [#allocation6], 0 }
   0x8   :  { %25 = vsyncpa [#allocation6 + $0x1], 0  ;;  %s3015_s29 = smov 0   ;;  %s3017_s30 = smov 0  }
   0x9   :  { %s3019_s15 = smov 0   ;;  %s3021_s16 = smov 0  }
   0xa   :  { %s3023_s17 = smov 0   ;;  %s3025_s18 = smov 0  }
   0xb LB: > { %3473 = sst [smem:[#allocation22_spill]] %s2901_s29  ;;  %s2252_s19 = sadd.s32 4294967295, %s2921_s18   ;;  %s2921_s18 = sphi %s3025_s18, %s31_s18   ;;  %s2917_s17 = sphi %s3023_s17, %s3499_s17   ;;  %s2913_s16 = sphi %s3021_s16, %s3498_s16   ;;  %s2909_s15 = sphi %s3019_s15, %s3497_s15   ;;  %s2905_s30 = sphi %s3017_s30, %s3501_s30   ;;  %s2901_s29 = sphi %s3015_s29, %s3500_s29  }
   0xc   : > { %3474 = sst [smem:[#allocation23_spill]] %s2909_s15  ;;  %s2253_s20 = sadd.s32 4294967294, %s2921_s18  }
   0xd   : > { %3475 = sst [smem:[#allocation24_spill]] %s2917_s17  ;;  %s43_s21 = sadd.s32 1, %s2917_s17 }
   0xe   : > { %3476 = sst [smem:[#allocation25_spill]] %s2921_s18  ;;  %s351_s22 = sadd.s32 1, %s2909_s15 }
   0xf   : > { %p45_p0 = scmp.ge.s32.totalorder %s43_s21, 2  ;;  %p361_p1 = scmp.ne.s32.totalorder %s2909_s15, %s2905_s30 }
  0x10   : > { %p362_p2 = scmp.eq.s32.totalorder %s2252_s19, 1  ;;  %p367_p3 = scmp.ne.s32.totalorder %s2905_s30, %s2901_s29 }
  0x11   : > { %s3503_s21 = smov (%p45_p0, %s43_s21), 0  ;;  %p368_p5 = scmp.eq.s32.totalorder %s2253_s20, 1 }
  0x12   : > { %3477 = sst [smem:[#allocation26_spill]] %s3503_s21  ;;  %p3055_p4 = por %p362_p2, %p361_p1 }
  0x13   : > { %s346_s24 = ssub.s32 %s2917_s17, %s3503_s21  ;;  %p2254_p6 = scmp.ge.s32.totalorder %s2921_s18, 1 }
  0x14   : > { %s3478_s23 = scalar_select %p3055_p4, 1, 0 }
  0x15   : > { %p349_p7 = scmp.eq.s32.totalorder %s346_s24, 0  ;;  %p3062_p8 = por %p368_p5, %p367_p3 }
  0x16   : > { %p375_p9 = scmp.lt.s32.totalorder %s2921_s18, 3  ;;  %p3074_p11 = scmp.eq.s32.totalorder %s2252_s19, 0 }
  0x17   : > { %s3479_s25 = scalar_select %p3062_p8, 1, 0 }
  0x18   : > { %s3068_s26 = scalar_select %p349_p7, %s2909_s15, %s351_s22  }
  0x19   : > { %3480 = sst [smem:[#allocation27_spill]] %s3479_s25  ;;  %p3070_p10 = pnand %p2254_p6, %p375_p9 }
  0x1a   : > { %3481 = sst [smem:[#allocation28_spill]] %s3068_s26  ;;  %s2923_s20 = smov [#allocation7]  }
  0x1b   : > { %s3482_s27 = scalar_select %p3070_p10, 1, 0 }
  0x1c   : > { %s3483_s28 = scalar_select %p3074_p11, 1, 0 }
  0x1d   : > { %p2506_p12 = pneg %p3070_p10  ;;  %s399_s24 = sshll.u32 %s2923_s20, 4  ;;  %s400_s24 = int_to_ptr.vmem [resolvable:$true] %s399_s24 }
  0x1e   : > { %s2924_s22 = smov [#allocation10]   ;;  %s2658_s26 = scalar_lea.vmem %s400_s24, 16 }
  0x1f   : > { %p3082_p13 = pnand %p3074_p11, %p2506_p12  ;;  %s428_s17 = sshll.u32 %s2924_s22, 4  ;;  %s429_s17 = int_to_ptr.vmem [resolvable:$true] %s428_s17 }
  0x20   : > { %p2659_p1 = scmp.ne.s32.totalorder %s400_s24, %s2658_s26  ;;  %s2665_s20 = scalar_lea.vmem %s400_s24, 32 }
  0x21   : > { %p3088_p0 = pneg %p3082_p13  ;;  %p2666_p5 = scmp.lt.s32.totalorder %s400_s24, %s400_s24 }
  0x22   : > { %p2667_p6 = scmp.lt.s32.totalorder %s2665_s20, %s2658_s26 }
  0x23   : > { %p2661_p2 = pnand %p2659_p1, %p3088_p0 }
  0x24   : > { %p2668_p7 = por %p2667_p6, %p2666_p5 }
  0x25   : > { %p2662_p3 = pneg %p2661_p2 }
  0x27   : > { %p2669_p9 = pnand %p2668_p7, %p2662_p3 }
  0x29   : > { %2672 = shalt.err (!%p2669_p9)
}
  0x2a   : > { %s3486_s2 = sld [smem:[#allocation29_spill]]  ;;  %s2684_s25 = scalar_lea.vmem %s429_s17, 256 }
  0x2b   : > { %p2685_p12 = scmp.ne.s32.totalorder %s429_s17, %s2684_s25  ;;  %p2692_p1 = scmp.lt.s32.totalorder %s429_s17, %s429_s17 }
  0x2c   : > { %p2693_p2 = scmp.lt.s32.totalorder %s2684_s25, %s2684_s25 }
  0x2d   : > { %p2687_p8 = pnand %p2685_p12, %p3088_p0 }
  0x2e   : > { %p2694_p11 = por %p2693_p2, %p2692_p1 }
  0x2f   : > { %p2688_p4 = pneg %p2687_p8 }
  0x30   : > { %2512 = dma.hbm_to_vmem [thread:$0]  (!%p3082_p13), %s3486_s2, 16, %s400_s24, [#allocation8]  }
  0x31   : > { %p2695_p10 = pnand %p2694_p11, %p2688_p4 }
  0x33   : > { %2698 = shalt.err (!%p2695_p10)
}
  0x34   : > { %s3470_s26 = smov 64   ;;  %s2926_s20 = smov 4  }
  0x35   : > { %2518 = dma.hbm_to_vmem [thread:$0]  (!%p3082_p13), %s3449_s6, 256, %s429_s17, [#allocation11], %s3470_s26, %s3470_s26, %s2926_s20  }
  0x36   : > { %s2927_s22 = smov [#allocation13]  }
  0x37   : > { %s453_s2 = sshll.u32 %s2927_s22, 4  ;;  %s454_s2 = int_to_ptr.vmem [resolvable:$true] %s453_s2 }
  0x38   : > { %s2710_s29 = scalar_lea.vmem %s454_s2, 16  ;;  %s2717_s25 = scalar_lea.vmem %s454_s2, 32 }
  0x39   : > { %p2711_p8 = scmp.ne.s32.totalorder %s454_s2, %s2710_s29  ;;  %p2718_p11 = scmp.lt.s32.totalorder %s454_s2, %s454_s2 }
  0x3a   : > { %p2719_p3 = scmp.lt.s32.totalorder %s2717_s25, %s2710_s29 }
  0x3b   : > { %p2713_p4 = pnand %p2711_p8, %p3088_p0 }
  0x3c   : > { %p2720_p5 = por %p2719_p3, %p2718_p11 }
  0x3d   : > { %p2714_p10 = pneg %p2713_p4 }
  0x3f   : > { %p2721_p6 = pnand %p2720_p5, %p2714_p10 }
  0x41   : > { %2724 = shalt.err (!%p2721_p6)
}
  0x42   : > { %2524 = dma.hbm_to_vmem [thread:$0]  (!%p3082_p13), %s3451_s8, 16, %s454_s2, [#allocation14]  }
  0x43   : > { %s2928_s17 = smov [#allocation4]   ;;  %s2929_s24 = smov [#allocation9]  }
  0x44   : > { %s388_s15 = sshll.u32 %s2928_s17, 4  ;;  %s415_s22 = sshll.u32 %s2929_s24, 4  ;;  %s389_s15 = int_to_ptr.vmem [resolvable:$true] %s388_s15  ;;  %s416_s22 = int_to_ptr.vmem [resolvable:$true] %s415_s22 }
  0x45   : > { %s2736_s26 = scalar_lea.vmem %s389_s15, 16  ;;  %s2743_s29 = scalar_lea.vmem %s389_s15, 32 }
  0x46   : > { %p2737_p7 = scmp.ne.s32.totalorder %s389_s15, %s2736_s26  ;;  %p2744_p1 = scmp.lt.s32.totalorder %s389_s15, %s389_s15 }
  0x47   : > { %p2745_p2 = scmp.lt.s32.totalorder %s2743_s29, %s2736_s26 }
  0x48   : > { %p2739_p9 = pnand %p2737_p7, %p3088_p0 }
  0x49   : > { %p2746_p8 = por %p2745_p2, %p2744_p1 }
  0x4a   : > { %p2740_p12 = pneg %p2739_p9 }
  0x4c   : > { %p2747_p4 = pnand %p2746_p8, %p2740_p12 }
  0x4e   : > { %2750 = shalt.err (!%p2747_p4)
}
  0x4f   : > { %2509 = dma.hbm_to_vmem [thread:$0]  (!%p3082_p13), %s3444_s1, 16, %s389_s15, [#allocation5]  }
  0x50   : > { %s2762_s18 = scalar_lea.vmem %s416_s22, 256  ;;  %p2770_p5 = scmp.lt.s32.totalorder %s416_s22, %s416_s22 }
  0x51   : > { %p2763_p10 = scmp.ne.s32.totalorder %s416_s22, %s2762_s18  ;;  %p2771_p6 = scmp.lt.s32.totalorder %s2762_s18, %s2762_s18 }
  0x53   : > { %p2765_p11 = pnand %p2763_p10, %p3088_p0  ;;  %p2772_p7 = por %p2771_p6, %p2770_p5 }
  0x55   : > { %p2766_p3 = pneg %p2765_p11 }
  0x57   : > { %p2773_p9 = pnand %p2772_p7, %p2766_p3 }
  0x59   : > { %2776 = shalt.err (!%p2773_p9)
}
  0x5a   : > { %s3487_s26 = smov 64   ;;  %s2930_s15 = smov [#allocation12]  }
  0x5b   : > { %2515 = dma.hbm_to_vmem [thread:$0]  (!%p3082_p13), %s3448_s5, 256, %s416_s22, [#allocation8], %s3487_s26, %s3487_s26, %s2926_s20  }
  0x5c   : > { %s442_s24 = sshll.u32 %s2930_s15, 4  ;;  %s2931_s29 = smov [#allocation15]   ;;  %s443_s24 = int_to_ptr.vmem [resolvable:$true] %s442_s24 }
  0x5d   : > { %s464_s2 = sshll.u32 %s2931_s29, 4  ;;  %s2788_s14 = scalar_lea.vmem %s443_s24, 16  ;;  %s465_s2 = int_to_ptr.vmem [resolvable:$true] %s464_s2 }
  0x5e   : > { %p2789_p12 = scmp.ne.s32.totalorder %s443_s24, %s2788_s14  ;;  %s2795_s18 = scalar_lea.vmem %s443_s24, 32 }
  0x5f   : > { %p2796_p8 = scmp.lt.s32.totalorder %s443_s24, %s443_s24  ;;  %p2797_p4 = scmp.lt.s32.totalorder %s2795_s18, %s2788_s14 }
  0x60   : > { %p2791_p1 = pnand %p2789_p12, %p3088_p0 }
  0x61   : > { %p2798_p10 = por %p2797_p4, %p2796_p8 }
  0x62   : > { %p2792_p2 = pneg %p2791_p1 }
  0x64   : > { %p2799_p11 = pnand %p2798_p10, %p2792_p2 }
  0x66   : > { %2802 = shalt.err (!%p2799_p11)
}
  0x67   : > { %2521 = dma.hbm_to_vmem [thread:$0]  (!%p3082_p13), %s3450_s7, 16, %s443_s24, [#allocation11]  }
  0x68   : > { %s2814_s26 = scalar_lea.vmem %s465_s2, 16  ;;  %s2821_s25 = scalar_lea.vmem %s465_s2, 32 }
  0x69   : > { %p2815_p3 = scmp.ne.s32.totalorder %s465_s2, %s2814_s26  ;;  %p2822_p7 = scmp.lt.s32.totalorder %s465_s2, %s465_s2 }
  0x6a   : > { %p2823_p9 = scmp.lt.s32.totalorder %s2821_s25, %s2814_s26 }
  0x6b   : > { %p2817_p5 = pnand %p2815_p3, %p3088_p0 }
  0x6c   : > { %p2824_p12 = por %p2823_p9, %p2822_p7 }
  0x6d   : > { %p2818_p6 = pneg %p2817_p5 }
  0x6f   : > { %p2825_p1 = pnand %p2824_p12, %p2818_p6 }
  0x71   : > { %2828 = shalt.err (!%p2825_p1)
}
  0x72   : > { %2527 = dma.hbm_to_vmem [thread:$0]  (!%p3082_p13), %s3452_s9, 16, %s465_s2, [#allocation14]  }
  0x73   : > { %p3488_p2 = scmp.ne.s32.totalorder %s3482_s27, 0 }
  0x74   : > { %p3489_p8 = scmp.ne.s32.totalorder (!%p3488_p2), %s3483_s28, 0 }
  0x75   : > { %496 = sbr.rel (%p3488_p2) target bundleno = 2303 (0x8ff), region = 76 }
  0x7a   : > { %2880 = dma.done.wait (%p3489_p8), [#allocation5], 16  }
  0x7b   : > { %2882 = vsyncadd (%p3489_p8), [#allocation5], 4294967280 }
  0x7c   : > { %2884 = dma.done.wait (%p3489_p8), [#allocation8], 272  }
  0x7d   : > { %2886 = vsyncadd (%p3489_p8), [#allocation8], 4294967024 }
  0x7e   : > { %2888 = dma.done.wait (%p3489_p8), [#allocation11], 272  }
  0x7f   : > { %2890 = vsyncadd (%p3489_p8), [#allocation11], 4294967024 }
  0x80   : > { %2892 = dma.done.wait (%p3489_p8), [#allocation14], 32  }
  0x81   : > { %2894 = vsyncadd (%p3489_p8), [#allocation14], 4294967264  ;;  %p565_p13 = scmp.lt.s32.totalorder %s2913_s16, 1  ;;  %vm577_vm0 = vcmask 261120   ;;  %v2611_v12 = vld [vmem:[%s3447_s4 + $0x8] sm:$0xff]   ;;  %v2932_v14 = vmov 0.0   ;;  %v593_v49 = vlaneseq }
  0x82   : > { %v2613_v13 = vld [vmem:[%s3446_s3 + $0x8] sm:$0xff]   ;;  %2360 = vmatprep.subr.bf16.mxu1 %v2932_v14  ;;  %2376 = vmatprep.subr.bf16.mxu0 %v2932_v14  ;;  %v2612_v15 = vld [vmem:[%s3447_s4] sm:$0xff]   ;;  %vm2933_vm1 = vmmov 0   ;;  %s2934_s17 = smov 112   ;;  %s2935_s15 = smov 120   ;;  %vm872_vm2 = vcmask 60416  }
  0x83   : > { %s566_s21 = scalar_select %p565_p13, %s2913_s16, 1  ;;  %2361 = vmatpush3.bf16.msra.mxu1 %v2611_v12  ;;  %2377 = vmatpush3.bf16.msra.mxu0 %v2613_v13  ;;  %v2615_v16 = vld [vmem:[%s3446_s3] sm:$0xff]   ;;  %v2614_v31 = vld [vmem:[#allocation9 + $0x8] sm:$0xff]   ;;  %v2937_v50 = vmov 1983009808   ;;  %v594_v54 = vshrl.u32 %v593_v49, 7 }
  0x84   : > { %2362 = vmatprep.subr.bf16.mxu1 %v2932_v14  ;;  %2364 = vmatprep.mubr.msk.bf16.mxu1 %vm2933_vm1, %v2932_v14  ;;  %v2317_v24 = vld [vmem:[#allocation4] ss:$0 sm:$0xff]  ;;  %v2318_v26 = vld [vmem:[#allocation7] ss:$0 sm:$0xff]  ;;  %v2616_v35 = vld [vmem:[#allocation9] sm:$0xff]   ;;  %v735_v51 = vunpack.c.l.s4 %v2937_v50  ;;  %vm1277_vm3 = vcmask 64512  }
  0x85   : > { %s2272_s27 = sshll.u32 %s566_s21, 3  ;;  %2378 = vmatprep.subr.bf16.mxu0 %v2932_v14  ;;  %2380 = vmatprep.mubr.msk.bf16.mxu0 %vm2933_vm1, %v2932_v14  ;;  %s2936_s21 = smov 104   ;;  %v2938_v52 = vmov 1934713408   ;;  %vm1513_vm4 = vcmask 1043456   ;;  %vm2052_vm5 = vcmask 523264  }
  0x86   : > { %s568_s29 = scalar_lea.vmem %s3443_s0, %s2272_s27  ;;  %v767_v53 = vunpack.c.l.s4 %v2938_v52  ;;  %v736_v55 = vunpack.c.0.s8 %v735_v51  ;;  %s3490_s20 = sld [smem:[#allocation30_spill]] }
  0x87   : > { %v3170_v0 = vld [vmem:[%s568_s29] sm:$0xff]  ;;  %2363 = vmatpush3.bf16.msra.mxu1 %v2612_v15  ;;  %2379 = vmatpush3.bf16.msra.mxu0 %v2615_v16  ;;  %s2314_s29 = sshll.u32 %s2913_s16, 7  ;;  %p3491_p4 = scmp.ne.s32.totalorder %s3478_s23, 0 }
  0x88   : > { %v578_v1 = vsel %vm577_vm0, %v3170_v0, 0.0  ;;  %2368 = vmatprep.subr.bf16.mxu1 %v2932_v14  ;;  %2390 = vmatprep.subr.bf16.mxu0 %v2932_v14  ;;  %v768_v58 = vunpack.c.0.s8 %v767_v53  ;;  %v3216_v59 = vsub.s32 %v736_v55, %v594_v54  ;;  %s2939_s25 = smov [#allocation16]  }
  0x89   : > { %579 = vadd.xlane.f32.xlu0 %v578_v1 }
  0x8c   : > { %s3396_s22 = scalar_lea.hbm %s3490_s20, %s2314_s29 }
  0x8d   : > { %1036 = vadd.xlane.f32.xlu0 %v578_v1 }
 0x112   : > { %v580_v2 = vpop.xlane.xlu0 %579 }
 0x113   : > { %v582_v3 = vmul.f32 0.03125, %v580_v2 }
 0x115   : > { %v583_v4 = vsub.f32 %v3170_v0, %v582_v3  ;;  %v3218_v3 = vsub.s32 %v768_v58, %v594_v54 }
 0x116   : > { %v1037_v5 = vpop.xlane.xlu0 %1036 }
 0x117   : > { %v1039_v6 = vmul.f32 0.03125, %v1037_v5  ;;  %v584_v7 = vmul.f32 %v583_v4, %v583_v4 }
 0x119   : > { %v1040_v8 = vsub.f32 %v3170_v0, %v1039_v6  ;;  %v585_v9 = vsel %vm577_vm0, %v584_v7, 0.0 }
 0x11a   : > { %586 = vadd.xlane.f32.xlu1 %v585_v9 }
 0x11b   : > { %v1041_v10 = vmul.f32 %v1040_v8, %v1040_v8 }
 0x11d   : > { %v1042_v11 = vsel %vm577_vm0, %v1041_v10, 0.0 }
 0x11e   : > { %1043 = vadd.xlane.f32.xlu1 %v1042_v11 }
 0x1a3   : > { %v587_v17 = vpop.xlane.xlu1 %586 }
 0x1a4   : > { %v588_v18 = vmul.f32 0.03125, %v587_v17 }
 0x1a6   : > { %v589_v19 = vadd.f32 1e-05, %v588_v18 }
 0x1a7   : > { %v1044_v20 = vpop.xlane.xlu1 %1043 }
 0x1a8   : > { %2623 = vrsqrt.f32 %v589_v19  ;;  %v1045_v21 = vmul.f32 0.03125, %v1044_v20 }
 0x1aa   : > { %v1046_v22 = vadd.f32 1e-05, %v1045_v21 }
 0x1ac   : > { %2625 = vrsqrt.f32 %v1046_v22 }
 0x1b5   : > { %v2624_v23 = vpop.eup %2623 }
 0x1b6   : > { %v591_v25 = vmul.f32 %v2624_v23, %v583_v4 }
 0x1b8   : > { %v598_v27 = vmul.f32 %v2317_v24, %v591_v25 }
 0x1b9   : > { %v2626_v28 = vpop.eup %2625 }
 0x1ba   : > { %v605_v29 = vadd.f32 %v2318_v26, %v598_v27  ;;  %v1048_v30 = vmul.f32 %v2626_v28, %v1040_v8 }
 0x1bc   : > { %v606_v32 = vpack.c.bf16 %v605_v29, %v605_v29  ;;  %v1055_v33 = vmul.f32 %v2317_v24, %v1048_v30 }
 0x1be   : > { %2365 = vmatmul.mubr.msk.bf16.vlgmr.msra.gmra.mxu1 %vm577_vm0, %v606_v32  ;;  %v1062_v34 = vadd.f32 %v2318_v26, %v1055_v33 }
 0x1bf   : > { %2369 = vmatpush3.bf16.msra.mxu1 %v2614_v31  ;;  %2372 = vmatprep.mubr.msk.bf16.mxu1 %vm2933_vm1, %v2932_v14 }
 0x1c0   : > { %2370 = vmatprep.subr.bf16.mxu1 %v2932_v14  ;;  %v1063_v36 = vpack.c.bf16 %v1062_v34, %v1062_v34 }
 0x1c2   : > { %2381 = vmatmul.mubr.msk.bf16.vlgmr.msra.gmra.mxu0 %vm577_vm0, %v1063_v36 }
 0x1c3   : > { %2371 = vmatpush3.bf16.msra.mxu1 %v2616_v35  ;;  %2392 = vmatprep.mubr.msk.bf16.mxu0 %vm2933_vm1, %v2932_v14 }
 0x1c4   : > { %2384 = vmatprep.subr.bf16.mxu1 %v2932_v14 }
 0x1c6   : > { %2373 = vmatmul.mubr.msk.bf16.vlgmr.msra.gmra.mxu1 %vm577_vm0, %v606_v32 }
 0x1c7   : > { %2386 = vmatprep.mubr.msk.bf16.mxu1 %vm2933_vm1, %v2932_v14 }
 0x27e   : > { %v660_v37 = vpop.f32.mrf.mxu1 }
 0x27f   : > { %726 = vrot.lane.b32.xlu1 %v660_v37, %s2934_s17  ;;  %723 = vrot.lane.b32.xlu0 %v660_v37, %s2935_s15 }
 0x280   : > { %v2366_v38 = vpop.f32.mrf.mxu1 }
 0x282   : > { %v663_v39 = vpop.f32.mrf.mxu1  ;;  %v1117_v40 = vpop.f32.mrf.mxu0 }
 0x283   : > { %729 = vrot.lane.b32.xlu1 %v660_v37, %s2936_s21  ;;  %1127 = vrot.lane.b32.xlu0 %v1117_v40, %s2934_s17 }
 0x284   : > { %v2367_v41 = vpop.f32.mrf.mxu1  ;;  %v2382_v42 = vpop.f32.mrf.mxu0 }
 0x286   : > { %v3211_v43 = vpop.f32.mrf.mxu1  ;;  %v1120_v44 = vpop.f32.mrf.mxu0 }
 0x287   : > { %1124 = vrot.lane.b32.xlu1 %v1117_v40, %s2935_s15  ;;  %878 = vrot.lane.b32.xlu0 %v3211_v43, %s2935_s15 }
 0x288   : > { %v2374_v45 = vpop.f32.mrf.mxu1  ;;  %v2383_v46 = vpop.f32.mrf.mxu0 }
 0x28a   : > { %v719_v47 = vpop.f32.mrf.mxu1 }
 0x28b   : > { %1130 = vrot.lane.b32.xlu1 %v1117_v40, %s2936_s21  ;;  %884 = vrot.lane.b32.xlu0 %v3211_v43, %s2936_s21  ;;  %s562_s21 = sand.u32 1, %s2905_s30  }
 0x28c   : > { %v2375_v48 = vpop.f32.mrf.mxu1  ;;  %s2271_s27 = sshll.u32 %s562_s21, 3  ;;  %s2099_s16 = scalar_lea.sflag [#allocation6], %s562_s21 }
 0x28d   : > { %s564_s28 = scalar_lea.vmem [#allocation16], %s2271_s27 }
 0x28e   : > { %s2113_s2 = sshll.u32 %s564_s28, 4  ;;  %s3398_s2 = int_to_ptr.vmem [resolvable:$true] %s2113_s2 }
 0x28f   : > { %881 = vrot.lane.b32.xlu1 %v3211_v43, %s2934_s17  ;;  %s2829_s26 = scalar_lea.vmem %s3398_s2, 128  ;;  %s2833_s17 = sshll.u32 %s2939_s25, 4  ;;  %s2834_s17 = int_to_ptr.vmem [resolvable:$false] %s2833_s17 }
 0x290   : > { %p2830_p0 = scmp.ne.s32.totalorder %s3398_s2, %s2829_s26  ;;  %s2835_s15 = scalar_lea.vmem %s2834_s17, 256 }
 0x291   : > { %p2836_p3 = scmp.lt.s32.totalorder %s3398_s2, %s2834_s17  ;;  %p2837_p5 = scmp.lt.s32.totalorder %s2835_s15, %s2829_s26 }
 0x292   : > { %p2831_p10 = pnand %p2830_p0, %p3491_p4 }
 0x293   : > { %p2838_p6 = por %p2837_p5, %p2836_p3 }
 0x294   : > { %p2832_p11 = pneg %p2831_p10 }
 0x296   : > { %p2839_p7 = pnand %p2838_p6, %p2832_p11 }
 0x2f1   : > { %v727_v56 = vpop.permute.xlu1 %726  ;;  %v724_v57 = vpop.permute.xlu0 %723 }
 0x2f2   : > { %v732_v60 = vcombine.low %v660_v37, %v727_v56  ;;  %v733_v61 = vcombine.high %v660_v37, %v727_v56 }
 0x2f4   : > { %v740_v4 = vrot.slane %v732_v60, %v3216_v59  ;;  %v747_v5 = vrot.slane %v733_v61, %v3216_v59 }
 0x2f5   : > { %v730_v62 = vpop.permute.xlu1 %729  ;;  %v1128_v63 = vpop.permute.xlu0 %1127 }
 0x2f6   : > { %v748_v1 = vcombine.low %v724_v57, %v730_v62  ;;  %v749_v2 = vcombine.high %v724_v57, %v730_v62  ;;  %v1133_v15 = vcombine.low %v1117_v40, %v1128_v63  ;;  %v1134_v16 = vcombine.high %v1117_v40, %v1128_v63 }
 0x2f8   : > { %v756_v6 = vrot.slane %v748_v1, %v3216_v59  ;;  %v763_v7 = vrot.slane %v749_v2, %v3216_v59  ;;  %v1141_v27 = vrot.slane %v1133_v15, %v3216_v59  ;;  %v1148_v28 = vrot.slane %v1134_v16, %v3216_v59 }
 0x2f9   : > { %v1125_v8 = vpop.permute.xlu1 %1124  ;;  %v3224_v9 = vpop.permute.xlu0 %878 }
 0x2fa   : > { %v764_v10 = vcombine.low %v740_v4, %v756_v6  ;;  %v765_v11 = vcombine.high %v740_v4, %v756_v6  ;;  %v780_v12 = vcombine.low %v747_v5, %v763_v7  ;;  %v781_v13 = vcombine.high %v747_v5, %v763_v7 }
 0x2fc   : > { %v772_v17 = vrot.slane %v764_v10, %v3218_v3  ;;  %v779_v18 = vrot.slane %v765_v11, %v3218_v3  ;;  %v788_v19 = vrot.slane %v780_v12, %v3218_v3  ;;  %v795_v20 = vrot.slane %v781_v13, %v3218_v3 }
 0x2fd   : > { %v1131_v21 = vpop.permute.xlu1 %1130  ;;  %v885_v26 = vpop.permute.xlu0 %884 }
 0x2fe   : > { %v800_v22 = vcombine.low %v772_v17, %v779_v18  ;;  %v2279_v23 = vcombine.high %v772_v17, %v779_v18  ;;  %v816_v24 = vcombine.low %v788_v19, %v795_v20  ;;  %v2280_v25 = vcombine.high %v788_v19, %v795_v20 }
 0x2ff   : > { %v1149_v29 = vcombine.low %v1125_v8, %v1131_v21  ;;  %v1150_v30 = vcombine.high %v1125_v8, %v1131_v21  ;;  %v903_v37 = vcombine.low %v3224_v9, %v885_v26  ;;  %v904_v38 = vcombine.high %v3224_v9, %v885_v26 }
 0x300   : > { %v807_v31 = vrot.slane %v800_v22, %v3216_v59  ;;  %v815_v32 = vrot.slane %v2279_v23, %v3216_v59  ;;  %v823_v33 = vrot.slane %v816_v24, %v3216_v59  ;;  %v831_v34 = vrot.slane %v2280_v25, %v3216_v59 }
 0x301   : > { %v1157_v35 = vrot.slane %v1149_v29, %v3216_v59  ;;  %v1164_v36 = vrot.slane %v1150_v30, %v3216_v59  ;;  %v882_v2 = vpop.permute.xlu1 %881  ;;  %v911_v15 = vrot.slane %v903_v37, %v3216_v59  ;;  %v918_v16 = vrot.slane %v904_v38, %v3216_v59 }
 0x302   : > { %v832_v39 = vcombine.low %v807_v31, %v815_v32  ;;  %v833_v40 = vcombine.high %v807_v31, %v815_v32  ;;  %v848_v41 = vcombine.low %v823_v33, %v831_v34  ;;  %v849_v42 = vcombine.high %v823_v33, %v831_v34 }
 0x303   : > { %v1165_v44 = vcombine.low %v1141_v27, %v1157_v35  ;;  %v1166_v45 = vcombine.high %v1141_v27, %v1157_v35  ;;  %v1181_v46 = vcombine.low %v1148_v28, %v1164_v36  ;;  %v1182_v47 = vcombine.high %v1148_v28, %v1164_v36 }
 0x304   : > { %v840_v48 = vrot.slane %v832_v39, %v3218_v3  ;;  %v847_v49 = vrot.slane %v833_v40, %v3218_v3  ;;  %v856_v50 = vrot.slane %v848_v41, %v3218_v3  ;;  %v863_v51 = vrot.slane %v849_v42, %v3218_v3 }
 0x305   : > { %v1173_v52 = vrot.slane %v1165_v44, %v3218_v3  ;;  %v1180_v53 = vrot.slane %v1166_v45, %v3218_v3  ;;  %v1189_v54 = vrot.slane %v1181_v46, %v3218_v3  ;;  %v1196_v55 = vrot.slane %v1182_v47, %v3218_v3 }
 0x306   : > { %v864_v56 = vcombine.low %v840_v48, %v856_v50  ;;  %v865_v57 = vcombine.high %v840_v48, %v856_v50  ;;  %v866_v58 = vcombine.low %v847_v49, %v863_v51  ;;  %v867_v60 = vcombine.high %v847_v49, %v863_v51 }
 0x307   : > { %v1201_v61 = vcombine.low %v1173_v52, %v1180_v53  ;;  %v2286_v62 = vcombine.high %v1173_v52, %v1180_v53  ;;  %v1217_v63 = vcombine.low %v1189_v54, %v1196_v55  ;;  %v2287_v1 = vcombine.high %v1189_v54, %v1196_v55 }
 0x308   : > { %v868_v4 = vpack.c.bf16 %v864_v56, %v864_v56  ;;  %v869_v5 = vpack.c.bf16 %v865_v57, %v865_v57  ;;  %v870_v6 = vpack.c.bf16 %v866_v58, %v866_v58  ;;  %v871_v7 = vpack.c.bf16 %v867_v60, %v867_v60 }
 0x309   : > { %v1208_v8 = vrot.slane %v1201_v61, %v3216_v59  ;;  %v1216_v9 = vrot.slane %v2286_v62, %v3216_v59  ;;  %v1224_v10 = vrot.slane %v1217_v63, %v3216_v59  ;;  %v1232_v11 = vrot.slane %v2287_v1, %v3216_v59 }
 0x30a   : > { %873 = vst.msk [vmem:[#allocation2] sm:$0xf] %vm872_vm2, %v868_v4  ;;  %874 = vst.msk [vmem:[#allocation2 + $0x4] sm:$0xf] %vm872_vm2, %v869_v5  ;;  %v887_v12 = vcombine.low %v3211_v43, %v882_v2  ;;  %v888_v13 = vcombine.high %v3211_v43, %v882_v2 }
 0x30b   : > { %875 = vst.msk [vmem:[#allocation2 + $0x8] sm:$0xf] %vm872_vm2, %v870_v6  ;;  %876 = vst.msk [vmem:[#allocation2 + $0xc] sm:$0xf] %vm872_vm2, %v871_v7  ;;  %v1233_v19 = vcombine.low %v1208_v8, %v1216_v9  ;;  %v1249_v20 = vcombine.low %v1224_v10, %v1232_v11  ;;  %v1234_v36 = vcombine.high %v1208_v8, %v1216_v9 }
 0x30c   : > { %v895_v17 = vrot.slane %v887_v12, %v3216_v59  ;;  %v902_v18 = vrot.slane %v888_v13, %v3216_v59  ;;  %v1250_v44 = vcombine.high %v1224_v10, %v1232_v11 }
 0x30d   : > { %v1241_v30 = vrot.slane %v1233_v19, %v3218_v3  ;;  %v1257_v31 = vrot.slane %v1249_v20, %v3218_v3  ;;  %v1248_v58 = vrot.slane %v1234_v36, %v3218_v3 }
 0x30e   : > { %v919_v21 = vcombine.low %v895_v17, %v911_v15  ;;  %v920_v22 = vcombine.high %v895_v17, %v911_v15  ;;  %v935_v23 = vcombine.low %v902_v18, %v918_v16  ;;  %v936_v24 = vcombine.high %v902_v18, %v918_v16 }
 0x30f   : > { %v1265_v45 = vcombine.low %v1241_v30, %v1257_v31  ;;  %v1266_v46 = vcombine.high %v1241_v30, %v1257_v31  ;;  %v1264_v60 = vrot.slane %v1250_v44, %v3218_v3 }
 0x310   : > { %v927_v25 = vrot.slane %v919_v21, %v3218_v3  ;;  %v934_v26 = vrot.slane %v920_v22, %v3218_v3  ;;  %v943_v43 = vrot.slane %v935_v23, %v3218_v3  ;;  %v950_v27 = vrot.slane %v936_v24, %v3218_v3 }
 0x311   : > { %v1273_v28 = vld [vmem:[#allocation2] sm:$0xf]  ;;  %v1274_v29 = vld [vmem:[#allocation2 + $0x4] sm:$0xf]  ;;  %v1269_v56 = vpack.c.bf16 %v1265_v45, %v1265_v45  ;;  %v1270_v57 = vpack.c.bf16 %v1266_v46, %v1266_v46  ;;  %v1268_v9 = vcombine.high %v1248_v58, %v1264_v60 }
 0x312   : > { %v955_v32 = vcombine.low %v927_v25, %v934_v26  ;;  %v2281_v33 = vcombine.high %v927_v25, %v934_v26  ;;  %v971_v34 = vcombine.low %v943_v43, %v950_v27  ;;  %v2282_v35 = vcombine.high %v943_v43, %v950_v27  ;;  %v1275_v54 = vld [vmem:[#allocation2 + $0x8] sm:$0xf]  ;;  %v1276_v55 = vld [vmem:[#allocation2 + $0xc] sm:$0xf] }
 0x313   : > { %v1282_v37 = vsel %vm1277_vm3, %v1273_v28, 0  ;;  %v1328_v38 = vsel %vm1277_vm3, %v1274_v29, 0  ;;  %v1374_v2 = vsel %vm1277_vm3, %v1275_v54, 0  ;;  %v1420_v4 = vsel %vm1277_vm3, %v1276_v55, 0 }
 0x314   : > { %v962_v39 = vrot.slane %v955_v32, %v3216_v59  ;;  %v970_v40 = vrot.slane %v2281_v33, %v3216_v59  ;;  %v978_v41 = vrot.slane %v971_v34, %v3216_v59  ;;  %v986_v42 = vrot.slane %v2282_v35, %v3216_v59  ;;  %2385 = vmatpush3.bf16.xpose.msra.mxu1 %v1282_v37 }
 0x315   : > { %2391 = vmatpush3.bf16.xpose.msra.mxu0 %v1328_v38  ;;  %2396 = vmatprep.subr.bf16.mxu1 %v2932_v14  ;;  %v1272_v11 = vpack.c.bf16 %v1268_v9, %v1268_v9 }
 0x316   : > { %v987_v47 = vcombine.low %v962_v39, %v970_v40  ;;  %v988_v48 = vcombine.high %v962_v39, %v970_v40  ;;  %v1003_v49 = vcombine.low %v978_v41, %v986_v42  ;;  %v1004_v50 = vcombine.high %v978_v41, %v986_v42  ;;  %2402 = vmatprep.subr.bf16.mxu0 %v2932_v14 }
 0x318   : > { %v995_v51 = vrot.slane %v987_v47, %v3218_v3  ;;  %v1002_v52 = vrot.slane %v988_v48, %v3218_v3  ;;  %v1011_v53 = vrot.slane %v1003_v49, %v3218_v3  ;;  %v1018_v59 = vrot.slane %v1004_v50, %v3218_v3 }
 0x319   : > { %v1267_v3 = vcombine.low %v1248_v58, %v1264_v60 }
 0x31a   : > { %v1019_v61 = vcombine.low %v995_v51, %v1011_v53  ;;  %v1020_v62 = vcombine.high %v995_v51, %v1011_v53  ;;  %v1021_v63 = vcombine.low %v1002_v52, %v1018_v59  ;;  %v1022_v1 = vcombine.high %v1002_v52, %v1018_v59 }
 0x31b   : > { %2387 = vmatmul.mubr.msk.bf16.vlgmr.msra.gmra.mxu1 %vm1277_vm3, %v1269_v56  ;;  %v1271_v10 = vpack.c.bf16 %v1267_v3, %v1267_v3 }
 0x31c   : > { %v1023_v5 = vpack.c.bf16 %v1019_v61, %v1019_v61  ;;  %v1024_v6 = vpack.c.bf16 %v1020_v62, %v1020_v62  ;;  %v1025_v7 = vpack.c.bf16 %v1021_v63, %v1021_v63  ;;  %v1026_v8 = vpack.c.bf16 %v1022_v1, %v1022_v1  ;;  %2393 = vmatmul.mubr.msk.bf16.vlgmr.msra.gmra.mxu0 %vm1277_vm3, %v1270_v57 }
 0x31d   : > { %2397 = vmatpush3.bf16.xpose.msra.mxu1 %v1374_v2  ;;  %2403 = vmatpush3.bf16.xpose.msra.mxu0 %v1420_v4  ;;  %v1703_v2 = vld [vmem:[#allocation10] sm:$0xf]  ;;  %v1704_v4 = vld [vmem:[#allocation10 + $0x4] sm:$0xf] }
 0x31e   : > { %1027 = vst.msk [vmem:[#allocation3] sm:$0xf] %vm872_vm2, %v1023_v5  ;;  %1028 = vst.msk [vmem:[#allocation3 + $0x4] sm:$0xf] %vm872_vm2, %v1024_v6  ;;  %2398 = vmatprep.mubr.msk.bf16.mxu1 %vm2933_vm1, %v2932_v14  ;;  %2404 = vmatprep.mubr.msk.bf16.mxu0 %vm2933_vm1, %v2932_v14  ;;  %v1711_v5 = vsel %vm1513_vm4, %v1703_v2, 0  ;;  %v1757_v6 = vsel %vm1513_vm4, %v1704_v4, 0 }
 0x31f   : > { %1029 = vst.msk [vmem:[#allocation3 + $0x8] sm:$0xf] %vm872_vm2, %v1025_v7  ;;  %1030 = vst.msk [vmem:[#allocation3 + $0xc] sm:$0xf] %vm872_vm2, %v1026_v8  ;;  %2408 = vmatprep.subr.bf16.mxu1 %v2932_v14  ;;  %2414 = vmatprep.subr.bf16.mxu0 %v2932_v14 }
 0x324   : > { %2399 = vmatmul.mubr.msk.bf16.vlgmr.msra.gmra.mxu1 %vm1277_vm3, %v1271_v10  ;;  %2405 = vmatmul.mubr.msk.bf16.vlgmr.msra.gmra.mxu0 %vm1277_vm3, %v1272_v11 }
 0x325   : > { %v1506_v12 = vld [vmem:[#allocation3] sm:$0xf]  ;;  %v1507_v13 = vld [vmem:[#allocation3 + $0x4] sm:$0xf]  ;;  %2410 = vmatprep.mubr.msk.bf16.mxu1 %vm2933_vm1, %v2932_v14  ;;  %2416 = vmatprep.mubr.msk.bf16.mxu0 %vm2933_vm1, %v2932_v14 }
 0x326   : > { %v1515_v15 = vsel %vm1513_vm4, %v1506_v12, 0  ;;  %v1561_v16 = vsel %vm1513_vm4, %v1507_v13, 0  ;;  %v1508_v50 = vld [vmem:[#allocation3 + $0x8] sm:$0xf]  ;;  %v1509_v59 = vld [vmem:[#allocation3 + $0xc] sm:$0xf] }
 0x327   : > { %2409 = vmatpush3.bf16.msra.mxu1 %v1515_v15  ;;  %2415 = vmatpush3.bf16.msra.mxu0 %v1561_v16  ;;  %v1607_v56 = vsel %vm1513_vm4, %v1508_v50, 0  ;;  %v1653_v57 = vsel %vm1513_vm4, %v1509_v59, 0  ;;  %v1705_v12 = vld [vmem:[#allocation10 + $0x8] sm:$0xf] }
 0x328   : > { %2420 = vmatprep.subr.bf16.mxu1 %v2932_v14  ;;  %2426 = vmatprep.subr.bf16.mxu0 %v2932_v14 }
 0x3db   : > { %v1318_v17 = vpop.f32.mrf.mxu1 }
 0x3dc   : > { %v1364_v18 = vpop.f32.mrf.mxu0  ;;  %v1462_v19 = vsel %vm1277_vm3, %v1318_v17, -inf }
 0x3dd   : > { %v1465_v20 = vsel %vm1277_vm3, %v1364_v18, -inf  ;;  %1463 = vmax.xlane.f32.xlu1 %v1462_v19  ;;  %v2388_v21 = vpop.f32.mrf.mxu1 }
 0x3de   : > { %v2394_v22 = vpop.f32.mrf.mxu0  ;;  %1466 = vmax.xlane.f32.xlu0 %v1465_v20 }
 0x3df   : > { %v1321_v23 = vpop.f32.mrf.mxu1  ;;  %v1803_v22 = vsel %vm1513_vm4, %v1705_v12, 0  ;;  %v2617_v12 = vld [vmem:[%s3453_s10 + $0x8] sm:$0xff]  }
 0x3e0   : > { %v1367_v24 = vpop.f32.mrf.mxu0 }
 0x3e1   : > { %v2389_v25 = vpop.f32.mrf.mxu1 }
 0x3e2   : > { %v2395_v26 = vpop.f32.mrf.mxu0 }
 0x3e4   : > { %v1410_v43 = vpop.f32.mrf.mxu1  ;;  %v1456_v27 = vpop.f32.mrf.mxu0 }
 0x3e5   : > { %v1468_v28 = vsel %vm1277_vm3, %v1410_v43, -inf  ;;  %v1471_v33 = vsel %vm1277_vm3, %v1456_v27, -inf }
 0x3e6   : > { %v2406_v29 = vpop.f32.mrf.mxu0  ;;  %1469 = vmax.xlane.f32.xlu0 %v1468_v28  ;;  %v2400_v30 = vpop.f32.mrf.mxu1 }
 0x3e8   : > { %v1413_v31 = vpop.f32.mrf.mxu1  ;;  %v1459_v32 = vpop.f32.mrf.mxu0 }
 0x3ea   : > { %v2407_v34 = vpop.f32.mrf.mxu0  ;;  %1472 = vmax.xlane.f32.xlu0 %v1471_v33  ;;  %v2401_v35 = vpop.f32.mrf.mxu1 }
 0x466   : > { %v1464_v36 = vpop.xlane.xlu1 %1463 }
 0x467   : > { %v1467_v37 = vpop.xlane.xlu0 %1466  ;;  %v1474_v38 = vsub.f32 %v1318_v17, %v1464_v36  ;;  %v1706_v17 = vld [vmem:[#allocation10 + $0xc] sm:$0xf] }
 0x468   : > { %v1475_v39 = vsub.f32 %v1364_v18, %v1467_v37  ;;  %v1849_v25 = vsel %vm1513_vm4, %v1706_v17, 0 }
 0x469   : > { %v1478_v40 = vmul.f32 1.442695, %v1474_v38 }
 0x46a   : > { %v1480_v41 = vmul.f32 1.442695, %v1475_v39 }
 0x46b   : > { %2627 = vpow2.f32 %v1478_v40 }
 0x46c   : > { %2629 = vpow2.f32 %v1480_v41 }
 0x46f   : > { %v1470_v42 = vpop.xlane.xlu0 %1469 }
 0x470   : > { %v1476_v44 = vsub.f32 %v1410_v43, %v1470_v42 }
 0x472   : > { %v1482_v45 = vmul.f32 1.442695, %v1476_v44 }
 0x473   : > { %v1473_v46 = vpop.xlane.xlu0 %1472 }
 0x474   : > { %2631 = vpow2.f32 %v1482_v45  ;;  %v1477_v47 = vsub.f32 %v1456_v27, %v1473_v46 }
 0x476   : > { %v1484_v48 = vmul.f32 1.442695, %v1477_v47 }
 0x478   : > { %v2628_v49 = vpop.eup %2627  ;;  %2633 = vpow2.f32 %v1484_v48 }
 0x479   : > { %v2630_v51 = vpop.eup %2629  ;;  %v1486_v52 = vsel %vm1277_vm3, %v2628_v49, 0.0  ;;  %v1502_v53 = vpack.c.bf16 %v2628_v49, %v2628_v49 }
 0x47a   : > { %1487 = vadd.xlane.f32.xlu1 %v1486_v52  ;;  %v1489_v54 = vsel %vm1277_vm3, %v2630_v51, 0.0  ;;  %v1503_v55 = vpack.c.bf16 %v2630_v51, %v2630_v51 }
 0x47b   : > { %1490 = vadd.xlane.f32.xlu0 %v1489_v54  ;;  %2411 = vmatmul.mubr.msk.bf16.vlgmr.msra.gmra.mxu1 %vm1277_vm3, %v1502_v53 }
 0x47c   : > { %2417 = vmatmul.mubr.msk.bf16.vlgmr.msra.gmra.mxu0 %vm1277_vm3, %v1503_v55  ;;  %2421 = vmatpush3.bf16.msra.mxu1 %v1607_v56 }
 0x47d   : > { %2427 = vmatpush3.bf16.msra.mxu0 %v1653_v57  ;;  %2422 = vmatprep.mubr.msk.bf16.mxu1 %vm2933_vm1, %v2932_v14 }
 0x47e   : > { %2428 = vmatprep.mubr.msk.bf16.mxu0 %vm2933_vm1, %v2932_v14  ;;  %2432 = vmatprep.subr.bf16.mxu1 %v2932_v14 }
 0x47f   : > { %2438 = vmatprep.subr.bf16.mxu0 %v2932_v14 }
 0x481   : > { %v2632_v58 = vpop.eup %2631 }
 0x482   : > { %v1492_v60 = vsel %vm1277_vm3, %v2632_v58, 0.0  ;;  %v1504_v61 = vpack.c.bf16 %v2632_v58, %v2632_v58 }
 0x483   : > { %1493 = vadd.xlane.f32.xlu1 %v1492_v60 }
 0x484   : > { %2423 = vmatmul.mubr.msk.bf16.vlgmr.msra.gmra.mxu1 %vm1277_vm3, %v1504_v61  ;;  %v2300_v61 = vld [vmem:[#allocation12] ss:$0 sm:$0xff] }
 0x485   : > { %v2634_v62 = vpop.eup %2633  ;;  %2434 = vmatprep.mubr.msk.bf16.mxu1 %vm2933_vm1, %v2932_v14  ;;  %2433 = vmatpush3.bf16.msra.mxu1 %v1711_v5 }
 0x486   : > { %v1495_v63 = vsel %vm1277_vm3, %v2634_v62, 0.0  ;;  %v1505_v1 = vpack.c.bf16 %v2634_v62, %v2634_v62  ;;  %2444 = vmatprep.subr.bf16.mxu1 %v2932_v14 }
 0x487   : > { %1496 = vadd.xlane.f32.xlu0 %v1495_v63 }
 0x488   : > { %2429 = vmatmul.mubr.msk.bf16.vlgmr.msra.gmra.mxu0 %vm1277_vm3, %v1505_v1 }
 0x489   : > { %2440 = vmatprep.mubr.msk.bf16.mxu0 %vm2933_vm1, %v2932_v14  ;;  %2439 = vmatpush3.bf16.msra.mxu0 %v1757_v6 }
 0x48a   : > { %2450 = vmatprep.subr.bf16.mxu0 %v2932_v14 }
 0x503   : > { %v1488_v7 = vpop.xlane.xlu1 %1487 }
 0x504   : > { %v1491_v8 = vpop.xlane.xlu0 %1490  ;;  %2635 = vrcp.f32 %v1488_v7 }
 0x505   : > { %2637 = vrcp.f32 %v1491_v8 }
 0x50c   : > { %v1494_v3 = vpop.xlane.xlu1 %1493 }
 0x50d   : > { %2639 = vrcp.f32 %v1494_v3 }
 0x510   : > { %v1497_v9 = vpop.xlane.xlu0 %1496 }
 0x511   : > { %v2636_v10 = vpop.eup %2635  ;;  %2641 = vrcp.f32 %v1497_v9 }
 0x512   : > { %v2638_v13 = vpop.eup %2637 }
 0x51a   : > { %v2640_v28 = vpop.eup %2639 }
 0x51e   : > { %v2642_v33 = vpop.eup %2641 }
 0x53b   : > { %v1551_v11 = vpop.f32.mrf.mxu1 }
 0x53c   : > { %v1695_v15 = vmul.f32 %v2636_v10, %v1551_v11  ;;  %v1597_v16 = vpop.f32.mrf.mxu0 }
 0x53d   : > { %v1696_v18 = vmul.f32 %v2638_v13, %v1597_v16  ;;  %v2412_v19 = vpop.f32.mrf.mxu1 }
 0x53e   : > { %v1699_v20 = vpack.c.bf16 %v1695_v15, %v1695_v15  ;;  %v2418_v21 = vpop.f32.mrf.mxu0 }
 0x53f   : > { %v1700_v23 = vpack.c.bf16 %v1696_v18, %v1696_v18  ;;  %v1554_v24 = vpop.f32.mrf.mxu1  ;;  %v2301_v18 = vld [vmem:[#allocation13] ss:$0 sm:$0xff] }
 0x540   : > { %v1600_v26 = vpop.f32.mrf.mxu0  ;;  %2435 = vmatmul.mubr.msk.bf16.vlgmr.msra.gmra.mxu1 %vm1277_vm3, %v1699_v20  ;;  %v2302_v20 = vld [vmem:[#allocation15] ss:$0 sm:$0xff]  ;;  %v2619_v24 = vld [vmem:[%s3455_s12 + $0x18] sm:$0xff]  }
 0x541   : > { %2441 = vmatmul.mubr.msk.bf16.vlgmr.msra.gmra.mxu0 %vm1277_vm3, %v1700_v23  ;;  %v2413_v43 = vpop.f32.mrf.mxu1  ;;  %2445 = vmatpush3.bf16.msra.mxu1 %v1803_v22  ;;  %v2621_v26 = vld [vmem:[%s3455_s12 + $0x8] sm:$0xff]  }
 0x542   : > { %v2419_v27 = vpop.f32.mrf.mxu0  ;;  %2451 = vmatpush3.bf16.msra.mxu0 %v1849_v25  ;;  %2446 = vmatprep.mubr.msk.bf16.mxu1 %vm2933_vm1, %v2932_v14  ;;  %v2620_v25 = vld [vmem:[%s3455_s12 + $0x10] sm:$0xff]   ;;  %v2622_v43 = vld [vmem:[%s3455_s12] sm:$0xff]  }
 0x543   : > { %2452 = vmatprep.mubr.msk.bf16.mxu0 %vm2933_vm1, %v2932_v14  ;;  %2456 = vmatprep.subr.bf16.mxu1 %v2932_v14  ;;  %v2303_v27 = vld [vmem:[%s3454_s11] ss:$0 sm:$0xff] }
 0x544   : > { %v1643_v29 = vpop.f32.mrf.mxu1  ;;  %2464 = vmatprep.subr.bf16.mxu0 %v2932_v14 }
 0x545   : > { %v1697_v30 = vmul.f32 %v2640_v28, %v1643_v29 }
 0x546   : > { %v2424_v31 = vpop.f32.mrf.mxu1 }
 0x547   : > { %v1701_v32 = vpack.c.bf16 %v1697_v30, %v1697_v30 }
 0x548   : > { %v1646_v34 = vpop.f32.mrf.mxu1  ;;  %v1689_v35 = vpop.f32.mrf.mxu0 }
 0x549   : > { %v1698_v36 = vmul.f32 %v2642_v33, %v1689_v35  ;;  %2447 = vmatmul.mubr.msk.bf16.vlgmr.msra.gmra.mxu1 %vm1277_vm3, %v1701_v32 }
 0x54a   : > { %v2425_v37 = vpop.f32.mrf.mxu1  ;;  %v2430_v38 = vpop.f32.mrf.mxu0  ;;  %2460 = vmatprep.mubr.msk.bf16.mxu1 %vm2933_vm1, %v2932_v14  ;;  %2457 = vmatpush3.bf16.msra.mxu1 %v2617_v12 }
 0x54b   : > { %v1702_v39 = vpack.c.bf16 %v1698_v36, %v1698_v36  ;;  %2458 = vmatprep.subr.bf16.mxu1 %v2932_v14 }
 0x54c   : > { %v1692_v40 = vpop.f32.mrf.mxu0 }
 0x54d   : > { %2453 = vmatmul.mubr.msk.bf16.vlgmr.msra.gmra.mxu0 %vm1277_vm3, %v1702_v39 }
 0x54e   : > { %v2431_v41 = vpop.f32.mrf.mxu0  ;;  %2472 = vmatprep.mubr.msk.bf16.mxu0 %vm2933_vm1, %v2932_v14  ;;  %2465 = vmatpush3.bf16.msra.mxu0 %v2619_v24 }
 0x54f   : > { %2466 = vmatprep.subr.bf16.mxu0 %v2932_v14 }
 0x552   : > { %2467 = vmatpush3.bf16.msra.mxu0 %v2620_v25 }
 0x553   : > { %2468 = vmatprep.subr.bf16.mxu0 %v2932_v14 }
 0x556   : > { %2469 = vmatpush3.bf16.msra.mxu0 %v2621_v26 }
 0x557   : > { %2470 = vmatprep.subr.bf16.mxu0 %v2932_v14 }
 0x55a   : > { %2471 = vmatpush3.bf16.msra.mxu0 %v2622_v43 }
 0x600   : > { %v1747_v42 = vpop.f32.mrf.mxu1 }
 0x601   : > { %v1793_v44 = vpop.f32.mrf.mxu0  ;;  %v1891_v51 = vsel %vm577_vm0, %v1747_v42, 0.0  ;;  %v2307_v42 = vld [vmem:[%s3456_s13] ss:$0 sm:$0xff] }
 0x602   : > { %v2436_v45 = vpop.f32.mrf.mxu1  ;;  %v1892_v52 = vsel %vm577_vm0, %v1793_v44, 0.0 }
 0x603   : > { %v2442_v46 = vpop.f32.mrf.mxu0  ;;  %v1893_v54 = vadd.f32 %v1892_v52, %v1891_v51 }
 0x604   : > { %v1750_v47 = vpop.f32.mrf.mxu1 }
 0x605   : > { %v1796_v48 = vpop.f32.mrf.mxu0 }
 0x606   : > { %v2437_v49 = vpop.f32.mrf.mxu1 }
 0x607   : > { %v2443_v50 = vpop.f32.mrf.mxu0 }
 0x609   : > { %v1839_v53 = vpop.f32.mrf.mxu1 }
 0x60a   : > { %v1894_v59 = vsel %vm577_vm0, %v1839_v53, 0.0 }
 0x60b   : > { %v2448_v55 = vpop.f32.mrf.mxu1  ;;  %v1895_v56 = vadd.f32 %v1894_v59, %v1893_v54 }
 0x60d   : > { %v1842_v57 = vpop.f32.mrf.mxu1  ;;  %v1885_v58 = vpop.f32.mrf.mxu0 }
 0x60e   : > { %v1896_v60 = vsel %vm577_vm0, %v1885_v58, 0.0 }
 0x60f   : > { %v1897_v62 = vadd.f32 %v1896_v60, %v1895_v56  ;;  %v2449_v63 = vpop.f32.mrf.mxu1  ;;  %v2454_v1 = vpop.f32.mrf.mxu0 }
 0x611   : > { %v1905_v2 = vadd.f32 %v2300_v61, %v1897_v62  ;;  %v1888_v4 = vpop.f32.mrf.mxu0 }
 0x613   : > { %v2455_v5 = vpop.f32.mrf.mxu0  ;;  %v3355_v6 = vadd.f32 %v1905_v2, %v3170_v0  ;;  %v2618_v0 = vld [vmem:[%s3453_s10] sm:$0xff]  }
 0x614   : > { %2459 = vmatpush3.bf16.msra.mxu1 %v2618_v0 }
 0x615   : > { %v1909_v7 = vsel %vm577_vm0, %v3355_v6, 0.0 }
 0x616   : > { %1910 = vadd.xlane.f32.xlu1 %v1909_v7 }
 0x69f   : > { %v1911_v8 = vpop.xlane.xlu1 %1910 }
 0x6a0   : > { %v1912_v3 = vmul.f32 0.03125, %v1911_v8 }
 0x6a2   : > { %v1913_v9 = vsub.f32 %v3355_v6, %v1912_v3 }
 0x6a4   : > { %v1914_v10 = vmul.f32 %v1913_v9, %v1913_v9 }
 0x6a6   : > { %v1915_v11 = vsel %vm577_vm0, %v1914_v10, 0.0 }
 0x6a7   : > { %1916 = vadd.xlane.f32.xlu0 %v1915_v11 }
 0x730   : > { %v1917_v13 = vpop.xlane.xlu0 %1916 }
 0x731   : > { %v1918_v15 = vmul.f32 0.03125, %v1917_v13 }
 0x733   : > { %v1919_v16 = vadd.f32 1e-05, %v1918_v15 }
 0x735   : > { %2643 = vrsqrt.f32 %v1919_v16 }
 0x742   : > { %v2644_v17 = vpop.eup %2643 }
 0x743   : > { %v1921_v19 = vmul.f32 %v2644_v17, %v1913_v9 }
 0x745   : > { %v1928_v21 = vmul.f32 %v2301_v18, %v1921_v19 }
 0x747   : > { %v1935_v22 = vadd.f32 %v2302_v20, %v1928_v21 }
 0x749   : > { %v1936_v23 = vpack.c.bf16 %v1935_v22, %v1935_v22 }
 0x74b   : > { %2461 = vmatmul.mubr.msk.bf16.vlgmr.msra.gmra.mxu1 %vm577_vm0, %v1936_v23 }
 0x80b   : > { %v1997_v28 = vpop.f32.mrf.mxu1 }
 0x80c   : > { %v1998_v29 = vadd.f32 %v2303_v27, %v1997_v28 }
 0x80d   : > { %v2462_v30 = vpop.f32.mrf.mxu1 }
 0x80e   : > { %v2003_v31 = vmul.f32 %v1998_v29, %v1998_v29  ;;  %v2005_v14 = vmul.f32 0.5, %v1998_v29 }
 0x80f   : > { %v2000_v32 = vpop.f32.mrf.mxu1 }
 0x810   : > { %v2004_v33 = vmul.f32 %v2003_v31, %v1998_v29 }
 0x811   : > { %v2463_v34 = vpop.f32.mrf.mxu1 }
 0x812   : > { %v2006_v35 = vmul.f32 0.044715, %v2004_v33 }
 0x814   : > { %v2007_v36 = vadd.f32 %v2006_v35, %v1998_v29 }
 0x816   : > { %v2008_v37 = vmul.f32 0.7978846, %v2007_v36 }
 0x818   : > { %2645 = vtanh.f32 %v2008_v37 }
 0x825   : > { %v2646_v38 = vpop.eup %2645 }
 0x826   : > { %v2010_v39 = vadd.f32 1.0, %v2646_v38 }
 0x828   : > { %v2011_v40 = vmul.f32 %v2010_v39, %v2005_v14 }
 0x82a   : > { %v2012_v41 = vpack.c.bf16 %v2011_v40, %v2011_v40 }
 0x82c   : > { %2473 = vmatmul.mubr.msk.bf16.vlgmr.msra.gmra.mxu0 %vm2052_vm5, %v2012_v41 }
 0x8ec   : > { %v2090_v44 = vpop.f32.mrf.mxu0 }
 0x8ed   : > { %v2091_v45 = vadd.f32 %v2307_v42, %v2090_v44 }
 0x8ee   : > { %v2474_v46 = vpop.f32.mrf.mxu0 }
 0x8ef   : > { %v2096_v47 = vadd.f32 %v2091_v45, %v3355_v6 }
 0x8f0   : > { %v2093_v48 = vpop.f32.mrf.mxu0 }
 0x8f1   : > { %2097 = vst.msk [vmem:[%s564_s28] sm:$0xff] %vm577_vm0, %v2096_v47 }
 0x8f2   : > { %v2475_v49 = vpop.f32.mrf.mxu0 }
 0x8f3   : > { %2842 = shalt.err (!%p2839_p7)
}
 0x8f4   : > { %s2843_s27 = scalar_lea.hbm %s3396_s22, 128  ;;  %s2847_s24 = scalar_lea.hbm %s3490_s20, 256 }
 0x8f5   : > { %p2844_p9 = scmp.ne.s32.totalorder %s3396_s22, %s2843_s27  ;;  %p2848_p2 = scmp.lt.s32.totalorder %s3396_s22, %s3490_s20 }
 0x8f6   : > { %p2849_p8 = scmp.lt.s32.totalorder %s2847_s24, %s2843_s27 }
 0x8f7   : > { %p2845_p12 = pnand %p2844_p9, %p3491_p4 }
 0x8f8   : > { %p2850_p13 = por %p2849_p8, %p2848_p2 }
 0x8f9   : > { %p2846_p1 = pneg %p2845_p12 }
 0x8fb   : > { %p2851_p0 = pnand %p2850_p13, %p2846_p1 }
 0x8fd   : > { %2854 = shalt.err (!%p2851_p0)
}
 0x8fe   : > { %2504 = dma.vmem_to_hbm [thread:$0]  (%p3491_p4), %s3398_s2, 128, %s3396_s22, %s2099_s16  }
 0x8ff PF: > { %s3492_s14 = sld [smem:[#allocation25_spill]] }
 0x900   : > { %s3493_s18 = sld [smem:[#allocation22_spill]] }
 0x901   : > { %s3494_s26 = sld [smem:[#allocation27_spill]] }
 0x905   : > { %p2546_p10 = scmp.ge.s32.totalorder %s3492_s14, 2 }
 0x906   : > { %s2125_s25 = sand.u32 1, %s3493_s18  }
 0x907   : > { %p3495_p11 = scmp.ne.s32.totalorder %s3494_s26, 0  ;;  %s2126_s17 = scalar_lea.sflag [#allocation6], %s2125_s25 }
 0x909   : > { %p2529_p3 = pnand %p2546_p10, %p3495_p11 }
 0x90b   : > { %p2530_p5 = pneg %p2529_p3 }
 0x90d   : > { %2896 = dma.done.wait (%p2530_p5), %s2126_s17, 128  }
 0x90e   : > { %2898 = vsyncadd (%p2530_p5), %s2126_s17, 4294967168  ;;  %s31_s18 = sadd.s32 1, %s3492_s14   ;;  %s3496_s23 = sld [smem:[#allocation23_spill]] }
 0x90f   : > { %p28_p6 = scmp.ge.s32.totalorder %s31_s18, 4   ;;  %s3497_s15 = sld [smem:[#allocation28_spill]] }
 0x910   : > { %s3498_s16 = sld [smem:[#allocation24_spill]]  ;;  %s3500_s29 = smov %s2905_s30 }
 0x911   : > { %s3499_s17 = sld [smem:[#allocation26_spill]]  ;;  %30 = sbr.rel (!%p28_p6) target bundleno = 11 (0xb), region = 145 }
 0x914   : > { %s3501_s30 = smov %s3496_s23 }
 0x916   :  { %2131 = vsyncpa [#allocation5], 1 }
 0x917   :  { %2133 = vsyncpa [#allocation5 + $0x1], 1 }
 0x918   :  { %2134 = vsyncpa [#allocation8], 1 }
 0x919   :  { %2135 = vsyncpa [#allocation11], 1 }
 0x91a   :  { %2136 = vsyncpa [#allocation14], 1 }
 0x91b   :  { %2137 = vsyncpa [#allocation6], 1 }
 0x91c   :  { %2139 = vsyncpa [#allocation6 + $0x1], 1 }

// kernel: tpu_custom_call.1
= control target key start
LH: loop header
LB: loop body
LE: loop exit
PB: predicated region body
PF: predicated region fallthrough
CT: control target
= control target key end

     0   :  { %s3443_s0 = inlined_call_operand.vmem [shape: f32[2,8,32], index: 0, kind: input, shape index: {}]   ;;  %s3444_s1 = inlined_call_operand.hbm [shape: f32[1,32], index: 1, kind: input, shape index: {}]   ;;  %s3445_s2 = inlined_call_operand.hbm [shape: f32[1,32], index: 2, kind: input, shape index: {}]   ;;  %s3446_s3 = inlined_call_operand.vmem [shape: bf16[32,32], index: 3, kind: input, shape index: {}]   ;;  %s3447_s4 = inlined_call_operand.vmem [shape: bf16[32,32], index: 4, kind: input, shape index: {}]   ;;  %s3448_s5 = inlined_call_operand.hbm [shape: bf16[32,32], index: 5, kind: input, shape index: {}]   ;;  %s3449_s6 = inlined_call_operand.hbm [shape: bf16[4,8,32], index: 6, kind: input, shape index: {}]   ;;  %s3450_s7 = inlined_call_operand.hbm [shape: f32[1,32], index: 7, kind: input, shape index: {}]   ;;  %s3451_s8 = inlined_call_operand.hbm [shape: f32[1,32], index: 8, kind: input, shape index: {}]   ;;  %s3452_s9 = inlined_call_operand.hbm [shape: f32[1,32], index: 9, kind: input, shape index: {}]   ;;  %s3453_s10 = inlined_call_operand.vmem [shape: bf16[32,64], index: 10, kind: input, shape index: {}]   ;;  %s3454_s11 = inlined_call_operand.vmem [shape: f32[1,64], index: 11, kind: input, shape index: {}]   ;;  %s3455_s12 = inlined_call_operand.vmem [shape: bf16[64,32], index: 12, kind: input, shape index: {}]   ;;  %s3456_s13 = inlined_call_operand.vmem [shape: f32[1,32], index: 13, kind: input, shape index: {}]   ;;  %s3457_s14 = inlined_call_operand.hbm [shape: f32[2,8,32], index: 14, kind: output, shape index: {}]  }
   0x1   :  { %3471 = sst [smem:[#allocation29_spill]] %s3445_s2 }
   0x2   :  { %3472 = sst [smem:[#allocation30_spill]] %s3457_s14 }
   0x3   :  { %19 = vsyncpa [#allocation5], 0 }
   0x4   :  { %20 = vsyncpa [#allocation8], 0 }
   0x5   :  { %21 = vsyncpa [#allocation11], 0 }
   0x6   :  { %22 = vsyncpa [#allocation14], 0 }
   0x7   :  { %23 = vsyncpa [#allocation6], 0 }
   0x8   :  { %25 = vsyncpa [#allocation6 + $0x1], 0  ;;  %s3015_s29 = smov 0   ;;  %s3017_s30 = smov 0  }
   0x9   :  { %s3019_s15 = smov 0   ;;  %s3021_s16 = smov 0  }
   0xa   :  { %s3023_s17 = smov 0   ;;  %s3025_s18 = smov 0  }
   0xb LB: > { %3473 = sst [smem:[#allocation22_spill]] %s2901_s29  ;;  %s2252_s19 = sadd.s32 4294967295, %s2921_s18   ;;  %s2921_s18 = sphi %s3025_s18, %s31_s18   ;;  %s2917_s17 = sphi %s3023_s17, %s3499_s17   ;;  %s2913_s16 = sphi %s3021_s16, %s3498_s16   ;;  %s2909_s15 = sphi %s3019_s15, %s3497_s15   ;;  %s2905_s30 = sphi %s3017_s30, %s3501_s30   ;;  %s2901_s29 = sphi %s3015_s29, %s3500_s29  }
   0xc   : > { %3474 = sst [smem:[#allocation23_spill]] %s2909_s15  ;;  %s2253_s20 = sadd.s32 4294967294, %s2921_s18  }
   0xd   : > { %3475 = sst [smem:[#allocation24_spill]] %s2917_s17  ;;  %s43_s21 = sadd.s32 1, %s2917_s17 }
   0xe   : > { %3476 = sst [smem:[#allocation25_spill]] %s2921_s18  ;;  %s351_s22 = sadd.s32 1, %s2909_s15 }
   0xf   : > { %p45_p0 = scmp.ge.s32.totalorder %s43_s21, 2  ;;  %p361_p1 = scmp.ne.s32.totalorder %s2909_s15, %s2905_s30 }
  0x10   : > { %p362_p2 = scmp.eq.s32.totalorder %s2252_s19, 1  ;;  %p367_p3 = scmp.ne.s32.totalorder %s2905_s30, %s2901_s29 }
  0x11   : > { %s3503_s21 = smov (%p45_p0, %s43_s21), 0  ;;  %p368_p5 = scmp.eq.s32.totalorder %s2253_s20, 1 }
  0x12   : > { %3477 = sst [smem:[#allocation26_spill]] %s3503_s21  ;;  %p3055_p4 = por %p362_p2, %p361_p1 }
  0x13   : > { %s346_s24 = ssub.s32 %s2917_s17, %s3503_s21  ;;  %p2254_p6 = scmp.ge.s32.totalorder %s2921_s18, 1 }
  0x14   : > { %s3478_s23 = scalar_select %p3055_p4, 1, 0 }
  0x15   : > { %p349_p7 = scmp.eq.s32.totalorder %s346_s24, 0  ;;  %p3062_p8 = por %p368_p5, %p367_p3 }
  0x16   : > { %p375_p9 = scmp.lt.s32.totalorder %s2921_s18, 3  ;;  %p3074_p11 = scmp.eq.s32.totalorder %s2252_s19, 0 }
  0x17   : > { %s3479_s25 = scalar_select %p3062_p8, 1, 0 }
  0x18   : > { %s3068_s26 = scalar_select %p349_p7, %s2909_s15, %s351_s22  }
  0x19   : > { %3480 = sst [smem:[#allocation27_spill]] %s3479_s25  ;;  %p3070_p10 = pnand %p2254_p6, %p375_p9 }
  0x1a   : > { %3481 = sst [smem:[#allocation28_spill]] %s3068_s26  ;;  %s2923_s20 = smov [#allocation7]  }
  0x1b   : > { %s3482_s27 = scalar_select %p3070_p10, 1, 0 }
  0x1c   : > { %s3483_s28 = scalar_select %p3074_p11, 1, 0 }
  0x1d   : > { %p2506_p12 = pneg %p3070_p10  ;;  %s399_s24 = sshll.u32 %s2923_s20, 4  ;;  %s400_s24 = int_to_ptr.vmem [resolvable:$true] %s399_s24 }
  0x1e   : > { %s2924_s22 = smov [#allocation10]   ;;  %s2658_s26 = scalar_lea.vmem %s400_s24, 16 }
  0x1f   : > { %p3082_p13 = pnand %p3074_p11, %p2506_p12  ;;  %s428_s17 = sshll.u32 %s2924_s22, 4  ;;  %s429_s17 = int_to_ptr.vmem [resolvable:$true] %s428_s17 }
  0x20   : > { %p2659_p1 = scmp.ne.s32.totalorder %s400_s24, %s2658_s26  ;;  %s2665_s20 = scalar_lea.vmem %s400_s24, 32 }
  0x21   : > { %p3088_p0 = pneg %p3082_p13  ;;  %p2666_p5 = scmp.lt.s32.totalorder %s400_s24, %s400_s24 }
  0x22   : > { %p2667_p6 = scmp.lt.s32.totalorder %s2665_s20, %s2658_s26 }
  0x23   : > { %p2661_p2 = pnand %p2659_p1, %p3088_p0 }
  0x24   : > { %p2668_p7 = por %p2667_p6, %p2666_p5 }
  0x25   : > { %p2662_p3 = pneg %p2661_p2 }
  0x27   : > { %p2669_p9 = pnand %p2668_p7, %p2662_p3 }
  0x29   : > { %2672 = shalt.err (!%p2669_p9)
}
  0x2a   : > { %s3486_s2 = sld [smem:[#allocation29_spill]]  ;;  %s2684_s25 = scalar_lea.vmem %s429_s17, 256 }
  0x2b   : > { %p2685_p12 = scmp.ne.s32.totalorder %s429_s17, %s2684_s25  ;;  %p2692_p1 = scmp.lt.s32.totalorder %s429_s17, %s429_s17 }
  0x2c   : > { %p2693_p2 = scmp.lt.s32.totalorder %s2684_s25, %s2684_s25 }
  0x2d   : > { %p2687_p8 = pnand %p2685_p12, %p3088_p0 }
  0x2e   : > { %p2694_p11 = por %p2693_p2, %p2692_p1 }
  0x2f   : > { %p2688_p4 = pneg %p2687_p8 }
  0x30   : > { %2512 = dma.hbm_to_vmem [thread:$0]  (!%p3082_p13), %s3486_s2, 16, %s400_s24, [#allocation8]  }
  0x31   : > { %p2695_p10 = pnand %p2694_p11, %p2688_p4 }
  0x33   : > { %2698 = shalt.err (!%p2695_p10)
}
  0x34   : > { %s3470_s26 = smov 64   ;;  %s2926_s20 = smov 4  }
  0x35   : > { %2518 = dma.hbm_to_vmem [thread:$0]  (!%p3082_p13), %s3449_s6, 256, %s429_s17, [#allocation11], %s3470_s26, %s3470_s26, %s2926_s20  }
  0x36   : > { %s2927_s22 = smov [#allocation13]  }
  0x37   : > { %s453_s2 = sshll.u32 %s2927_s22, 4  ;;  %s454_s2 = int_to_ptr.vmem [resolvable:$true] %s453_s2 }
  0x38   : > { %s2710_s29 = scalar_lea.vmem %s454_s2, 16  ;;  %s2717_s25 = scalar_lea.vmem %s454_s2, 32 }
  0x39   : > { %p2711_p8 = scmp.ne.s32.totalorder %s454_s2, %s2710_s29  ;;  %p2718_p11 = scmp.lt.s32.totalorder %s454_s2, %s454_s2 }
  0x3a   : > { %p2719_p3 = scmp.lt.s32.totalorder %s2717_s25, %s2710_s29 }
  0x3b   : > { %p2713_p4 = pnand %p2711_p8, %p3088_p0 }
  0x3c   : > { %p2720_p5 = por %p2719_p3, %p2718_p11 }
  0x3d   : > { %p2714_p10 = pneg %p2713_p4 }
  0x3f   : > { %p2721_p6 = pnand %p2720_p5, %p2714_p10 }
  0x41   : > { %2724 = shalt.err (!%p2721_p6)
}
  0x42   : > { %2524 = dma.hbm_to_vmem [thread:$0]  (!%p3082_p13), %s3451_s8, 16, %s454_s2, [#allocation14]  }
  0x43   : > { %s2928_s17 = smov [#allocation4]   ;;  %s2929_s24 = smov [#allocation9]  }
  0x44   : > { %s388_s15 = sshll.u32 %s2928_s17, 4  ;;  %s415_s22 = sshll.u32 %s2929_s24, 4  ;;  %s389_s15 = int_to_ptr.vmem [resolvable:$true] %s388_s15  ;;  %s416_s22 = int_to_ptr.vmem [resolvable:$true] %s415_s22 }
  0x45   : > { %s2736_s26 = scalar_lea.vmem %s389_s15, 16  ;;  %s2743_s29 = scalar_lea.vmem %s389_s15, 32 }
  0x46   : > { %p2737_p7 = scmp.ne.s32.totalorder %s389_s15, %s2736_s26  ;;  %p2744_p1 = scmp.lt.s32.totalorder %s389_s15, %s389_s15 }
  0x47   : > { %p2745_p2 = scmp.lt.s32.totalorder %s2743_s29, %s2736_s26 }
  0x48   : > { %p2739_p9 = pnand %p2737_p7, %p3088_p0 }
  0x49   : > { %p2746_p8 = por %p2745_p2, %p2744_p1 }
  0x4a   : > { %p2740_p12 = pneg %p2739_p9 }
  0x4c   : > { %p2747_p4 = pnand %p2746_p8, %p2740_p12 }
  0x4e   : > { %2750 = shalt.err (!%p2747_p4)
}
  0x4f   : > { %2509 = dma.hbm_to_vmem [thread:$0]  (!%p3082_p13), %s3444_s1, 16, %s389_s15, [#allocation5]  }
  0x50   : > { %s2762_s18 = scalar_lea.vmem %s416_s22, 256  ;;  %p2770_p5 = scmp.lt.s32.totalorder %s416_s22, %s416_s22 }
  0x51   : > { %p2763_p10 = scmp.ne.s32.totalorder %s416_s22, %s2762_s18  ;;  %p2771_p6 = scmp.lt.s32.totalorder %s2762_s18, %s2762_s18 }
  0x53   : > { %p2765_p11 = pnand %p2763_p10, %p3088_p0  ;;  %p2772_p7 = por %p2771_p6, %p2770_p5 }
  0x55   : > { %p2766_p3 = pneg %p2765_p11 }
  0x57   : > { %p2773_p9 = pnand %p2772_p7, %p2766_p3 }
  0x59   : > { %2776 = shalt.err (!%p2773_p9)
}
  0x5a   : > { %s3487_s26 = smov 64   ;;  %s2930_s15 = smov [#allocation12]  }
  0x5b   : > { %2515 = dma.hbm_to_vmem [thread:$0]  (!%p3082_p13), %s3448_s5, 256, %s416_s22, [#allocation8], %s3487_s26, %s3487_s26, %s2926_s20  }
  0x5c   : > { %s442_s24 = sshll.u32 %s2930_s15, 4  ;;  %s2931_s29 = smov [#allocation15]   ;;  %s443_s24 = int_to_ptr.vmem [resolvable:$true] %s442_s24 }
  0x5d   : > { %s464_s2 = sshll.u32 %s2931_s29, 4  ;;  %s2788_s14 = scalar_lea.vmem %s443_s24, 16  ;;  %s465_s2 = int_to_ptr.vmem [resolvable:$true] %s464_s2 }
  0x5e   : > { %p2789_p12 = scmp.ne.s32.totalorder %s443_s24, %s2788_s14  ;;  %s2795_s18 = scalar_lea.vmem %s443_s24, 32 }
  0x5f   : > { %p2796_p8 = scmp.lt.s32.totalorder %s443_s24, %s443_s24  ;;  %p2797_p4 = scmp.lt.s32.totalorder %s2795_s18, %s2788_s14 }
  0x60   : > { %p2791_p1 = pnand %p2789_p12, %p3088_p0 }
  0x61   : > { %p2798_p10 = por %p2797_p4, %p2796_p8 }
  0x62   : > { %p2792_p2 = pneg %p2791_p1 }
  0x64   : > { %p2799_p11 = pnand %p2798_p10, %p2792_p2 }
  0x66   : > { %2802 = shalt.err (!%p2799_p11)
}
  0x67   : > { %2521 = dma.hbm_to_vmem [thread:$0]  (!%p3082_p13), %s3450_s7, 16, %s443_s24, [#allocation11]  }
  0x68   : > { %s2814_s26 = scalar_lea.vmem %s465_s2, 16  ;;  %s2821_s25 = scalar_lea.vmem %s465_s2, 32 }
  0x69   : > { %p2815_p3 = scmp.ne.s32.totalorder %s465_s2, %s2814_s26  ;;  %p2822_p7 = scmp.lt.s32.totalorder %s465_s2, %s465_s2 }
  0x6a   : > { %p2823_p9 = scmp.lt.s32.totalorder %s2821_s25, %s2814_s26 }
  0x6b   : > { %p2817_p5 = pnand %p2815_p3, %p3088_p0 }
  0x6c   : > { %p2824_p12 = por %p2823_p9, %p2822_p7 }
  0x6d   : > { %p2818_p6 = pneg %p2817_p5 }
  0x6f   : > { %p2825_p1 = pnand %p2824_p12, %p2818_p6 }
  0x71   : > { %2828 = shalt.err (!%p2825_p1)
}
  0x72   : > { %2527 = dma.hbm_to_vmem [thread:$0]  (!%p3082_p13), %s3452_s9, 16, %s465_s2, [#allocation14]  }
  0x73   : > { %p3488_p2 = scmp.ne.s32.totalorder %s3482_s27, 0 }
  0x74   : > { %p3489_p8 = scmp.ne.s32.totalorder (!%p3488_p2), %s3483_s28, 0 }
  0x75   : > { %496 = sbr.rel (%p3488_p2) target bundleno = 2303 (0x8ff), region = 76 }
  0x7a   : > { %2880 = dma.done.wait (%p3489_p8), [#allocation5], 16  }
  0x7b   : > { %2882 = vsyncadd (%p3489_p8), [#allocation5], 4294967280 }
  0x7c   : > { %2884 = dma.done.wait (%p3489_p8), [#allocation8], 272  }
  0x7d   : > { %2886 = vsyncadd (%p3489_p8), [#allocation8], 4294967024 }
  0x7e   : > { %2888 = dma.done.wait (%p3489_p8), [#allocation11], 272  }
  0x7f   : > { %2890 = vsyncadd (%p3489_p8), [#allocation11], 4294967024 }
  0x80   : > { %2892 = dma.done.wait (%p3489_p8), [#allocation14], 32  }
  0x81   : > { %2894 = vsyncadd (%p3489_p8), [#allocation14], 4294967264  ;;  %p565_p13 = scmp.lt.s32.totalorder %s2913_s16, 1  ;;  %vm577_vm0 = vcmask 261120   ;;  %v2611_v12 = vld [vmem:[%s3447_s4 + $0x8] sm:$0xff]   ;;  %v2932_v14 = vmov 0.0   ;;  %v593_v49 = vlaneseq }
  0x82   : > { %v2613_v13 = vld [vmem:[%s3446_s3 + $0x8] sm:$0xff]   ;;  %2360 = vmatprep.subr.bf16.mxu1 %v2932_v14  ;;  %2376 = vmatprep.subr.bf16.mxu0 %v2932_v14  ;;  %v2612_v15 = vld [vmem:[%s3447_s4] sm:$0xff]   ;;  %vm2933_vm1 = vmmov 0   ;;  %s2934_s17 = smov 112   ;;  %s2935_s15 = smov 120   ;;  %vm872_vm2 = vcmask 60416  }
  0x83   : > { %s566_s21 = scalar_select %p565_p13, %s2913_s16, 1  ;;  %2361 = vmatpush3.bf16.msra.mxu1 %v2611_v12  ;;  %2377 = vmatpush3.bf16.msra.mxu0 %v2613_v13  ;;  %v2615_v16 = vld [vmem:[%s3446_s3] sm:$0xff]   ;;  %v2614_v31 = vld [vmem:[#allocation9 + $0x8] sm:$0xff]   ;;  %v2937_v50 = vmov 1983009808   ;;  %v594_v54 = vshrl.u32 %v593_v49, 7 }
  0x84   : > { %2362 = vmatprep.subr.bf16.mxu1 %v2932_v14  ;;  %2364 = vmatprep.mubr.msk.bf16.mxu1 %vm2933_vm1, %v2932_v14  ;;  %v2317_v24 = vld [vmem:[#allocation4] ss:$0 sm:$0xff]  ;;  %v2318_v26 = vld [vmem:[#allocation7] ss:$0 sm:$0xff]  ;;  %v2616_v35 = vld [vmem:[#allocation9] sm:$0xff]   ;;  %v735_v51 = vunpack.c.l.s4 %v2937_v50  ;;  %vm1277_vm3 = vcmask 64512  }
  0x85   : > { %s2272_s27 = sshll.u32 %s566_s21, 3  ;;  %2378 = vmatprep.subr.bf16.mxu0 %v2932_v14  ;;  %2380 = vmatprep.mubr.msk.bf16.mxu0 %vm2933_vm1, %v2932_v14  ;;  %s2936_s21 = smov 104   ;;  %v2938_v52 = vmov 1934713408   ;;  %vm1513_vm4 = vcmask 1043456   ;;  %vm2052_vm5 = vcmask 523264  }
  0x86   : > { %s568_s29 = scalar_lea.vmem %s3443_s0, %s2272_s27  ;;  %v767_v53 = vunpack.c.l.s4 %v2938_v52  ;;  %v736_v55 = vunpack.c.0.s8 %v735_v51  ;;  %s3490_s20 = sld [smem:[#allocation30_spill]] }
  0x87   : > { %v3170_v0 = vld [vmem:[%s568_s29] sm:$0xff]  ;;  %2363 = vmatpush3.bf16.msra.mxu1 %v2612_v15  ;;  %2379 = vmatpush3.bf16.msra.mxu0 %v2615_v16  ;;  %s2314_s29 = sshll.u32 %s2913_s16, 7  ;;  %p3491_p4 = scmp.ne.s32.totalorder %s3478_s23, 0 }
  0x88   : > { %v578_v1 = vsel %vm577_vm0, %v3170_v0, 0.0  ;;  %2368 = vmatprep.subr.bf16.mxu1 %v2932_v14  ;;  %2390 = vmatprep.subr.bf16.mxu0 %v2932_v14  ;;  %v768_v58 = vunpack.c.0.s8 %v767_v53  ;;  %v3216_v59 = vsub.s32 %v736_v55, %v594_v54  ;;  %s2939_s25 = smov [#allocation16]  }
  0x89   : > { %579 = vadd.xlane.f32.xlu0 %v578_v1 }
  0x8c   : > { %s3396_s22 = scalar_lea.hbm %s3490_s20, %s2314_s29 }
  0x8d   : > { %1036 = vadd.xlane.f32.xlu0 %v578_v1 }
 0x112   : > { %v580_v2 = vpop.xlane.xlu0 %579 }
 0x113   : > { %v582_v3 = vmul.f32 0.03125, %v580_v2 }
 0x115   : > { %v583_v4 = vsub.f32 %v3170_v0, %v582_v3  ;;  %v3218_v3 = vsub.s32 %v768_v58, %v594_v54 }
 0x116   : > { %v1037_v5 = vpop.xlane.xlu0 %1036 }
 0x117   : > { %v1039_v6 = vmul.f32 0.03125, %v1037_v5  ;;  %v584_v7 = vmul.f32 %v583_v4, %v583_v4 }
 0x119   : > { %v1040_v8 = vsub.f32 %v3170_v0, %v1039_v6  ;;  %v585_v9 = vsel %vm577_vm0, %v584_v7, 0.0 }
 0x11a   : > { %586 = vadd.xlane.f32.xlu1 %v585_v9 }
 0x11b   : > { %v1041_v10 = vmul.f32 %v1040_v8, %v1040_v8 }
 0x11d   : > { %v1042_v11 = vsel %vm577_vm0, %v1041_v10, 0.0 }
 0x11e   : > { %1043 = vadd.xlane.f32.xlu1 %v1042_v11 }
 0x1a3   : > { %v587_v17 = vpop.xlane.xlu1 %586 }
 0x1a4   : > { %v588_v18 = vmul.f32 0.03125, %v587_v17 }
 0x1a6   : > { %v589_v19 = vadd.f32 1e-05, %v588_v18 }
 0x1a7   : > { %v1044_v20 = vpop.xlane.xlu1 %1043 }
 0x1a8   : > { %2623 = vrsqrt.f32 %v589_v19  ;;  %v1045_v21 = vmul.f32 0.03125, %v1044_v20 }
 0x1aa   : > { %v1046_v22 = vadd.f32 1e-05, %v1045_v21 }
 0x1ac   : > { %2625 = vrsqrt.f32 %v1046_v22 }
 0x1b5   : > { %v2624_v23 = vpop.eup %2623 }
 0x1b6   : > { %v591_v25 = vmul.f32 %v2624_v23, %v583_v4 }
 0x1b8   : > { %v598_v27 = vmul.f32 %v2317_v24, %v591_v25 }
 0x1b9   : > { %v2626_v28 = vpop.eup %2625 }
 0x1ba   : > { %v605_v29 = vadd.f32 %v2318_v26, %v598_v27  ;;  %v1048_v30 = vmul.f32 %v2626_v28, %v1040_v8 }
 0x1bc   : > { %v606_v32 = vpack.c.bf16 %v605_v29, %v605_v29  ;;  %v1055_v33 = vmul.f32 %v2317_v24, %v1048_v30 }
 0x1be   : > { %2365 = vmatmul.mubr.msk.bf16.vlgmr.msra.gmra.mxu1 %vm577_vm0, %v606_v32  ;;  %v1062_v34 = vadd.f32 %v2318_v26, %v1055_v33 }
 0x1bf   : > { %2369 = vmatpush3.bf16.msra.mxu1 %v2614_v31  ;;  %2372 = vmatprep.mubr.msk.bf16.mxu1 %vm2933_vm1, %v2932_v14 }
 0x1c0   : > { %2370 = vmatprep.subr.bf16.mxu1 %v2932_v14  ;;  %v1063_v36 = vpack.c.bf16 %v1062_v34, %v1062_v34 }
 0x1c2   : > { %2381 = vmatmul.mubr.msk.bf16.vlgmr.msra.gmra.mxu0 %vm577_vm0, %v1063_v36 }
 0x1c3   : > { %2371 = vmatpush3.bf16.msra.mxu1 %v2616_v35  ;;  %2392 = vmatprep.mubr.msk.bf16.mxu0 %vm2933_vm1, %v2932_v14 }
 0x1c4   : > { %2384 = vmatprep.subr.bf16.mxu1 %v2932_v14 }
 0x1c6   : > { %2373 = vmatmul.mubr.msk.bf16.vlgmr.msra.gmra.mxu1 %vm577_vm0, %v606_v32 }
 0x1c7   : > { %2386 = vmatprep.mubr.msk.bf16.mxu1 %vm2933_vm1, %v2932_v14 }
 0x27e   : > { %v660_v37 = vpop.f32.mrf.mxu1 }
 0x27f   : > { %726 = vrot.lane.b32.xlu1 %v660_v37, %s2934_s17  ;;  %723 = vrot.lane.b32.xlu0 %v660_v37, %s2935_s15 }
 0x280   : > { %v2366_v38 = vpop.f32.mrf.mxu1 }
 0x282   : > { %v663_v39 = vpop.f32.mrf.mxu1  ;;  %v1117_v40 = vpop.f32.mrf.mxu0 }
 0x283   : > { %729 = vrot.lane.b32.xlu1 %v660_v37, %s2936_s21  ;;  %1127 = vrot.lane.b32.xlu0 %v1117_v40, %s2934_s17 }
 0x284   : > { %v2367_v41 = vpop.f32.mrf.mxu1  ;;  %v2382_v42 = vpop.f32.mrf.mxu0 }
 0x286   : > { %v3211_v43 = vpop.f32.mrf.mxu1  ;;  %v1120_v44 = vpop.f32.mrf.mxu0 }
 0x287   : > { %1124 = vrot.lane.b32.xlu1 %v1117_v40, %s2935_s15  ;;  %878 = vrot.lane.b32.xlu0 %v3211_v43, %s2935_s15 }
 0x288   : > { %v2374_v45 = vpop.f32.mrf.mxu1  ;;  %v2383_v46 = vpop.f32.mrf.mxu0 }
 0x28a   : > { %v719_v47 = vpop.f32.mrf.mxu1 }
 0x28b   : > { %1130 = vrot.lane.b32.xlu1 %v1117_v40, %s2936_s21  ;;  %884 = vrot.lane.b32.xlu0 %v3211_v43, %s2936_s21  ;;  %s562_s21 = sand.u32 1, %s2905_s30  }
 0x28c   : > { %v2375_v48 = vpop.f32.mrf.mxu1  ;;  %s2271_s27 = sshll.u32 %s562_s21, 3  ;;  %s2099_s16 = scalar_lea.sflag [#allocation6], %s562_s21 }
 0x28d   : > { %s564_s28 = scalar_lea.vmem [#allocation16], %s2271_s27 }
 0x28e   : > { %s2113_s2 = sshll.u32 %s564_s28, 4  ;;  %s3398_s2 = int_to_ptr.vmem [resolvable:$true] %s2113_s2 }
 0x28f   : > { %881 = vrot.lane.b32.xlu1 %v3211_v43, %s2934_s17  ;;  %s2829_s26 = scalar_lea.vmem %s3398_s2, 128  ;;  %s2833_s17 = sshll.u32 %s2939_s25, 4  ;;  %s2834_s17 = int_to_ptr.vmem [resolvable:$false] %s2833_s17 }
 0x290   : > { %p2830_p0 = scmp.ne.s32.totalorder %s3398_s2, %s2829_s26  ;;  %s2835_s15 = scalar_lea.vmem %s2834_s17, 256 }
 0x291   : > { %p2836_p3 = scmp.lt.s32.totalorder %s3398_s2, %s2834_s17  ;;  %p2837_p5 = scmp.lt.s32.totalorder %s2835_s15, %s2829_s26 }
 0x292   : > { %p2831_p10 = pnand %p2830_p0, %p3491_p4 }
 0x293   : > { %p2838_p6 = por %p2837_p5, %p2836_p3 }
 0x294   : > { %p2832_p11 = pneg %p2831_p10 }
 0x296   : > { %p2839_p7 = pnand %p2838_p6, %p2832_p11 }
 0x2f1   : > { %v727_v56 = vpop.permute.xlu1 %726  ;;  %v724_v57 = vpop.permute.xlu0 %723 }
 0x2f2   : > { %v732_v60 = vcombine.low %v660_v37, %v727_v56  ;;  %v733_v61 = vcombine.high %v660_v37, %v727_v56 }
 0x2f4   : > { %v740_v4 = vrot.slane %v732_v60, %v3216_v59  ;;  %v747_v5 = vrot.slane %v733_v61, %v3216_v59 }
 0x2f5   : > { %v730_v62 = vpop.permute.xlu1 %729  ;;  %v1128_v63 = vpop.permute.xlu0 %1127 }
 0x2f6   : > { %v748_v1 = vcombine.low %v724_v57, %v730_v62  ;;  %v749_v2 = vcombine.high %v724_v57, %v730_v62  ;;  %v1133_v15 = vcombine.low %v1117_v40, %v1128_v63  ;;  %v1134_v16 = vcombine.high %v1117_v40, %v1128_v63 }
 0x2f8   : > { %v756_v6 = vrot.slane %v748_v1, %v3216_v59  ;;  %v763_v7 = vrot.slane %v749_v2, %v3216_v59  ;;  %v1141_v27 = vrot.slane %v1133_v15, %v3216_v59  ;;  %v1148_v28 = vrot.slane %v1134_v16, %v3216_v59 }
 0x2f9   : > { %v1125_v8 = vpop.permute.xlu1 %1124  ;;  %v3224_v9 = vpop.permute.xlu0 %878 }
 0x2fa   : > { %v764_v10 = vcombine.low %v740_v4, %v756_v6  ;;  %v765_v11 = vcombine.high %v740_v4, %v756_v6  ;;  %v780_v12 = vcombine.low %v747_v5, %v763_v7  ;;  %v781_v13 = vcombine.high %v747_v5, %v763_v7 }
 0x2fc   : > { %v772_v17 = vrot.slane %v764_v10, %v3218_v3  ;;  %v779_v18 = vrot.slane %v765_v11, %v3218_v3  ;;  %v788_v19 = vrot.slane %v780_v12, %v3218_v3  ;;  %v795_v20 = vrot.slane %v781_v13, %v3218_v3 }
 0x2fd   : > { %v1131_v21 = vpop.permute.xlu1 %1130  ;;  %v885_v26 = vpop.permute.xlu0 %884 }
 0x2fe   : > { %v800_v22 = vcombine.low %v772_v17, %v779_v18  ;;  %v2279_v23 = vcombine.high %v772_v17, %v779_v18  ;;  %v816_v24 = vcombine.low %v788_v19, %v795_v20  ;;  %v2280_v25 = vcombine.high %v788_v19, %v795_v20 }
 0x2ff   : > { %v1149_v29 = vcombine.low %v1125_v8, %v1131_v21  ;;  %v1150_v30 = vcombine.high %v1125_v8, %v1131_v21  ;;  %v903_v37 = vcombine.low %v3224_v9, %v885_v26  ;;  %v904_v38 = vcombine.high %v3224_v9, %v885_v26 }
 0x300   : > { %v807_v31 = vrot.slane %v800_v22, %v3216_v59  ;;  %v815_v32 = vrot.slane %v2279_v23, %v3216_v59  ;;  %v823_v33 = vrot.slane %v816_v24, %v3216_v59  ;;  %v831_v34 = vrot.slane %v2280_v25, %v3216_v59 }
 0x301   : > { %v1157_v35 = vrot.slane %v1149_v29, %v3216_v59  ;;  %v1164_v36 = vrot.slane %v1150_v30, %v3216_v59  ;;  %v882_v2 = vpop.permute.xlu1 %881  ;;  %v911_v15 = vrot.slane %v903_v37, %v3216_v59  ;;  %v918_v16 = vrot.slane %v904_v38, %v3216_v59 }
 0x302   : > { %v832_v39 = vcombine.low %v807_v31, %v815_v32  ;;  %v833_v40 = vcombine.high %v807_v31, %v815_v32  ;;  %v848_v41 = vcombine.low %v823_v33, %v831_v34  ;;  %v849_v42 = vcombine.high %v823_v33, %v831_v34 }
 0x303   : > { %v1165_v44 = vcombine.low %v1141_v27, %v1157_v35  ;;  %v1166_v45 = vcombine.high %v1141_v27, %v1157_v35  ;;  %v1181_v46 = vcombine.low %v1148_v28, %v1164_v36  ;;  %v1182_v47 = vcombine.high %v1148_v28, %v1164_v36 }
 0x304   : > { %v840_v48 = vrot.slane %v832_v39, %v3218_v3  ;;  %v847_v49 = vrot.slane %v833_v40, %v3218_v3  ;;  %v856_v50 = vrot.slane %v848_v41, %v3218_v3  ;;  %v863_v51 = vrot.slane %v849_v42, %v3218_v3 }
 0x305   : > { %v1173_v52 = vrot.slane %v1165_v44, %v3218_v3  ;;  %v1180_v53 = vrot.slane %v1166_v45, %v3218_v3  ;;  %v1189_v54 = vrot.slane %v1181_v46, %v3218_v3  ;;  %v1196_v55 = vrot.slane %v1182_v47, %v3218_v3 }
 0x306   : > { %v864_v56 = vcombine.low %v840_v48, %v856_v50  ;;  %v865_v57 = vcombine.high %v840_v48, %v856_v50  ;;  %v866_v58 = vcombine.low %v847_v49, %v863_v51  ;;  %v867_v60 = vcombine.high %v847_v49, %v863_v51 }
 0x307   : > { %v1201_v61 = vcombine.low %v1173_v52, %v1180_v53  ;;  %v2286_v62 = vcombine.high %v1173_v52, %v1180_v53  ;;  %v1217_v63 = vcombine.low %v1189_v54, %v1196_v55  ;;  %v2287_v1 = vcombine.high %v1189_v54, %v1196_v55 }
 0x308   : > { %v868_v4 = vpack.c.bf16 %v864_v56, %v864_v56  ;;  %v869_v5 = vpack.c.bf16 %v865_v57, %v865_v57  ;;  %v870_v6 = vpack.c.bf16 %v866_v58, %v866_v58  ;;  %v871_v7 = vpack.c.bf16 %v867_v60, %v867_v60 }
 0x309   : > { %v1208_v8 = vrot.slane %v1201_v61, %v3216_v59  ;;  %v1216_v9 = vrot.slane %v2286_v62, %v3216_v59  ;;  %v1224_v10 = vrot.slane %v1217_v63, %v3216_v59  ;;  %v1232_v11 = vrot.slane %v2287_v1, %v3216_v59 }
 0x30a   : > { %873 = vst.msk [vmem:[#allocation2] sm:$0xf] %vm872_vm2, %v868_v4  ;;  %874 = vst.msk [vmem:[#allocation2 + $0x4] sm:$0xf] %vm872_vm2, %v869_v5  ;;  %v887_v12 = vcombine.low %v3211_v43, %v882_v2  ;;  %v888_v13 = vcombine.high %v3211_v43, %v882_v2 }
 0x30b   : > { %875 = vst.msk [vmem:[#allocation2 + $0x8] sm:$0xf] %vm872_vm2, %v870_v6  ;;  %876 = vst.msk [vmem:[#allocation2 + $0xc] sm:$0xf] %vm872_vm2, %v871_v7  ;;  %v1233_v19 = vcombine.low %v1208_v8, %v1216_v9  ;;  %v1249_v20 = vcombine.low %v1224_v10, %v1232_v11  ;;  %v1234_v36 = vcombine.high %v1208_v8, %v1216_v9 }
 0x30c   : > { %v895_v17 = vrot.slane %v887_v12, %v3216_v59  ;;  %v902_v18 = vrot.slane %v888_v13, %v3216_v59  ;;  %v1250_v44 = vcombine.high %v1224_v10, %v1232_v11 }
 0x30d   : > { %v1241_v30 = vrot.slane %v1233_v19, %v3218_v3  ;;  %v1257_v31 = vrot.slane %v1249_v20, %v3218_v3  ;;  %v1248_v58 = vrot.slane %v1234_v36, %v3218_v3 }
 0x30e   : > { %v919_v21 = vcombine.low %v895_v17, %v911_v15  ;;  %v920_v22 = vcombine.high %v895_v17, %v911_v15  ;;  %v935_v23 = vcombine.low %v902_v18, %v918_v16  ;;  %v936_v24 = vcombine.high %v902_v18, %v918_v16 }
 0x30f   : > { %v1265_v45 = vcombine.low %v1241_v30, %v1257_v31  ;;  %v1266_v46 = vcombine.high %v1241_v30, %v1257_v31  ;;  %v1264_v60 = vrot.slane %v1250_v44, %v3218_v3 }
 0x310   : > { %v927_v25 = vrot.slane %v919_v21, %v3218_v3  ;;  %v934_v26 = vrot.slane %v920_v22, %v3218_v3  ;;  %v943_v43 = vrot.slane %v935_v23, %v3218_v3  ;;  %v950_v27 = vrot.slane %v936_v24, %v3218_v3 }
 0x311   : > { %v1273_v28 = vld [vmem:[#allocation2] sm:$0xf]  ;;  %v1274_v29 = vld [vmem:[#allocation2 + $0x4] sm:$0xf]  ;;  %v1269_v56 = vpack.c.bf16 %v1265_v45, %v1265_v45  ;;  %v1270_v57 = vpack.c.bf16 %v1266_v46, %v1266_v46  ;;  %v1268_v9 = vcombine.high %v1248_v58, %v1264_v60 }
 0x312   : > { %v955_v32 = vcombine.low %v927_v25, %v934_v26  ;;  %v2281_v33 = vcombine.high %v927_v25, %v934_v26  ;;  %v971_v34 = vcombine.low %v943_v43, %v950_v27  ;;  %v2282_v35 = vcombine.high %v943_v43, %v950_v27  ;;  %v1275_v54 = vld [vmem:[#allocation2 + $0x8] sm:$0xf]  ;;  %v1276_v55 = vld [vmem:[#allocation2 + $0xc] sm:$0xf] }
 0x313   : > { %v1282_v37 = vsel %vm1277_vm3, %v1273_v28, 0  ;;  %v1328_v38 = vsel %vm1277_vm3, %v1274_v29, 0  ;;  %v1374_v2 = vsel %vm1277_vm3, %v1275_v54, 0  ;;  %v1420_v4 = vsel %vm1277_vm3, %v1276_v55, 0 }
 0x314   : > { %v962_v39 = vrot.slane %v955_v32, %v3216_v59  ;;  %v970_v40 = vrot.slane %v2281_v33, %v3216_v59  ;;  %v978_v41 = vrot.slane %v971_v34, %v3216_v59  ;;  %v986_v42 = vrot.slane %v2282_v35, %v3216_v59  ;;  %2385 = vmatpush3.bf16.xpose.msra.mxu1 %v1282_v37 }
 0x315   : > { %2391 = vmatpush3.bf16.xpose.msra.mxu0 %v1328_v38  ;;  %2396 = vmatprep.subr.bf16.mxu1 %v2932_v14  ;;  %v1272_v11 = vpack.c.bf16 %v1268_v9, %v1268_v9 }
 0x316   : > { %v987_v47 = vcombine.low %v962_v39, %v970_v40  ;;  %v988_v48 = vcombine.high %v962_v39, %v970_v40  ;;  %v1003_v49 = vcombine.low %v978_v41, %v986_v42  ;;  %v1004_v50 = vcombine.high %v978_v41, %v986_v42  ;;  %2402 = vmatprep.subr.bf16.mxu0 %v2932_v14 }
 0x318   : > { %v995_v51 = vrot.slane %v987_v47, %v3218_v3  ;;  %v1002_v52 = vrot.slane %v988_v48, %v3218_v3  ;;  %v1011_v53 = vrot.slane %v1003_v49, %v3218_v3  ;;  %v1018_v59 = vrot.slane %v1004_v50, %v3218_v3 }
 0x319   : > { %v1267_v3 = vcombine.low %v1248_v58, %v1264_v60 }
 0x31a   : > { %v1019_v61 = vcombine.low %v995_v51, %v1011_v53  ;;  %v1020_v62 = vcombine.high %v995_v51, %v1011_v53  ;;  %v1021_v63 = vcombine.low %v1002_v52, %v1018_v59  ;;  %v1022_v1 = vcombine.high %v1002_v52, %v1018_v59 }
 0x31b   : > { %2387 = vmatmul.mubr.msk.bf16.vlgmr.msra.gmra.mxu1 %vm1277_vm3, %v1269_v56  ;;  %v1271_v10 = vpack.c.bf16 %v1267_v3, %v1267_v3 }
 0x31c   : > { %v1023_v5 = vpack.c.bf16 %v1019_v61, %v1019_v61  ;;  %v1024_v6 = vpack.c.bf16 %v1020_v62, %v1020_v62  ;;  %v1025_v7 = vpack.c.bf16 %v1021_v63, %v1021_v63  ;;  %v1026_v8 = vpack.c.bf16 %v1022_v1, %v1022_v1  ;;  %2393 = vmatmul.mubr.msk.bf16.vlgmr.msra.gmra.mxu0 %vm1277_vm3, %v1270_v57 }
 0x31d   : > { %2397 = vmatpush3.bf16.xpose.msra.mxu1 %v1374_v2  ;;  %2403 = vmatpush3.bf16.xpose.msra.mxu0 %v1420_v4  ;;  %v1703_v2 = vld [vmem:[#allocation10] sm:$0xf]  ;;  %v1704_v4 = vld [vmem:[#allocation10 + $0x4] sm:$0xf] }
 0x31e   : > { %1027 = vst.msk [vmem:[#allocation3] sm:$0xf] %vm872_vm2, %v1023_v5  ;;  %1028 = vst.msk [vmem:[#allocation3 + $0x4] sm:$0xf] %vm872_vm2, %v1024_v6  ;;  %2398 = vmatprep.mubr.msk.bf16.mxu1 %vm2933_vm1, %v2932_v14  ;;  %2404 = vmatprep.mubr.msk.bf16.mxu0 %vm2933_vm1, %v2932_v14  ;;  %v1711_v5 = vsel %vm1513_vm4, %v1703_v2, 0  ;;  %v1757_v6 = vsel %vm1513_vm4, %v1704_v4, 0 }
 0x31f   : > { %1029 = vst.msk [vmem:[#allocation3 + $0x8] sm:$0xf] %vm872_vm2, %v1025_v7  ;;  %1030 = vst.msk [vmem:[#allocation3 + $0xc] sm:$0xf] %vm872_vm2, %v1026_v8  ;;  %2408 = vmatprep.subr.bf16.mxu1 %v2932_v14  ;;  %2414 = vmatprep.subr.bf16.mxu0 %v2932_v14 }
 0x324   : > { %2399 = vmatmul.mubr.msk.bf16.vlgmr.msra.gmra.mxu1 %vm1277_vm3, %v1271_v10  ;;  %2405 = vmatmul.mubr.msk.bf16.vlgmr.msra.gmra.mxu0 %vm1277_vm3, %v1272_v11 }
 0x325   : > { %v1506_v12 = vld [vmem:[#allocation3] sm:$0xf]  ;;  %v1507_v13 = vld [vmem:[#allocation3 + $0x4] sm:$0xf]  ;;  %2410 = vmatprep.mubr.msk.bf16.mxu1 %vm2933_vm1, %v2932_v14  ;;  %2416 = vmatprep.mubr.msk.bf16.mxu0 %vm2933_vm1, %v2932_v14 }
 0x326   : > { %v1515_v15 = vsel %vm1513_vm4, %v1506_v12, 0  ;;  %v1561_v16 = vsel %vm1513_vm4, %v1507_v13, 0  ;;  %v1508_v50 = vld [vmem:[#allocation3 + $0x8] sm:$0xf]  ;;  %v1509_v59 = vld [vmem:[#allocation3 + $0xc] sm:$0xf] }
 0x327   : > { %2409 = vmatpush3.bf16.msra.mxu1 %v1515_v15  ;;  %2415 = vmatpush3.bf16.msra.mxu0 %v1561_v16  ;;  %v1607_v56 = vsel %vm1513_vm4, %v1508_v50, 0  ;;  %v1653_v57 = vsel %vm1513_vm4, %v1509_v59, 0  ;;  %v1705_v12 = vld [vmem:[#allocation10 + $0x8] sm:$0xf] }
 0x328   : > { %2420 = vmatprep.subr.bf16.mxu1 %v2932_v14  ;;  %2426 = vmatprep.subr.bf16.mxu0 %v2932_v14 }
 0x3db   : > { %v1318_v17 = vpop.f32.mrf.mxu1 }
 0x3dc   : > { %v1364_v18 = vpop.f32.mrf.mxu0  ;;  %v1462_v19 = vsel %vm1277_vm3, %v1318_v17, -inf }
 0x3dd   : > { %v1465_v20 = vsel %vm1277_vm3, %v1364_v18, -inf  ;;  %1463 = vmax.xlane.f32.xlu1 %v1462_v19  ;;  %v2388_v21 = vpop.f32.mrf.mxu1 }
 0x3de   : > { %v2394_v22 = vpop.f32.mrf.mxu0  ;;  %1466 = vmax.xlane.f32.xlu0 %v1465_v20 }
 0x3df   : > { %v1321_v23 = vpop.f32.mrf.mxu1  ;;  %v1803_v22 = vsel %vm1513_vm4, %v1705_v12, 0  ;;  %v2617_v12 = vld [vmem:[%s3453_s10 + $0x8] sm:$0xff]  }
 0x3e0   : > { %v1367_v24 = vpop.f32.mrf.mxu0 }
 0x3e1   : > { %v2389_v25 = vpop.f32.mrf.mxu1 }
 0x3e2   : > { %v2395_v26 = vpop.f32.mrf.mxu0 }
 0x3e4   : > { %v1410_v43 = vpop.f32.mrf.mxu1  ;;  %v1456_v27 = vpop.f32.mrf.mxu0 }
 0x3e5   : > { %v1468_v28 = vsel %vm1277_vm3, %v1410_v43, -inf  ;;  %v1471_v33 = vsel %vm1277_vm3, %v1456_v27, -inf }
 0x3e6   : > { %v2406_v29 = vpop.f32.mrf.mxu0  ;;  %1469 = vmax.xlane.f32.xlu0 %v1468_v28  ;;  %v2400_v30 = vpop.f32.mrf.mxu1 }
 0x3e8   : > { %v1413_v31 = vpop.f32.mrf.mxu1  ;;  %v1459_v32 = vpop.f32.mrf.mxu0 }
 0x3ea   : > { %v2407_v34 = vpop.f32.mrf.mxu0  ;;  %1472 = vmax.xlane.f32.xlu0 %v1471_v33  ;;  %v2401_v35 = vpop.f32.mrf.mxu1 }
 0x466   : > { %v1464_v36 = vpop.xlane.xlu1 %1463 }
 0x467   : > { %v1467_v37 = vpop.xlane.xlu0 %1466  ;;  %v1474_v38 = vsub.f32 %v1318_v17, %v1464_v36  ;;  %v1706_v17 = vld [vmem:[#allocation10 + $0xc] sm:$0xf] }
 0x468   : > { %v1475_v39 = vsub.f32 %v1364_v18, %v1467_v37  ;;  %v1849_v25 = vsel %vm1513_vm4, %v1706_v17, 0 }
 0x469   : > { %v1478_v40 = vmul.f32 1.442695, %v1474_v38 }
 0x46a   : > { %v1480_v41 = vmul.f32 1.442695, %v1475_v39 }
 0x46b   : > { %2627 = vpow2.f32 %v1478_v40 }
 0x46c   : > { %2629 = vpow2.f32 %v1480_v41 }
 0x46f   : > { %v1470_v42 = vpop.xlane.xlu0 %1469 }
 0x470   : > { %v1476_v44 = vsub.f32 %v1410_v43, %v1470_v42 }
 0x472   : > { %v1482_v45 = vmul.f32 1.442695, %v1476_v44 }
 0x473   : > { %v1473_v46 = vpop.xlane.xlu0 %1472 }
 0x474   : > { %2631 = vpow2.f32 %v1482_v45  ;;  %v1477_v47 = vsub.f32 %v1456_v27, %v1473_v46 }
 0x476   : > { %v1484_v48 = vmul.f32 1.442695, %v1477_v47 }
 0x478   : > { %v2628_v49 = vpop.eup %2627  ;;  %2633 = vpow2.f32 %v1484_v48 }
 0x479   : > { %v2630_v51 = vpop.eup %2629  ;;  %v1486_v52 = vsel %vm1277_vm3, %v2628_v49, 0.0  ;;  %v1502_v53 = vpack.c.bf16 %v2628_v49, %v2628_v49 }
 0x47a   : > { %1487 = vadd.xlane.f32.xlu1 %v1486_v52  ;;  %v1489_v54 = vsel %vm1277_vm3, %v2630_v51, 0.0  ;;  %v1503_v55 = vpack.c.bf16 %v2630_v51, %v2630_v51 }
 0x47b   : > { %1490 = vadd.xlane.f32.xlu0 %v1489_v54  ;;  %2411 = vmatmul.mubr.msk.bf16.vlgmr.msra.gmra.mxu1 %vm1277_vm3, %v1502_v53 }
 0x47c   : > { %2417 = vmatmul.mubr.msk.bf16.vlgmr.msra.gmra.mxu0 %vm1277_vm3, %v1503_v55  ;;  %2421 = vmatpush3.bf16.msra.mxu1 %v1607_v56 }
 0x47d   : > { %2427 = vmatpush3.bf16.msra.mxu0 %v1653_v57  ;;  %2422 = vmatprep.mubr.msk.bf16.mxu1 %vm2933_vm1, %v2932_v14 }
 0x47e   : > { %2428 = vmatprep.mubr.msk.bf16.mxu0 %vm2933_vm1, %v2932_v14  ;;  %2432 = vmatprep.subr.bf16.mxu1 %v2932_v14 }
 0x47f   : > { %2438 = vmatprep.subr.bf16.mxu0 %v2932_v14 }
 0x481   : > { %v2632_v58 = vpop.eup %2631 }
 0x482   : > { %v1492_v60 = vsel %vm1277_vm3, %v2632_v58, 0.0  ;;  %v1504_v61 = vpack.c.bf16 %v2632_v58, %v2632_v58 }
 0x483   : > { %1493 = vadd.xlane.f32.xlu1 %v1492_v60 }
 0x484   : > { %2423 = vmatmul.mubr.msk.bf16.vlgmr.msra.gmra.mxu1 %vm1277_vm3, %v1504_v61  ;;  %v2300_v61 = vld [vmem:[#allocation12] ss:$0 sm:$0xff] }
 0x485   : > { %v2634_v62 = vpop.eup %2633  ;;  %2434 = vmatprep.mubr.msk.bf16.mxu1 %vm2933_vm1, %v2932_v14  ;;  %2433 = vmatpush3.bf16.msra.mxu1 %v1711_v5 }
 0x486   : > { %v1495_v63 = vsel %vm1277_vm3, %v2634_v62, 0.0  ;;  %v1505_v1 = vpack.c.bf16 %v2634_v62, %v2634_v62  ;;  %2444 = vmatprep.subr.bf16.mxu1 %v2932_v14 }
 0x487   : > { %1496 = vadd.xlane.f32.xlu0 %v1495_v63 }
 0x488   : > { %2429 = vmatmul.mubr.msk.bf16.vlgmr.msra.gmra.mxu0 %vm1277_vm3, %v1505_v1 }
 0x489   : > { %2440 = vmatprep.mubr.msk.bf16.mxu0 %vm2933_vm1, %v2932_v14  ;;  %2439 = vmatpush3.bf16.msra.mxu0 %v1757_v6 }
 0x48a   : > { %2450 = vmatprep.subr.bf16.mxu0 %v2932_v14 }
 0x503   : > { %v1488_v7 = vpop.xlane.xlu1 %1487 }
 0x504   : > { %v1491_v8 = vpop.xlane.xlu0 %1490  ;;  %2635 = vrcp.f32 %v1488_v7 }
 0x505   : > { %2637 = vrcp.f32 %v1491_v8 }
 0x50c   : > { %v1494_v3 = vpop.xlane.xlu1 %1493 }
 0x50d   : > { %2639 = vrcp.f32 %v1494_v3 }
 0x510   : > { %v1497_v9 = vpop.xlane.xlu0 %1496 }
 0x511   : > { %v2636_v10 = vpop.eup %2635  ;;  %2641 = vrcp.f32 %v1497_v9 }
 0x512   : > { %v2638_v13 = vpop.eup %2637 }
 0x51a   : > { %v2640_v28 = vpop.eup %2639 }
 0x51e   : > { %v2642_v33 = vpop.eup %2641 }
 0x53b   : > { %v1551_v11 = vpop.f32.mrf.mxu1 }
 0x53c   : > { %v1695_v15 = vmul.f32 %v2636_v10, %v1551_v11  ;;  %v1597_v16 = vpop.f32.mrf.mxu0 }
 0x53d   : > { %v1696_v18 = vmul.f32 %v2638_v13, %v1597_v16  ;;  %v2412_v19 = vpop.f32.mrf.mxu1 }
 0x53e   : > { %v1699_v20 = vpack.c.bf16 %v1695_v15, %v1695_v15  ;;  %v2418_v21 = vpop.f32.mrf.mxu0 }
 0x53f   : > { %v1700_v23 = vpack.c.bf16 %v1696_v18, %v1696_v18  ;;  %v1554_v24 = vpop.f32.mrf.mxu1  ;;  %v2301_v18 = vld [vmem:[#allocation13] ss:$0 sm:$0xff] }
 0x540   : > { %v1600_v26 = vpop.f32.mrf.mxu0  ;;  %2435 = vmatmul.mubr.msk.bf16.vlgmr.msra.gmra.mxu1 %vm1277_vm3, %v1699_v20  ;;  %v2302_v20 = vld [vmem:[#allocation15] ss:$0 sm:$0xff]  ;;  %v2619_v24 = vld [vmem:[%s3455_s12 + $0x18] sm:$0xff]  }
 0x541   : > { %2441 = vmatmul.mubr.msk.bf16.vlgmr.msra.gmra.mxu0 %vm1277_vm3, %v1700_v23  ;;  %v2413_v43 = vpop.f32.mrf.mxu1  ;;  %2445 = vmatpush3.bf16.msra.mxu1 %v1803_v22  ;;  %v2621_v26 = vld [vmem:[%s3455_s12 + $0x8] sm:$0xff]  }
 0x542   : > { %v2419_v27 = vpop.f32.mrf.mxu0  ;;  %2451 = vmatpush3.bf16.msra.mxu0 %v1849_v25  ;;  %2446 = vmatprep.mubr.msk.bf16.mxu1 %vm2933_vm1, %v2932_v14  ;;  %v2620_v25 = vld [vmem:[%s3455_s12 + $0x10] sm:$0xff]   ;;  %v2622_v43 = vld [vmem:[%s3455_s12] sm:$0xff]  }
 0x543   : > { %2452 = vmatprep.mubr.msk.bf16.mxu0 %vm2933_vm1, %v2932_v14  ;;  %2456 = vmatprep.subr.bf16.mxu1 %v2932_v14  ;;  %v2303_v27 = vld [vmem:[%s3454_s11] ss:$0 sm:$0xff] }
 0x544   : > { %v1643_v29 = vpop.f32.mrf.mxu1  ;;  %2464 = vmatprep.subr.bf16.mxu0 %v2932_v14 }
 0x545   : > { %v1697_v30 = vmul.f32 %v2640_v28, %v1643_v29 }
 0x546   : > { %v2424_v31 = vpop.f32.mrf.mxu1 }
 0x547   : > { %v1701_v32 = vpack.c.bf16 %v1697_v30, %v1697_v30 }
 0x548   : > { %v1646_v34 = vpop.f32.mrf.mxu1  ;;  %v1689_v35 = vpop.f32.mrf.mxu0 }
 0x549   : > { %v1698_v36 = vmul.f32 %v2642_v33, %v1689_v35  ;;  %2447 = vmatmul.mubr.msk.bf16.vlgmr.msra.gmra.mxu1 %vm1277_vm3, %v1701_v32 }
 0x54a   : > { %v2425_v37 = vpop.f32.mrf.mxu1  ;;  %v2430_v38 = vpop.f32.mrf.mxu0  ;;  %2460 = vmatprep.mubr.msk.bf16.mxu1 %vm2933_vm1, %v2932_v14  ;;  %2457 = vmatpush3.bf16.msra.mxu1 %v2617_v12 }
 0x54b   : > { %v1702_v39 = vpack.c.bf16 %v1698_v36, %v1698_v36  ;;  %2458 = vmatprep.subr.bf16.mxu1 %v2932_v14 }
 0x54c   : > { %v1692_v40 = vpop.f32.mrf.mxu0 }
 0x54d   : > { %2453 = vmatmul.mubr.msk.bf16.vlgmr.msra.gmra.mxu0 %vm1277_vm3, %v1702_v39 }
 0x54e   : > { %v2431_v41 = vpop.f32.mrf.mxu0  ;;  %2472 = vmatprep.mubr.msk.bf16.mxu0 %vm2933_vm1, %v2932_v14  ;;  %2465 = vmatpush3.bf16.msra.mxu0 %v2619_v24 }
 0x54f   : > { %2466 = vmatprep.subr.bf16.mxu0 %v2932_v14 }
 0x552   : > { %2467 = vmatpush3.bf16.msra.mxu0 %v2620_v25 }
 0x553   : > { %2468 = vmatprep.subr.bf16.mxu0 %v2932_v14 }
 0x556   : > { %2469 = vmatpush3.bf16.msra.mxu0 %v2621_v26 }
 0x557   : > { %2470 = vmatprep.subr.bf16.mxu0 %v2932_v14 }
 0x55a   : > { %2471 = vmatpush3.bf16.msra.mxu0 %v2622_v43 }
 0x600   : > { %v1747_v42 = vpop.f32.mrf.mxu1 }
 0x601   : > { %v1793_v44 = vpop.f32.mrf.mxu0  ;;  %v1891_v51 = vsel %vm577_vm0, %v1747_v42, 0.0  ;;  %v2307_v42 = vld [vmem:[%s3456_s13] ss:$0 sm:$0xff] }
 0x602   : > { %v2436_v45 = vpop.f32.mrf.mxu1  ;;  %v1892_v52 = vsel %vm577_vm0, %v1793_v44, 0.0 }
 0x603   : > { %v2442_v46 = vpop.f32.mrf.mxu0  ;;  %v1893_v54 = vadd.f32 %v1892_v52, %v1891_v51 }
 0x604   : > { %v1750_v47 = vpop.f32.mrf.mxu1 }
 0x605   : > { %v1796_v48 = vpop.f32.mrf.mxu0 }
 0x606   : > { %v2437_v49 = vpop.f32.mrf.mxu1 }
 0x607   : > { %v2443_v50 = vpop.f32.mrf.mxu0 }
 0x609   : > { %v1839_v53 = vpop.f32.mrf.mxu1 }
 0x60a   : > { %v1894_v59 = vsel %vm577_vm0, %v1839_v53, 0.0 }
 0x60b   : > { %v2448_v55 = vpop.f32.mrf.mxu1  ;;  %v1895_v56 = vadd.f32 %v1894_v59, %v1893_v54 }
 0x60d   : > { %v1842_v57 = vpop.f32.mrf.mxu1  ;;  %v1885_v58 = vpop.f32.mrf.mxu0 }
 0x60e   : > { %v1896_v60 = vsel %vm577_vm0, %v1885_v58, 0.0 }
 0x60f   : > { %v1897_v62 = vadd.f32 %v1896_v60, %v1895_v56  ;;  %v2449_v63 = vpop.f32.mrf.mxu1  ;;  %v2454_v1 = vpop.f32.mrf.mxu0 }
 0x611   : > { %v1905_v2 = vadd.f32 %v2300_v61, %v1897_v62  ;;  %v1888_v4 = vpop.f32.mrf.mxu0 }
 0x613   : > { %v2455_v5 = vpop.f32.mrf.mxu0  ;;  %v3355_v6 = vadd.f32 %v1905_v2, %v3170_v0  ;;  %v2618_v0 = vld [vmem:[%s3453_s10] sm:$0xff]  }
 0x614   : > { %2459 = vmatpush3.bf16.msra.mxu1 %v2618_v0 }
 0x615   : > { %v1909_v7 = vsel %vm577_vm0, %v3355_v6, 0.0 }
 0x616   : > { %1910 = vadd.xlane.f32.xlu1 %v1909_v7 }
 0x69f   : > { %v1911_v8 = vpop.xlane.xlu1 %1910 }
 0x6a0   : > { %v1912_v3 = vmul.f32 0.03125, %v1911_v8 }
 0x6a2   : > { %v1913_v9 = vsub.f32 %v3355_v6, %v1912_v3 }
 0x6a4   : > { %v1914_v10 = vmul.f32 %v1913_v9, %v1913_v9 }
 0x6a6   : > { %v1915_v11 = vsel %vm577_vm0, %v1914_v10, 0.0 }
 0x6a7   : > { %1916 = vadd.xlane.f32.xlu0 %v1915_v11 }
 0x730   : > { %v1917_v13 = vpop.xlane.xlu0 %1916 }
 0x731   : > { %v1918_v15 = vmul.f32 0.03125, %v1917_v13 }
 0x733   : > { %v1919_v16 = vadd.f32 1e-05, %v1918_v15 }
 0x735   : > { %2643 = vrsqrt.f32 %v1919_v16 }
 0x742   : > { %v2644_v17 = vpop.eup %2643 }
 0x743   : > { %v1921_v19 = vmul.f32 %v2644_v17, %v1913_v9 }
 0x745   : > { %v1928_v21 = vmul.f32 %v2301_v18, %v1921_v19 }
 0x747   : > { %v1935_v22 = vadd.f32 %v2302_v20, %v1928_v21 }
 0x749   : > { %v1936_v23 = vpack.c.bf16 %v1935_v22, %v1935_v22 }
 0x74b   : > { %2461 = vmatmul.mubr.msk.bf16.vlgmr.msra.gmra.mxu1 %vm577_vm0, %v1936_v23 }
 0x80b   : > { %v1997_v28 = vpop.f32.mrf.mxu1 }
 0x80c   : > { %v1998_v29 = vadd.f32 %v2303_v27, %v1997_v28 }
 0x80d   : > { %v2462_v30 = vpop.f32.mrf.mxu1 }
 0x80e   : > { %v2003_v31 = vmul.f32 %v1998_v29, %v1998_v29  ;;  %v2005_v14 = vmul.f32 0.5, %v1998_v29 }
 0x80f   : > { %v2000_v32 = vpop.f32.mrf.mxu1 }
 0x810   : > { %v2004_v33 = vmul.f32 %v2003_v31, %v1998_v29 }
 0x811   : > { %v2463_v34 = vpop.f32.mrf.mxu1 }
 0x812   : > { %v2006_v35 = vmul.f32 0.044715, %v2004_v33 }
 0x814   : > { %v2007_v36 = vadd.f32 %v2006_v35, %v1998_v29 }
 0x816   : > { %v2008_v37 = vmul.f32 0.7978846, %v2007_v36 }
 0x818   : > { %2645 = vtanh.f32 %v2008_v37 }
 0x825   : > { %v2646_v38 = vpop.eup %2645 }
 0x826   : > { %v2010_v39 = vadd.f32 1.0, %v2646_v38 }
 0x828   : > { %v2011_v40 = vmul.f32 %v2010_v39, %v2005_v14 }
 0x82a   : > { %v2012_v41 = vpack.c.bf16 %v2011_v40, %v2011_v40 }
 0x82c   : > { %2473 = vmatmul.mubr.msk.bf16.vlgmr.msra.gmra.mxu0 %vm2052_vm5, %v2012_v41 }
 0x8ec   : > { %v2090_v44 = vpop.f32.mrf.mxu0 }
 0x8ed   : > { %v2091_v45 = vadd.f32 %v2307_v42, %v2090_v44 }
 0x8ee   : > { %v2474_v46 = vpop.f32.mrf.mxu0 }
 0x8ef   : > { %v2096_v47 = vadd.f32 %v2091_v45, %v3355_v6 }
 0x8f0   : > { %v2093_v48 = vpop.f32.mrf.mxu0 }
 0x8f1   : > { %2097 = vst.msk [vmem:[%s564_s28] sm:$0xff] %vm577_vm0, %v2096_v47 }
 0x8f2   : > { %v2475_v49 = vpop.f32.mrf.mxu0 }
 0x8f3   : > { %2842 = shalt.err (!%p2839_p7)
}
 0x8f4   : > { %s2843_s27 = scalar_lea.hbm %s3396_s22, 128  ;;  %s2847_s24 = scalar_lea.hbm %s3490_s20, 256 }
 0x8f5   : > { %p2844_p9 = scmp.ne.s32.totalorder %s3396_s22, %s2843_s27  ;;  %p2848_p2 = scmp.lt.s32.totalorder %s3396_s22, %s3490_s20 }
 0x8f6   : > { %p2849_p8 = scmp.lt.s32.totalorder %s2847_s24, %s2843_s27 }
 0x8f7   : > { %p2845_p12 = pnand %p2844_p9, %p3491_p4 }
 0x8f8   : > { %p2850_p13 = por %p2849_p8, %p2848_p2 }
 0x8f9   : > { %p2846_p1 = pneg %p2845_p12 }
 0x8fb   : > { %p2851_p0 = pnand %p2850_p13, %p2846_p1 }
 0x8fd   : > { %2854 = shalt.err (!%p2851_p0)
}
 0x8fe   : > { %2504 = dma.vmem_to_hbm [thread:$0]  (%p3491_p4), %s3398_s2, 128, %s3396_s22, %s2099_s16  }
 0x8ff PF: > { %s3492_s14 = sld [smem:[#allocation25_spill]] }
 0x900   : > { %s3493_s18 = sld [smem:[#allocation22_spill]] }
 0x901   : > { %s3494_s26 = sld [smem:[#allocation27_spill]] }
 0x905   : > { %p2546_p10 = scmp.ge.s32.totalorder %s3492_s14, 2 }
 0x906   : > { %s2125_s25 = sand.u32 1, %s3493_s18  }
 0x907   : > { %p3495_p11 = scmp.ne.s32.totalorder %s3494_s26, 0  ;;  %s2126_s17 = scalar_lea.sflag [#allocation6], %s2125_s25 }
 0x909   : > { %p2529_p3 = pnand %p2546_p10, %p3495_p11 }
 0x90b   : > { %p2530_p5 = pneg %p2529_p3 }
 0x90d   : > { %2896 = dma.done.wait (%p2530_p5), %s2126_s17, 128  }
 0x90e   : > { %2898 = vsyncadd (%p2530_p5), %s2126_s17, 4294967168  ;;  %s31_s18 = sadd.s32 1, %s3492_s14   ;;  %s3496_s23 = sld [smem:[#allocation23_spill]] }
 0x90f   : > { %p28_p6 = scmp.ge.s32.totalorder %s31_s18, 4   ;;  %s3497_s15 = sld [smem:[#allocation28_spill]] }
 0x910   : > { %s3498_s16 = sld [smem:[#allocation24_spill]]  ;;  %s3500_s29 = smov %s2905_s30 }
 0x911   : > { %s3499_s17 = sld [smem:[#allocation26_spill]]  ;;  %30 = sbr.rel (!%p28_p6) target bundleno = 11 (0xb), region = 145 }
 0x914   : > { %s3501_s30 = smov %s3496_s23 }
 0x916   :  { %2131 = vsyncpa [#allocation5], 1 }
 0x917   :  { %2133 = vsyncpa [#allocation5 + $0x1], 1 }
 0x918   :  { %2134 = vsyncpa [#allocation8], 1 }
 0x919   :  { %2135 = vsyncpa [#allocation11], 1 }
 0x91a   :  { %2136 = vsyncpa [#allocation14], 1 }
 0x91b   :  { %2137 = vsyncpa [#allocation6], 1 }
 0x91c   :  { %2139 = vsyncpa [#allocation6 + $0x1], 1 }

</bundles_post_ra>
